<compile_context>
chip_gen: v7x
topology: tpu7x:2x2x1
jax: 0.10.0
libtpu: 0.0.40
codegen_flags: <defaults>
</compile_context>

<pallas_src>
import functools

import jax
import jax.numpy as jnp
from jax.experimental import pallas as pl
from jax.experimental.pallas import tpu as pltpu

MATMUL_DTYPE = jnp.bfloat16   # MXU input dtype (peak bf16 throughput on v5e/v6e/v7x)
INTER_DTYPE = jnp.bfloat16    # dtype of inter-kernel activations (halves HBM traffic)


@functools.lru_cache(maxsize=None)
def _vmem_limit_bytes():
    """Generation-aware scoped-VMEM budget (v7x has 64 MiB, v5e/v6e 128 MiB)."""
    cap = 64 * 1024 * 1024
    try:
        cap = int(pltpu.get_tpu_info().vmem_capacity_bytes)
    except Exception:
        pass
    return min(int(cap * 0.7), 100 * 1024 * 1024)


def _pick_tile(dim, candidates):
    """Largest candidate tile that divides `dim`, else the full dim (legal
    full-extent block; no pipelining along that axis)."""
    for c in candidates:
        if dim % c == 0:
            return c
    return dim
    # TODO(synk): pad ragged ViT sequence lengths (197/257) up to a multiple of
    # 128 in the wrapper instead of falling back to one full-extent block.


# ----------------------------------------------------------------------------
# Kernel A: LayerNorm1 fused with ONE wide QKV projection (C -> 3C)
# ----------------------------------------------------------------------------
def _ln_qkv_kernel(x_ref, g_ref, b_ref, w_ref, bias_ref, qkv_ref, *, eps):
    x = x_ref[...].astype(jnp.float32)                        # (tl, C)
    mean = jnp.mean(x, axis=-1, keepdims=True)
    var = jnp.mean((x - mean) ** 2, axis=-1, keepdims=True)
    xn = (x - mean) * jax.lax.rsqrt(var + eps)
    xn = xn * g_ref[...].astype(jnp.float32) + b_ref[...].astype(jnp.float32)
    y = jnp.dot(xn.astype(w_ref.dtype), w_ref[...],
                preferred_element_type=jnp.float32)            # (tl, 3C)  bf16 MXU
    y = y + bias_ref[...].astype(jnp.float32)
    qkv_ref[...] = y.astype(qkv_ref.dtype)[None]


def pallas_ln_qkv(x_lb2d, gamma, beta, w_qkv, b_qkv, B, L, C, eps=1e-5):
    """x_lb2d: (L, B*C) view of the (L,B,C) input (transpose folded into the
    index_map).  Returns qkv: (B, L, 3C) bf16 with [Q | K | V] column blocks."""
    assert C % 128 == 0, "d_model must be a multiple of 128 for lane-dense blocks"
    tl = _pick_tile(L, (256, 128, 64, 32, 16, 8))
    kernel = functools.partial(_ln_qkv_kernel, eps=eps)
    return pl.pallas_call(
        kernel,
        grid=(B, L // tl),
        out_shape=jax.ShapeDtypeStruct((B, L, 3 * C), INTER_DTYPE),
        in_specs=[
            # Reads x[li*tl:(li+1)*tl, b, :] straight out of the (L,B,C) tensor.
            pl.BlockSpec((tl, C), lambda b, li: (li, b)),
            pl.BlockSpec((1, C), lambda b, li: (0, 0)),
            pl.BlockSpec((1, C), lambda b, li: (0, 0)),
            pl.BlockSpec((C, 3 * C), lambda b, li: (0, 0)),
            pl.BlockSpec((1, 3 * C), lambda b, li: (0, 0)),
        ],
        out_specs=pl.BlockSpec((1, tl, 3 * C), lambda b, li: (b, li, 0)),
        compiler_params=pltpu.CompilerParams(
            dimension_semantics=("parallel", "parallel"),
            vmem_limit_bytes=_vmem_limit_bytes()),
    )(x_lb2d, gamma.reshape(1, C), beta.reshape(1, C),
      w_qkv, b_qkv.reshape(1, 3 * C))


# ----------------------------------------------------------------------------
# Kernel B: flash-style attention (online softmax, Q tiles, head split in maps)
# ----------------------------------------------------------------------------
def _flash_attn_kernel(q_ref, k_ref, v_ref, o_ref, m_ref, l_ref, acc_ref, *, scale):
    kv = pl.program_id(3)

    @pl.when(kv == 0)
    def _():
        m_ref[...] = jnp.full_like(m_ref, -jnp.inf)
        l_ref[...] = jnp.zeros_like(l_ref)
        acc_ref[...] = jnp.zeros_like(acc_ref)

    q = q_ref[...][0]                                          # (tq, D)  bf16
    k = k_ref[...][0]                                          # (kvb, D) bf16
    v = v_ref[...][0]                                          # (kvb, D) bf16
    s = jax.lax.dot_general(q, k, (((1,), (1,)), ((), ())),
                            preferred_element_type=jnp.float32) * scale  # (tq, kvb)
    m_prev = m_ref[...]
    m_new = jnp.maximum(m_prev, jnp.max(s, axis=-1, keepdims=True))
    alpha = jnp.exp(m_prev - m_new)
    p = jnp.exp(s - m_new)
    l_ref[...] = alpha * l_ref[...] + jnp.sum(p, axis=-1, keepdims=True)
    acc_ref[...] = alpha * acc_ref[...] + jnp.dot(
        p.astype(v.dtype), v, preferred_element_type=jnp.float32)
    m_ref[...] = m_new

    @pl.when(kv == pl.num_programs(3) - 1)
    def _():
        inv_l = pl.reciprocal(l_ref[...], approx=True)
        o_ref[...] = (acc_ref[...] * inv_l).astype(o_ref.dtype)[None]


def pallas_flash_attention(qkv, n_head):
    """qkv: (B, L, 3C) bf16 with [Q|K|V] column blocks.  Returns (B, L, C) bf16
    with heads already merged (head split / merge done purely via index_maps)."""
    B, L, C3 = qkv.shape
    C = C3 // 3
    H = n_head
    D = C // H
    # TODO(synk): support head_dim < 128 (e.g. CLIP ViT-B's 64) by packing two
    # heads per 128-lane block; demo uses head_dim == 128.
    assert D % 128 == 0, "head_dim must be a multiple of 128"
    scale = float(D) ** -0.5
    tq = _pick_tile(L, (256, 128, 64, 32, 16, 8))
    kvb = _pick_tile(L, (512, 256, 128, 64, 32, 16, 8))
    kernel = functools.partial(_flash_attn_kernel, scale=scale)
    return pl.pallas_call(
        kernel,
        grid=(B, H, L // tq, L // kvb),
        out_shape=jax.ShapeDtypeStruct((B, L, C), INTER_DTYPE),
        in_specs=[
            pl.BlockSpec((1, tq, D), lambda b, h, qi, kvi: (b, qi, h)),
            pl.BlockSpec((1, kvb, D), lambda b, h, qi, kvi: (b, kvi, H + h)),
            pl.BlockSpec((1, kvb, D), lambda b, h, qi, kvi: (b, kvi, 2 * H + h)),
        ],
        out_specs=pl.BlockSpec((1, tq, D), lambda b, h, qi, kvi: (b, qi, h)),
        scratch_shapes=[
            pltpu.VMEM((tq, 1), jnp.float32),    # running max m
            pltpu.VMEM((tq, 1), jnp.float32),    # running denom l
            pltpu.VMEM((tq, D), jnp.float32),    # output accumulator
        ],
        compiler_params=pltpu.CompilerParams(
            dimension_semantics=("parallel", "parallel", "parallel", "arbitrary"),
            vmem_limit_bytes=_vmem_limit_bytes()),
    )(qkv, qkv, qkv)


# ----------------------------------------------------------------------------
# Kernel C1: out_proj + bias + residual, with LN2(x_new) emitted as 2nd output
# ----------------------------------------------------------------------------
def _out_proj_ln2_kernel(a_ref, w_ref, b_ref, res_ref, g_ref, be_ref,
                         xout_ref, xln_ref, acc_ref, *, eps):
    k = pl.program_id(2)

    @pl.when(k == 0)
    def _():
        acc_ref[...] = jnp.zeros_like(acc_ref)

    acc_ref[...] += jnp.dot(a_ref[...][0], w_ref[...],
                            preferred_element_type=jnp.float32)

    @pl.when(k == pl.num_programs(2) - 1)
    def _():
        x_new = (acc_ref[...] + b_ref[...].astype(jnp.float32)
                 + res_ref[...].astype(jnp.float32))           # (tl, C)
        xout_ref[...] = x_new.astype(xout_ref.dtype)[None]
        # LN2 hoisted here: the full C row is resident -> no per-tile recompute
        # in the FFN matmul and no extra HBM re-read of x.
        mean = jnp.mean(x_new, axis=-1, keepdims=True)
        var = jnp.mean((x_new - mean) ** 2, axis=-1, keepdims=True)
        xn = (x_new - mean) * jax.lax.rsqrt(var + eps)
        xn = xn * g_ref[...].astype(jnp.float32) + be_ref[...].astype(jnp.float32)
        xln_ref[...] = xn.astype(xln_ref.dtype)[None]


def pallas_out_proj_ln2(attn, x_lb2d, w_o, b_o, ln2_g, ln2_b, eps=1e-5):
    """x_new = attn @ w_o + b_o + x (residual read straight from the (L,B,C)
    input via its (L, B*C) view).  Returns (x_new f32, LN2(x_new) bf16),
    both shaped (B, L, C)."""
    B, L, C = attn.shape
    tl = _pick_tile(L, (256, 128, 64, 32, 16, 8))
    tk = _pick_tile(C, (512, 256, 128))
    kernel = functools.partial(_out_proj_ln2_kernel, eps=eps)
    out_spec = pl.BlockSpec((1, tl, C), lambda b, li, k: (b, li, 0))
    return pl.pallas_call(
        kernel,
        grid=(B, L // tl, C // tk),
        out_shape=(jax.ShapeDtypeStruct((B, L, C), x_lb2d.dtype),
                   jax.ShapeDtypeStruct((B, L, C), INTER_DTYPE)),
        in_specs=[
            pl.BlockSpec((1, tl, tk), lambda b, li, k: (b, li, k)),
            pl.BlockSpec((tk, C), lambda b, li, k: (k, 0)),
            pl.BlockSpec((1, C), lambda b, li, k: (0, 0)),
            pl.BlockSpec((tl, C), lambda b, li, k: (li, b)),   # residual, transpose folded
            pl.BlockSpec((1, C), lambda b, li, k: (0, 0)),
            pl.BlockSpec((1, C), lambda b, li, k: (0, 0)),
        ],
        out_specs=(out_spec, out_spec),
        scratch_shapes=[pltpu.VMEM((tl, C), jnp.float32)],
        compiler_params=pltpu.CompilerParams(
            dimension_semantics=("parallel", "parallel", "arbitrary"),
            vmem_limit_bytes=_vmem_limit_bytes()),
    )(attn, w_o, b_o.reshape(1, C), x_lb2d, ln2_g.reshape(1, C), ln2_b.reshape(1, C))


# ----------------------------------------------------------------------------
# Kernel C2: generic (B, L, .) linear with fused bias / QuickGELU / residual,
#            optionally writing the output directly in (L, B*C) layout.
# ----------------------------------------------------------------------------
def _blc_linear_kernel(*refs, has_res, activation):
    it = iter(refs)
    x_ref = next(it)
    w_ref = next(it)
    b_ref = next(it)
    r_ref = next(it) if has_res else None
    o_ref = next(it)
    acc_ref = next(it)

    k = pl.program_id(3)

    @pl.when(k == 0)
    def _():
        acc_ref[...] = jnp.zeros_like(acc_ref)

    acc_ref[...] += jnp.dot(x_ref[...][0], w_ref[...],
                            preferred_element_type=jnp.float32)

    @pl.when(k == pl.num_programs(3) - 1)
    def _():
        y = acc_ref[...] + b_ref[...].astype(jnp.float32)
        if activation == "quick_gelu":
            y = y * jax.nn.sigmoid(1.702 * y)
        if has_res:
            y = y + r_ref[...][0].astype(jnp.float32)
        o_ref[...] = y.astype(o_ref.dtype).reshape(o_ref.shape)


def pallas_blc_linear(x, w, bias, residual=None, activation=None,
                      out_dtype=None, out_lbc=False):
    """y = act(x @ w + bias) [+ residual].  x:(B,L,K), w:(K,N).
    If out_lbc, the output is written as the (L, B*N) view of an (L, B, N)
    tensor, folding the final output transpose into the store."""
    B, L, K = x.shape
    Kw, N = w.shape
    assert Kw == K
    has_res = residual is not None
    out_dtype = out_dtype or x.dtype

    tl = _pick_tile(L, (256, 128, 64, 32, 16, 8))
    tk = _pick_tile(K, (512, 256, 128))
    tn = N if out_lbc else _pick_tile(N, (512, 256, 128))
    grid = (B, L // tl, N // tn, K // tk)

    kernel = functools.partial(_blc_linear_kernel, has_res=has_res,
                               activation=activation)

    in_specs = [
        pl.BlockSpec((1, tl, tk), lambda b, li, j, k: (b, li, k)),
        pl.BlockSpec((tk, tn), lambda b, li, j, k: (k, j)),
        pl.BlockSpec((1, tn), lambda b, li, j, k: (0, j)),
    ]
    args = [x, w, bias.reshape(1, N)]
    if has_res:
        in_specs.append(pl.BlockSpec((1, tl, tn), lambda b, li, j, k: (b, li, j)))
        args.append(residual)

    if out_lbc:
        out_shape = jax.ShapeDtypeStruct((L, B * N), out_dtype)
        out_spec = pl.BlockSpec((tl, N), lambda b, li, j, k: (li, b))
    else:
        out_shape = jax.ShapeDtypeStruct((B, L, N), out_dtype)
        out_spec = pl.BlockSpec((1, tl, tn), lambda b, li, j, k: (b, li, j))

    return pl.pallas_call(
        kernel,
        grid=grid,
        out_shape=out_shape,
        in_specs=in_specs,
        out_specs=out_spec,
        scratch_shapes=[pltpu.VMEM((tl, tn), jnp.float32)],
        compiler_params=pltpu.CompilerParams(
            dimension_semantics=("parallel", "parallel", "parallel", "arbitrary"),
            vmem_limit_bytes=_vmem_limit_bytes()),
    )(*args)


# ----------------------------------------------------------------------------
# VisionBlock forward (glue around the four kernels)
# ----------------------------------------------------------------------------
def vision_block_forward(x_lbc, params, n_head, eps=1e-5):
    """x_lbc: (seq_len, batch, d_model) — nn.MultiheadAttention's default layout."""
    L, B, C = x_lbc.shape
    x2d = x_lbc.reshape(L, B * C)   # free view; (L,B,C)<->(B,L,C) handled in index_maps

    # --- x = x + attn(LN1(x)) -------------------------------------------------
    qkv = pallas_ln_qkv(x2d, params["ln1_g"], params["ln1_b"],
                        params["w_qkv"], params["b_qkv"], B, L, C, eps)
    attn = pallas_flash_attention(qkv, n_head)                       # (B, L, C) bf16
    x_res, x_ln2 = pallas_out_proj_ln2(attn, x2d, params["wo"], params["bo"],
                                       params["ln2_g"], params["ln2_b"], eps)

    # --- x = x + c_proj(QuickGELU(c_fc(LN2(x)))) --------------------------------
    h = pallas_blc_linear(x_ln2, params["w_fc"], params["b_fc"],
                          activation="quick_gelu", out_dtype=INTER_DTYPE)
    out2d = pallas_blc_linear(h, params["w_proj"], params["b_proj"],
                              residual=x_res, out_dtype=x_lbc.dtype, out_lbc=True)
    return out2d.reshape(L, B, C)


# ----------------------------------------------------------------------------
# Deterministic synthetic parameters (weights stored as x @ W, i.e. torch W.T)
# ----------------------------------------------------------------------------
def init_vision_block_params(key, d_model, std=0.02):
    C = d_model
    f32 = jnp.float32
    ks = jax.random.split(key, 6)
    return {
        "ln1_g": jnp.ones((C,), f32), "ln1_b": jnp.zeros((C,), f32),
        "wq": std * jax.random.normal(ks[0], (C, C), f32),
        "wk": std * jax.random.normal(ks[1], (C, C), f32),
        "wv": std * jax.random.normal(ks[2], (C, C), f32),
        "bq": jnp.zeros((C,), f32), "bk": jnp.zeros((C,), f32), "bv": jnp.zeros((C,), f32),
        "wo": std * jax.random.normal(ks[3], (C, C), f32),
        "bo": jnp.zeros((C,), f32),
        "ln2_g": jnp.ones((C,), f32), "ln2_b": jnp.zeros((C,), f32),
        "w_fc": std * jax.random.normal(ks[4], (C, 4 * C), f32),
        "b_fc": jnp.zeros((4 * C,), f32),
        "w_proj": std * jax.random.normal(ks[5], (4 * C, C), f32),
        "b_proj": jnp.zeros((C,), f32),
    }


def prepare_params(params):
    """One-time prep: concat Wq|Wk|Wv into one wide projection and cast all
    matmul weights to bf16 ONCE (not per-tile inside the kernels)."""
    return {
        "ln1_g": params["ln1_g"], "ln1_b": params["ln1_b"],
        "ln2_g": params["ln2_g"], "ln2_b": params["ln2_b"],
        "w_qkv": jnp.concatenate([params["wq"], params["wk"], params["wv"]],
                                 axis=1).astype(MATMUL_DTYPE),
        "b_qkv": jnp.concatenate([params["bq"], params["bk"], params["bv"]]),
        "wo": params["wo"].astype(MATMUL_DTYPE), "bo": params["bo"],
        "w_fc": params["w_fc"].astype(MATMUL_DTYPE), "b_fc": params["b_fc"],
        "w_proj": params["w_proj"].astype(MATMUL_DTYPE), "b_proj": params["b_proj"],
    }


# ----------------------------------------------------------------------------
if __name__ == "__main__":
    # Small config: d_model=256 with n_head=2 gives head_dim=128 (lane-dense).
    d_model = 256
    n_head = 2
    seq_len = 8
    batch = 2

    root = jax.random.PRNGKey(0)
    k_params, k_x = jax.random.split(root)
    params = prepare_params(init_vision_block_params(k_params, d_model))

    # nn.MultiheadAttention default layout: (seq_len, batch, d_model)
    x = jax.random.normal(k_x, (seq_len, batch, d_model), jnp.float32)

    fwd = jax.jit(functools.partial(vision_block_forward, n_head=n_head))
    y = fwd(x, params)
    jax.block_until_ready(y)

    assert y.shape == (seq_len, batch, d_model)
    assert bool(jnp.all(jnp.isfinite(y)))
    print("KERNEL_OK")
</pallas_src>

<mosaic_0001>
module attributes {stable_mosaic.version = 11 : i64} {
  func.func @_ln_qkv_kernel(%arg0: i32, %arg1: i32, %arg2: memref<8x256xf32, #tpu.memory_space<vmem>>, %arg3: memref<1x256xf32, #tpu.memory_space<vmem>>, %arg4: memref<1x256xf32, #tpu.memory_space<vmem>>, %arg5: memref<256x768xbf16, #tpu.memory_space<vmem>>, %arg6: memref<1x768xf32, #tpu.memory_space<vmem>>, %arg7: memref<1x8x768xbf16, #tpu.memory_space<vmem>>) attributes {dimension_semantics = [#tpu.dimension_semantics<parallel>, #tpu.dimension_semantics<parallel>], iteration_bounds = array<i64: 2, 1>, scalar_prefetch = 0 : i64, scratch_operands = 0 : i64, tpu.core_type = #tpu.core_type<tc>, window_params = [{transform_indices = @transform_0, window_bounds = array<i64: 8, 256>}, {pipeline_mode = #tpu.pipeline_mode<synchronous>, transform_indices = @transform_1, window_bounds = array<i64: 1, 256>}, {pipeline_mode = #tpu.pipeline_mode<synchronous>, transform_indices = @transform_2, window_bounds = array<i64: 1, 256>}, {pipeline_mode = #tpu.pipeline_mode<synchronous>, transform_indices = @transform_3, window_bounds = array<i64: 256, 768>}, {pipeline_mode = #tpu.pipeline_mode<synchronous>, transform_indices = @transform_4, window_bounds = array<i64: 1, 768>}, {transform_indices = @transform_5, window_bounds = array<i64: 1, 8, 768>}]} {
    %c0 = arith.constant 0 : index
    %c0_0 = arith.constant 0 : index
    %0 = vector.load %arg2[%c0, %c0_0] : memref<8x256xf32, #tpu.memory_space<vmem>>, vector<8x256xf32>
    %cst = arith.constant dense<0.000000e+00> : vector<8xf32>
    %1 = vector.multi_reduction <add>, %0, %cst [1] : vector<8x256xf32> to vector<8xf32>
    %2 = vector.shape_cast %1 : vector<8xf32> to vector<8x1xf32>
    %cst_1 = arith.constant 2.560000e+02 : f32
    %3 = vector.broadcast %cst_1 : f32 to vector<8x1xf32>
    %4 = arith.divf %2, %3 : vector<8x1xf32>
    %5 = vector.broadcast %4 : vector<8x1xf32> to vector<8x256xf32>
    %6 = arith.subf %0, %5 : vector<8x256xf32>
    %7 = arith.mulf %6, %6 : vector<8x256xf32>
    %cst_2 = arith.constant dense<0.000000e+00> : vector<8xf32>
    %8 = vector.multi_reduction <add>, %7, %cst_2 [1] : vector<8x256xf32> to vector<8xf32>
    %9 = vector.shape_cast %8 : vector<8xf32> to vector<8x1xf32>
    %cst_3 = arith.constant 2.560000e+02 : f32
    %10 = vector.broadcast %cst_3 : f32 to vector<8x1xf32>
    %11 = arith.divf %9, %10 : vector<8x1xf32>
    %12 = vector.broadcast %4 : vector<8x1xf32> to vector<8x256xf32>
    %13 = arith.subf %0, %12 : vector<8x256xf32>
    %cst_4 = arith.constant 9.99999974E-6 : f32
    %14 = vector.broadcast %cst_4 : f32 to vector<8x1xf32>
    %15 = arith.addf %11, %14 : vector<8x1xf32>
    %16 = math.rsqrt %15 : vector<8x1xf32>
    %17 = vector.broadcast %16 : vector<8x1xf32> to vector<8x256xf32>
    %18 = arith.mulf %13, %17 : vector<8x256xf32>
    %c0_5 = arith.constant 0 : index
    %c0_6 = arith.constant 0 : index
    %19 = vector.load %arg3[%c0_5, %c0_6] : memref<1x256xf32, #tpu.memory_space<vmem>>, vector<1x256xf32>
    %20 = vector.broadcast %19 : vector<1x256xf32> to vector<8x256xf32>
    %21 = arith.mulf %18, %20 : vector<8x256xf32>
    %c0_7 = arith.constant 0 : index
    %c0_8 = arith.constant 0 : index
    %22 = vector.load %arg4[%c0_7, %c0_8] : memref<1x256xf32, #tpu.memory_space<vmem>>, vector<1x256xf32>
    %23 = vector.broadcast %22 : vector<1x256xf32> to vector<8x256xf32>
    %24 = arith.addf %21, %23 : vector<8x256xf32>
    %25 = arith.truncf %24 : vector<8x256xf32> to vector<8x256xbf16>
    %c0_9 = arith.constant 0 : index
    %c0_10 = arith.constant 0 : index
    %26 = vector.load %arg5[%c0_9, %c0_10] : memref<256x768xbf16, #tpu.memory_space<vmem>>, vector<256x768xbf16>
    %cst_11 = arith.constant dense<0.000000e+00> : vector<8x768xf32>
    %27 = tpu.matmul %25, %26, %cst_11 {dimension_numbers = #tpu.dot_dimension_numbers<[1], [0], [0], [1], [0, 0, 1, 1], [], []>} : vector<8x256xbf16>, vector<256x768xbf16>, vector<8x768xf32> -> vector<8x768xf32>
    %c0_12 = arith.constant 0 : index
    %c0_13 = arith.constant 0 : index
    %28 = vector.load %arg6[%c0_12, %c0_13] : memref<1x768xf32, #tpu.memory_space<vmem>>, vector<1x768xf32>
    %29 = vector.broadcast %28 : vector<1x768xf32> to vector<8x768xf32>
    %30 = arith.addf %27, %29 : vector<8x768xf32>
    %31 = arith.truncf %30 : vector<8x768xf32> to vector<8x768xbf16>
    %32 = vector.shape_cast %31 : vector<8x768xbf16> to vector<1x8x768xbf16>
    %c0_14 = arith.constant 0 : index
    %c0_15 = arith.constant 0 : index
    %c0_16 = arith.constant 0 : index
    %33 = vector.load %arg7[%c0_14, %c0_15, %c0_16] : memref<1x8x768xbf16, #tpu.memory_space<vmem>>, vector<1x8x768xbf16>
    tpu.vector_store %arg7[%c0_14, %c0_15, %c0_16], %32 {strides = array<i32>} : memref<1x8x768xbf16, #tpu.memory_space<vmem>>, vector<1x8x768xbf16>,
    return
  }
  func.func @transform_0(%arg0: i32, %arg1: i32) -> (i32, i32) {
    %c0_i32 = arith.constant 0 : i32
    return %arg1, %arg0 : i32, i32
  }
  func.func @transform_1(%arg0: i32, %arg1: i32) -> (i32, i32) {
    %c0_i32 = arith.constant 0 : i32
    %c0_i32_0 = arith.constant 0 : i32
    %c0_i32_1 = arith.constant 0 : i32
    return %c0_i32, %c0_i32_0 : i32, i32
  }
  func.func @transform_2(%arg0: i32, %arg1: i32) -> (i32, i32) {
    %c0_i32 = arith.constant 0 : i32
    %c0_i32_0 = arith.constant 0 : i32
    %c0_i32_1 = arith.constant 0 : i32
    return %c0_i32, %c0_i32_0 : i32, i32
  }
  func.func @transform_3(%arg0: i32, %arg1: i32) -> (i32, i32) {
    %c0_i32 = arith.constant 0 : i32
    %c0_i32_0 = arith.constant 0 : i32
    %c0_i32_1 = arith.constant 0 : i32
    return %c0_i32, %c0_i32_0 : i32, i32
  }
  func.func @transform_4(%arg0: i32, %arg1: i32) -> (i32, i32) {
    %c0_i32 = arith.constant 0 : i32
    %c0_i32_0 = arith.constant 0 : i32
    %c0_i32_1 = arith.constant 0 : i32
    return %c0_i32, %c0_i32_0 : i32, i32
  }
  func.func @transform_5(%arg0: i32, %arg1: i32) -> (i32, i32, i32) {
    %c0_i32 = arith.constant 0 : i32
    %c0_i32_0 = arith.constant 0 : i32
    return %arg0, %arg1, %c0_i32 : i32, i32, i32
  }
}

module attributes {stable_mosaic.version = 11 : i64} {
  func.func @_flash_attn_kernel(%arg0: i32, %arg1: i32, %arg2: i32, %arg3: i32, %arg4: memref<1x8x128xbf16, #tpu.memory_space<vmem>>, %arg5: memref<1x8x128xbf16, #tpu.memory_space<vmem>>, %arg6: memref<1x8x128xbf16, #tpu.memory_space<vmem>>, %arg7: memref<1x8x128xbf16, #tpu.memory_space<vmem>>, %arg8: memref<8x1xf32, #tpu.memory_space<vmem>>, %arg9: memref<8x1xf32, #tpu.memory_space<vmem>>, %arg10: memref<8x128xf32, #tpu.memory_space<vmem>>) attributes {dimension_semantics = [#tpu.dimension_semantics<parallel>, #tpu.dimension_semantics<parallel>, #tpu.dimension_semantics<parallel>, #tpu.dimension_semantics<arbitrary>], iteration_bounds = array<i64: 2, 2, 1, 1>, scalar_prefetch = 0 : i64, scratch_operands = 3 : i64, tpu.core_type = #tpu.core_type<tc>, window_params = [{transform_indices = @transform_0, window_bounds = array<i64: 1, 8, 128>}, {transform_indices = @transform_1, window_bounds = array<i64: 1, 8, 128>}, {transform_indices = @transform_2, window_bounds = array<i64: 1, 8, 128>}, {transform_indices = @transform_3, window_bounds = array<i64: 1, 8, 128>}]} {
    %c0_i32 = arith.constant 0 : i32
    %0 = arith.cmpi eq, %arg3, %c0_i32 : i32
    %1 = arith.extui %0 : i1 to i32
    %c0_i32_0 = arith.constant 0 : i32
    %2 = arith.cmpi ne, %1, %c0_i32_0 : i32
    scf.if %2 {
      %cst_27 = arith.constant 0xFF800000 : f32
      %38 = vector.broadcast %cst_27 : f32 to vector<8x1xf32>
      %c0_28 = arith.constant 0 : index
      %c0_29 = arith.constant 0 : index
      %39 = vector.load %arg8[%c0_28, %c0_29] : memref<8x1xf32, #tpu.memory_space<vmem>>, vector<8x1xf32>
      tpu.vector_store %arg8[%c0_28, %c0_29], %38 {strides = array<i32>} : memref<8x1xf32, #tpu.memory_space<vmem>>, vector<8x1xf32>,
      %cst_30 = arith.constant 0.000000e+00 : f32
      %40 = vector.broadcast %cst_30 : f32 to vector<8x1xf32>
      %c0_31 = arith.constant 0 : index
      %c0_32 = arith.constant 0 : index
      %41 = vector.load %arg9[%c0_31, %c0_32] : memref<8x1xf32, #tpu.memory_space<vmem>>, vector<8x1xf32>
      tpu.vector_store %arg9[%c0_31, %c0_32], %40 {strides = array<i32>} : memref<8x1xf32, #tpu.memory_space<vmem>>, vector<8x1xf32>,
      %cst_33 = arith.constant 0.000000e+00 : f32
      %42 = vector.broadcast %cst_33 : f32 to vector<8x128xf32>
      %c0_34 = arith.constant 0 : index
      %c0_35 = arith.constant 0 : index
      %43 = vector.load %arg10[%c0_34, %c0_35] : memref<8x128xf32, #tpu.memory_space<vmem>>, vector<8x128xf32>
      tpu.vector_store %arg10[%c0_34, %c0_35], %42 {strides = array<i32>} : memref<8x128xf32, #tpu.memory_space<vmem>>, vector<8x128xf32>,
    } else {
    }
    %c0 = arith.constant 0 : index
    %c0_1 = arith.constant 0 : index
    %c0_2 = arith.constant 0 : index
    %3 = vector.load %arg4[%c0, %c0_1, %c0_2] : memref<1x8x128xbf16, #tpu.memory_space<vmem>>, vector<1x8x128xbf16>
    %4 = vector.shape_cast %3 : vector<1x8x128xbf16> to vector<8x128xbf16>
    %c0_3 = arith.constant 0 : index
    %c0_4 = arith.constant 0 : index
    %c0_5 = arith.constant 0 : index
    %5 = vector.load %arg5[%c0_3, %c0_4, %c0_5] : memref<1x8x128xbf16, #tpu.memory_space<vmem>>, vector<1x8x128xbf16>
    %6 = vector.shape_cast %5 : vector<1x8x128xbf16> to vector<8x128xbf16>
    %c0_6 = arith.constant 0 : index
    %c0_7 = arith.constant 0 : index
    %c0_8 = arith.constant 0 : index
    %7 = vector.load %arg6[%c0_6, %c0_7, %c0_8] : memref<1x8x128xbf16, #tpu.memory_space<vmem>>, vector<1x8x128xbf16>
    %8 = vector.shape_cast %7 : vector<1x8x128xbf16> to vector<8x128xbf16>
    %cst = arith.constant dense<0.000000e+00> : vector<8x8xf32>
    %9 = tpu.matmul %4, %6, %cst {dimension_numbers = #tpu.dot_dimension_numbers<[1], [1], [0], [0], [0, 0, 1, 0], [], []>} : vector<8x128xbf16>, vector<8x128xbf16>, vector<8x8xf32> -> vector<8x8xf32>
    %cst_9 = arith.constant 0.0883883461 : f32
    %10 = vector.broadcast %cst_9 : f32 to vector<8x8xf32>
    %11 = arith.mulf %9, %10 : vector<8x8xf32>
    %c0_10 = arith.constant 0 : index
    %c0_11 = arith.constant 0 : index
    %12 = vector.load %arg8[%c0_10, %c0_11] : memref<8x1xf32, #tpu.memory_space<vmem>>, vector<8x1xf32>
    %cst_12 = arith.constant dense<0xFF800000> : vector<8xf32>
    %13 = vector.multi_reduction <maximumf>, %11, %cst_12 [1] : vector<8x8xf32> to vector<8xf32>
    %14 = vector.shape_cast %13 : vector<8xf32> to vector<8x1xf32>
    %15 = arith.maximumf %12, %14 : vector<8x1xf32>
    %16 = arith.subf %12, %15 : vector<8x1xf32>
    %17 = math.exp %16 : vector<8x1xf32>
    %18 = vector.broadcast %15 : vector<8x1xf32> to vector<8x8xf32>
    %19 = arith.subf %11, %18 : vector<8x8xf32>
    %20 = math.exp %19 : vector<8x8xf32>
    %c0_13 = arith.constant 0 : index
    %c0_14 = arith.constant 0 : index
    %21 = vector.load %arg9[%c0_13, %c0_14] : memref<8x1xf32, #tpu.memory_space<vmem>>, vector<8x1xf32>
    %22 = arith.mulf %17, %21 : vector<8x1xf32>
    %cst_15 = arith.constant dense<0.000000e+00> : vector<8xf32>
    %23 = vector.multi_reduction <add>, %20, %cst_15 [1] : vector<8x8xf32> to vector<8xf32>
    %24 = vector.shape_cast %23 : vector<8xf32> to vector<8x1xf32>
    %25 = arith.addf %22, %24 : vector<8x1xf32>
    %c0_16 = arith.constant 0 : index
    %c0_17 = arith.constant 0 : index
    %26 = vector.load %arg9[%c0_16, %c0_17] : memref<8x1xf32, #tpu.memory_space<vmem>>, vector<8x1xf32>
    tpu.vector_store %arg9[%c0_16, %c0_17], %25 {strides = array<i32>} : memref<8x1xf32, #tpu.memory_space<vmem>>, vector<8x1xf32>,
    %c0_18 = arith.constant 0 : index
    %c0_19 = arith.constant 0 : index
    %27 = vector.load %arg10[%c0_18, %c0_19] : memref<8x128xf32, #tpu.memory_space<vmem>>, vector<8x128xf32>
    %28 = vector.broadcast %17 : vector<8x1xf32> to vector<8x128xf32>
    %29 = arith.mulf %28, %27 : vector<8x128xf32>
    %30 = arith.truncf %20 : vector<8x8xf32> to vector<8x8xbf16>
    %cst_20 = arith.constant dense<0.000000e+00> : vector<8x128xf32>
    %31 = tpu.matmul %30, %8, %cst_20 {dimension_numbers = #tpu.dot_dimension_numbers<[1], [0], [0], [1], [0, 0, 1, 1], [], []>} : vector<8x8xbf16>, vector<8x128xbf16>, vector<8x128xf32> -> vector<8x128xf32>
    %32 = arith.addf %29, %31 : vector<8x128xf32>
    %c0_21 = arith.constant 0 : index
    %c0_22 = arith.constant 0 : index
    %33 = vector.load %arg10[%c0_21, %c0_22] : memref<8x128xf32, #tpu.memory_space<vmem>>, vector<8x128xf32>
    tpu.vector_store %arg10[%c0_21, %c0_22], %32 {strides = array<i32>} : memref<8x128xf32, #tpu.memory_space<vmem>>, vector<8x128xf32>,
    %c0_23 = arith.constant 0 : index
    %c0_24 = arith.constant 0 : index
    %34 = vector.load %arg8[%c0_23, %c0_24] : memref<8x1xf32, #tpu.memory_space<vmem>>, vector<8x1xf32>
    tpu.vector_store %arg8[%c0_23, %c0_24], %15 {strides = array<i32>} : memref<8x1xf32, #tpu.memory_space<vmem>>, vector<8x1xf32>,
    %c0_i32_25 = arith.constant 0 : i32
    %35 = arith.cmpi eq, %arg3, %c0_i32_25 : i32
    %36 = arith.extui %35 : i1 to i32
    %c0_i32_26 = arith.constant 0 : i32
    %37 = arith.cmpi ne, %36, %c0_i32_26 : i32
    scf.if %37 {
      %c0_27 = arith.constant 0 : index
      %c0_28 = arith.constant 0 : index
      %38 = vector.load %arg9[%c0_27, %c0_28] : memref<8x1xf32, #tpu.memory_space<vmem>>, vector<8x1xf32>
      %39 = tpu.reciprocal %38 {approx = true} : vector<8x1xf32> -> vector<8x1xf32>
      %c0_29 = arith.constant 0 : index
      %c0_30 = arith.constant 0 : index
      %40 = vector.load %arg10[%c0_29, %c0_30] : memref<8x128xf32, #tpu.memory_space<vmem>>, vector<8x128xf32>
      %41 = vector.broadcast %39 : vector<8x1xf32> to vector<8x128xf32>
      %42 = arith.mulf %40, %41 : vector<8x128xf32>
      %43 = arith.truncf %42 : vector<8x128xf32> to vector<8x128xbf16>
      %44 = vector.shape_cast %43 : vector<8x128xbf16> to vector<1x8x128xbf16>
      %c0_31 = arith.constant 0 : index
      %c0_32 = arith.constant 0 : index
      %c0_33 = arith.constant 0 : index
      %45 = vector.load %arg7[%c0_31, %c0_32, %c0_33] : memref<1x8x128xbf16, #tpu.memory_space<vmem>>, vector<1x8x128xbf16>
      tpu.vector_store %arg7[%c0_31, %c0_32, %c0_33], %44 {strides = array<i32>} : memref<1x8x128xbf16, #tpu.memory_space<vmem>>, vector<1x8x128xbf16>,
    } else {
    }
    return
  }
  func.func @transform_0(%arg0: i32, %arg1: i32, %arg2: i32, %arg3: i32) -> (i32, i32, i32) {
    %c0_i32 = arith.constant 0 : i32
    return %arg0, %arg2, %arg1 : i32, i32, i32
  }
  func.func @transform_1(%arg0: i32, %arg1: i32, %arg2: i32, %arg3: i32) -> (i32, i32, i32) {
    %c2_i32 = arith.constant 2 : i32
    %0 = arith.addi %c2_i32, %arg1 : i32
    %c0_i32 = arith.constant 0 : i32
    return %arg0, %arg3, %0 : i32, i32, i32
  }
  func.func @transform_2(%arg0: i32, %arg1: i32, %arg2: i32, %arg3: i32) -> (i32, i32, i32) {
    %c4_i32 = arith.constant 4 : i32
    %0 = arith.addi %c4_i32, %arg1 : i32
    %c0_i32 = arith.constant 0 : i32
    return %arg0, %arg3, %0 : i32, i32, i32
  }
  func.func @transform_3(%arg0: i32, %arg1: i32, %arg2: i32, %arg3: i32) -> (i32, i32, i32) {
    %c0_i32 = arith.constant 0 : i32
    return %arg0, %arg2, %arg1 : i32, i32, i32
  }
}

module attributes {stable_mosaic.version = 11 : i64} {
  func.func @_out_proj_ln2_kernel(%arg0: i32, %arg1: i32, %arg2: i32, %arg3: memref<1x8x256xbf16, #tpu.memory_space<vmem>>, %arg4: memref<256x256xbf16, #tpu.memory_space<vmem>>, %arg5: memref<1x256xf32, #tpu.memory_space<vmem>>, %arg6: memref<8x256xf32, #tpu.memory_space<vmem>>, %arg7: memref<1x256xf32, #tpu.memory_space<vmem>>, %arg8: memref<1x256xf32, #tpu.memory_space<vmem>>, %arg9: memref<1x8x256xf32, #tpu.memory_space<vmem>>, %arg10: memref<1x8x256xbf16, #tpu.memory_space<vmem>>, %arg11: memref<8x256xf32, #tpu.memory_space<vmem>>) attributes {dimension_semantics = [#tpu.dimension_semantics<parallel>, #tpu.dimension_semantics<parallel>, #tpu.dimension_semantics<arbitrary>], iteration_bounds = array<i64: 2, 1, 1>, scalar_prefetch = 0 : i64, scratch_operands = 1 : i64, tpu.core_type = #tpu.core_type<tc>, window_params = [{transform_indices = @transform_0, window_bounds = array<i64: 1, 8, 256>}, {transform_indices = @transform_1, window_bounds = array<i64: 256, 256>}, {pipeline_mode = #tpu.pipeline_mode<synchronous>, transform_indices = @transform_2, window_bounds = array<i64: 1, 256>}, {transform_indices = @transform_3, window_bounds = array<i64: 8, 256>}, {pipeline_mode = #tpu.pipeline_mode<synchronous>, transform_indices = @transform_4, window_bounds = array<i64: 1, 256>}, {pipeline_mode = #tpu.pipeline_mode<synchronous>, transform_indices = @transform_5, window_bounds = array<i64: 1, 256>}, {transform_indices = @transform_6, window_bounds = array<i64: 1, 8, 256>}, {transform_indices = @transform_7, window_bounds = array<i64: 1, 8, 256>}]} {
    %c0_i32 = arith.constant 0 : i32
    %0 = arith.cmpi eq, %arg2, %c0_i32 : i32
    %1 = arith.extui %0 : i1 to i32
    %c0_i32_0 = arith.constant 0 : i32
    %2 = arith.cmpi ne, %1, %c0_i32_0 : i32
    scf.if %2 {
      %cst_11 = arith.constant 0.000000e+00 : f32
      %13 = vector.broadcast %cst_11 : f32 to vector<8x256xf32>
      %c0_12 = arith.constant 0 : index
      %c0_13 = arith.constant 0 : index
      %14 = vector.load %arg11[%c0_12, %c0_13] : memref<8x256xf32, #tpu.memory_space<vmem>>, vector<8x256xf32>
      tpu.vector_store %arg11[%c0_12, %c0_13], %13 {strides = array<i32>} : memref<8x256xf32, #tpu.memory_space<vmem>>, vector<8x256xf32>,
    } else {
    }
    %c0 = arith.constant 0 : index
    %c0_1 = arith.constant 0 : index
    %3 = vector.load %arg11[%c0, %c0_1] : memref<8x256xf32, #tpu.memory_space<vmem>>, vector<8x256xf32>
    %c0_2 = arith.constant 0 : index
    %c0_3 = arith.constant 0 : index
    %c0_4 = arith.constant 0 : index
    %4 = vector.load %arg3[%c0_2, %c0_3, %c0_4] : memref<1x8x256xbf16, #tpu.memory_space<vmem>>, vector<1x8x256xbf16>
    %5 = vector.shape_cast %4 : vector<1x8x256xbf16> to vector<8x256xbf16>
    %c0_5 = arith.constant 0 : index
    %c0_6 = arith.constant 0 : index
    %6 = vector.load %arg4[%c0_5, %c0_6] : memref<256x256xbf16, #tpu.memory_space<vmem>>, vector<256x256xbf16>
    %cst = arith.constant dense<0.000000e+00> : vector<8x256xf32>
    %7 = tpu.matmul %5, %6, %cst {dimension_numbers = #tpu.dot_dimension_numbers<[1], [0], [0], [1], [0, 0, 1, 1], [], []>} : vector<8x256xbf16>, vector<256x256xbf16>, vector<8x256xf32> -> vector<8x256xf32>
    %8 = arith.addf %3, %7 : vector<8x256xf32>
    %c0_7 = arith.constant 0 : index
    %c0_8 = arith.constant 0 : index
    %9 = vector.load %arg11[%c0_7, %c0_8] : memref<8x256xf32, #tpu.memory_space<vmem>>, vector<8x256xf32>
    tpu.vector_store %arg11[%c0_7, %c0_8], %8 {strides = array<i32>} : memref<8x256xf32, #tpu.memory_space<vmem>>, vector<8x256xf32>,
    %c0_i32_9 = arith.constant 0 : i32
    %10 = arith.cmpi eq, %arg2, %c0_i32_9 : i32
    %11 = arith.extui %10 : i1 to i32
    %c0_i32_10 = arith.constant 0 : i32
    %12 = arith.cmpi ne, %11, %c0_i32_10 : i32
    scf.if %12 {
      %c0_11 = arith.constant 0 : index
      %c0_12 = arith.constant 0 : index
      %13 = vector.load %arg11[%c0_11, %c0_12] : memref<8x256xf32, #tpu.memory_space<vmem>>, vector<8x256xf32>
      %c0_13 = arith.constant 0 : index
      %c0_14 = arith.constant 0 : index
      %14 = vector.load %arg5[%c0_13, %c0_14] : memref<1x256xf32, #tpu.memory_space<vmem>>, vector<1x256xf32>
      %15 = vector.broadcast %14 : vector<1x256xf32> to vector<8x256xf32>
      %16 = arith.addf %13, %15 : vector<8x256xf32>
      %c0_15 = arith.constant 0 : index
      %c0_16 = arith.constant 0 : index
      %17 = vector.load %arg6[%c0_15, %c0_16] : memref<8x256xf32, #tpu.memory_space<vmem>>, vector<8x256xf32>
      %18 = arith.addf %16, %17 : vector<8x256xf32>
      %19 = vector.shape_cast %18 : vector<8x256xf32> to vector<1x8x256xf32>
      %c0_17 = arith.constant 0 : index
      %c0_18 = arith.constant 0 : index
      %c0_19 = arith.constant 0 : index
      %20 = vector.load %arg9[%c0_17, %c0_18, %c0_19] : memref<1x8x256xf32, #tpu.memory_space<vmem>>, vector<1x8x256xf32>
      tpu.vector_store %arg9[%c0_17, %c0_18, %c0_19], %19 {strides = array<i32>} : memref<1x8x256xf32, #tpu.memory_space<vmem>>, vector<1x8x256xf32>,
      %cst_20 = arith.constant dense<0.000000e+00> : vector<8xf32>
      %21 = vector.multi_reduction <add>, %18, %cst_20 [1] : vector<8x256xf32> to vector<8xf32>
      %22 = vector.shape_cast %21 : vector<8xf32> to vector<8x1xf32>
      %cst_21 = arith.constant 2.560000e+02 : f32
      %23 = vector.broadcast %cst_21 : f32 to vector<8x1xf32>
      %24 = arith.divf %22, %23 : vector<8x1xf32>
      %25 = vector.broadcast %24 : vector<8x1xf32> to vector<8x256xf32>
      %26 = arith.subf %18, %25 : vector<8x256xf32>
      %27 = arith.mulf %26, %26 : vector<8x256xf32>
      %cst_22 = arith.constant dense<0.000000e+00> : vector<8xf32>
      %28 = vector.multi_reduction <add>, %27, %cst_22 [1] : vector<8x256xf32> to vector<8xf32>
      %29 = vector.shape_cast %28 : vector<8xf32> to vector<8x1xf32>
      %cst_23 = arith.constant 2.560000e+02 : f32
      %30 = vector.broadcast %cst_23 : f32 to vector<8x1xf32>
      %31 = arith.divf %29, %30 : vector<8x1xf32>
      %32 = vector.broadcast %24 : vector<8x1xf32> to vector<8x256xf32>
      %33 = arith.subf %18, %32 : vector<8x256xf32>
      %cst_24 = arith.constant 9.99999974E-6 : f32
      %34 = vector.broadcast %cst_24 : f32 to vector<8x1xf32>
      %35 = arith.addf %31, %34 : vector<8x1xf32>
      %36 = math.rsqrt %35 : vector<8x1xf32>
      %37 = vector.broadcast %36 : vector<8x1xf32> to vector<8x256xf32>
      %38 = arith.mulf %33, %37 : vector<8x256xf32>
      %c0_25 = arith.constant 0 : index
      %c0_26 = arith.constant 0 : index
      %39 = vector.load %arg7[%c0_25, %c0_26] : memref<1x256xf32, #tpu.memory_space<vmem>>, vector<1x256xf32>
      %40 = vector.broadcast %39 : vector<1x256xf32> to vector<8x256xf32>
      %41 = arith.mulf %38, %40 : vector<8x256xf32>
      %c0_27 = arith.constant 0 : index
      %c0_28 = arith.constant 0 : index
      %42 = vector.load %arg8[%c0_27, %c0_28] : memref<1x256xf32, #tpu.memory_space<vmem>>, vector<1x256xf32>
      %43 = vector.broadcast %42 : vector<1x256xf32> to vector<8x256xf32>
      %44 = arith.addf %41, %43 : vector<8x256xf32>
      %45 = arith.truncf %44 : vector<8x256xf32> to vector<8x256xbf16>
      %46 = vector.shape_cast %45 : vector<8x256xbf16> to vector<1x8x256xbf16>
      %c0_29 = arith.constant 0 : index
      %c0_30 = arith.constant 0 : index
      %c0_31 = arith.constant 0 : index
      %47 = vector.load %arg10[%c0_29, %c0_30, %c0_31] : memref<1x8x256xbf16, #tpu.memory_space<vmem>>, vector<1x8x256xbf16>
      tpu.vector_store %arg10[%c0_29, %c0_30, %c0_31], %46 {strides = array<i32>} : memref<1x8x256xbf16, #tpu.memory_space<vmem>>, vector<1x8x256xbf16>,
    } else {
    }
    return
  }
  func.func @transform_0(%arg0: i32, %arg1: i32, %arg2: i32) -> (i32, i32, i32) {
    %c0_i32 = arith.constant 0 : i32
    return %arg0, %arg1, %arg2 : i32, i32, i32
  }
  func.func @transform_1(%arg0: i32, %arg1: i32, %arg2: i32) -> (i32, i32) {
    %c0_i32 = arith.constant 0 : i32
    %c0_i32_0 = arith.constant 0 : i32
    return %arg2, %c0_i32 : i32, i32
  }
  func.func @transform_2(%arg0: i32, %arg1: i32, %arg2: i32) -> (i32, i32) {
    %c0_i32 = arith.constant 0 : i32
    %c0_i32_0 = arith.constant 0 : i32
    %c0_i32_1 = arith.constant 0 : i32
    return %c0_i32, %c0_i32_0 : i32, i32
  }
  func.func @transform_3(%arg0: i32, %arg1: i32, %arg2: i32) -> (i32, i32) {
    %c0_i32 = arith.constant 0 : i32
    return %arg1, %arg0 : i32, i32
  }
  func.func @transform_4(%arg0: i32, %arg1: i32, %arg2: i32) -> (i32, i32) {
    %c0_i32 = arith.constant 0 : i32
    %c0_i32_0 = arith.constant 0 : i32
    %c0_i32_1 = arith.constant 0 : i32
    return %c0_i32, %c0_i32_0 : i32, i32
  }
  func.func @transform_5(%arg0: i32, %arg1: i32, %arg2: i32) -> (i32, i32) {
    %c0_i32 = arith.constant 0 : i32
    %c0_i32_0 = arith.constant 0 : i32
    %c0_i32_1 = arith.constant 0 : i32
    return %c0_i32, %c0_i32_0 : i32, i32
  }
  func.func @transform_6(%arg0: i32, %arg1: i32, %arg2: i32) -> (i32, i32, i32) {
    %c0_i32 = arith.constant 0 : i32
    %c0_i32_0 = arith.constant 0 : i32
    return %arg0, %arg1, %c0_i32 : i32, i32, i32
  }
  func.func @transform_7(%arg0: i32, %arg1: i32, %arg2: i32) -> (i32, i32, i32) {
    %c0_i32 = arith.constant 0 : i32
    %c0_i32_0 = arith.constant 0 : i32
    return %arg0, %arg1, %c0_i32 : i32, i32, i32
  }
}

module attributes {stable_mosaic.version = 11 : i64} {
  func.func @_blc_linear_kernel(%arg0: i32, %arg1: i32, %arg2: i32, %arg3: i32, %arg4: memref<1x8x256xbf16, #tpu.memory_space<vmem>>, %arg5: memref<256x512xbf16, #tpu.memory_space<vmem>>, %arg6: memref<1x512xf32, #tpu.memory_space<vmem>>, %arg7: memref<1x8x512xbf16, #tpu.memory_space<vmem>>, %arg8: memref<8x512xf32, #tpu.memory_space<vmem>>) attributes {dimension_semantics = [#tpu.dimension_semantics<parallel>, #tpu.dimension_semantics<parallel>, #tpu.dimension_semantics<parallel>, #tpu.dimension_semantics<arbitrary>], iteration_bounds = array<i64: 2, 1, 2, 1>, scalar_prefetch = 0 : i64, scratch_operands = 1 : i64, tpu.core_type = #tpu.core_type<tc>, window_params = [{transform_indices = @transform_0, window_bounds = array<i64: 1, 8, 256>}, {transform_indices = @transform_1, window_bounds = array<i64: 256, 512>}, {transform_indices = @transform_2, window_bounds = array<i64: 1, 512>}, {transform_indices = @transform_3, window_bounds = array<i64: 1, 8, 512>}]} {
    %c0_i32 = arith.constant 0 : i32
    %0 = arith.cmpi eq, %arg3, %c0_i32 : i32
    %1 = arith.extui %0 : i1 to i32
    %c0_i32_0 = arith.constant 0 : i32
    %2 = arith.cmpi ne, %1, %c0_i32_0 : i32
    scf.if %2 {
      %cst_11 = arith.constant 0.000000e+00 : f32
      %13 = vector.broadcast %cst_11 : f32 to vector<8x512xf32>
      %c0_12 = arith.constant 0 : index
      %c0_13 = arith.constant 0 : index
      %14 = vector.load %arg8[%c0_12, %c0_13] : memref<8x512xf32, #tpu.memory_space<vmem>>, vector<8x512xf32>
      tpu.vector_store %arg8[%c0_12, %c0_13], %13 {strides = array<i32>} : memref<8x512xf32, #tpu.memory_space<vmem>>, vector<8x512xf32>,
    } else {
    }
    %c0 = arith.constant 0 : index
    %c0_1 = arith.constant 0 : index
    %3 = vector.load %arg8[%c0, %c0_1] : memref<8x512xf32, #tpu.memory_space<vmem>>, vector<8x512xf32>
    %c0_2 = arith.constant 0 : index
    %c0_3 = arith.constant 0 : index
    %c0_4 = arith.constant 0 : index
    %4 = vector.load %arg4[%c0_2, %c0_3, %c0_4] : memref<1x8x256xbf16, #tpu.memory_space<vmem>>, vector<1x8x256xbf16>
    %5 = vector.shape_cast %4 : vector<1x8x256xbf16> to vector<8x256xbf16>
    %c0_5 = arith.constant 0 : index
    %c0_6 = arith.constant 0 : index
    %6 = vector.load %arg5[%c0_5, %c0_6] : memref<256x512xbf16, #tpu.memory_space<vmem>>, vector<256x512xbf16>
    %cst = arith.constant dense<0.000000e+00> : vector<8x512xf32>
    %7 = tpu.matmul %5, %6, %cst {dimension_numbers = #tpu.dot_dimension_numbers<[1], [0], [0], [1], [0, 0, 1, 1], [], []>} : vector<8x256xbf16>, vector<256x512xbf16>, vector<8x512xf32> -> vector<8x512xf32>
    %8 = arith.addf %3, %7 : vector<8x512xf32>
    %c0_7 = arith.constant 0 : index
    %c0_8 = arith.constant 0 : index
    %9 = vector.load %arg8[%c0_7, %c0_8] : memref<8x512xf32, #tpu.memory_space<vmem>>, vector<8x512xf32>
    tpu.vector_store %arg8[%c0_7, %c0_8], %8 {strides = array<i32>} : memref<8x512xf32, #tpu.memory_space<vmem>>, vector<8x512xf32>,
    %c0_i32_9 = arith.constant 0 : i32
    %10 = arith.cmpi eq, %arg3, %c0_i32_9 : i32
    %11 = arith.extui %10 : i1 to i32
    %c0_i32_10 = arith.constant 0 : i32
    %12 = arith.cmpi ne, %11, %c0_i32_10 : i32
    scf.if %12 {
      %c0_11 = arith.constant 0 : index
      %c0_12 = arith.constant 0 : index
      %13 = vector.load %arg8[%c0_11, %c0_12] : memref<8x512xf32, #tpu.memory_space<vmem>>, vector<8x512xf32>
      %c0_13 = arith.constant 0 : index
      %c0_14 = arith.constant 0 : index
      %14 = vector.load %arg6[%c0_13, %c0_14] : memref<1x512xf32, #tpu.memory_space<vmem>>, vector<1x512xf32>
      %15 = vector.broadcast %14 : vector<1x512xf32> to vector<8x512xf32>
      %16 = arith.addf %13, %15 : vector<8x512xf32>
      %cst_15 = arith.constant 1.702000e+00 : f32
      %17 = vector.broadcast %cst_15 : f32 to vector<8x512xf32>
      %18 = arith.mulf %17, %16 : vector<8x512xf32>
      %19 = arith.negf %18 : vector<8x512xf32>
      %20 = math.exp %19 : vector<8x512xf32>
      %cst_16 = arith.constant 1.000000e+00 : f32
      %21 = vector.broadcast %cst_16 : f32 to vector<8x512xf32>
      %22 = arith.addf %21, %20 : vector<8x512xf32>
      %23 = arith.divf %21, %22 : vector<8x512xf32>
      %24 = arith.mulf %16, %23 : vector<8x512xf32>
      %25 = arith.truncf %24 : vector<8x512xf32> to vector<8x512xbf16>
      %26 = vector.shape_cast %25 : vector<8x512xbf16> to vector<1x8x512xbf16>
      %c0_17 = arith.constant 0 : index
      %c0_18 = arith.constant 0 : index
      %c0_19 = arith.constant 0 : index
      %27 = vector.load %arg7[%c0_17, %c0_18, %c0_19] : memref<1x8x512xbf16, #tpu.memory_space<vmem>>, vector<1x8x512xbf16>
      tpu.vector_store %arg7[%c0_17, %c0_18, %c0_19], %26 {strides = array<i32>} : memref<1x8x512xbf16, #tpu.memory_space<vmem>>, vector<1x8x512xbf16>,
    } else {
    }
    return
  }
  func.func @transform_0(%arg0: i32, %arg1: i32, %arg2: i32, %arg3: i32) -> (i32, i32, i32) {
    %c0_i32 = arith.constant 0 : i32
    return %arg0, %arg1, %arg3 : i32, i32, i32
  }
  func.func @transform_1(%arg0: i32, %arg1: i32, %arg2: i32, %arg3: i32) -> (i32, i32) {
    %c0_i32 = arith.constant 0 : i32
    return %arg3, %arg2 : i32, i32
  }
  func.func @transform_2(%arg0: i32, %arg1: i32, %arg2: i32, %arg3: i32) -> (i32, i32) {
    %c0_i32 = arith.constant 0 : i32
    %c0_i32_0 = arith.constant 0 : i32
    return %c0_i32, %arg2 : i32, i32
  }
  func.func @transform_3(%arg0: i32, %arg1: i32, %arg2: i32, %arg3: i32) -> (i32, i32, i32) {
    %c0_i32 = arith.constant 0 : i32
    return %arg0, %arg1, %arg2 : i32, i32, i32
  }
}

module attributes {stable_mosaic.version = 11 : i64} {
  func.func @_blc_linear_kernel(%arg0: i32, %arg1: i32, %arg2: i32, %arg3: i32, %arg4: memref<1x8x512xbf16, #tpu.memory_space<vmem>>, %arg5: memref<512x256xbf16, #tpu.memory_space<vmem>>, %arg6: memref<1x256xf32, #tpu.memory_space<vmem>>, %arg7: memref<1x8x256xf32, #tpu.memory_space<vmem>>, %arg8: memref<8x256xf32, #tpu.memory_space<vmem>>, %arg9: memref<8x256xf32, #tpu.memory_space<vmem>>) attributes {dimension_semantics = [#tpu.dimension_semantics<parallel>, #tpu.dimension_semantics<parallel>, #tpu.dimension_semantics<parallel>, #tpu.dimension_semantics<arbitrary>], iteration_bounds = array<i64: 2, 1, 1, 2>, scalar_prefetch = 0 : i64, scratch_operands = 1 : i64, tpu.core_type = #tpu.core_type<tc>, window_params = [{transform_indices = @transform_0, window_bounds = array<i64: 1, 8, 512>}, {transform_indices = @transform_1, window_bounds = array<i64: 512, 256>}, {transform_indices = @transform_2, window_bounds = array<i64: 1, 256>}, {transform_indices = @transform_3, window_bounds = array<i64: 1, 8, 256>}, {transform_indices = @transform_4, window_bounds = array<i64: 8, 256>}]} {
    %c0_i32 = arith.constant 0 : i32
    %0 = arith.cmpi eq, %arg3, %c0_i32 : i32
    %1 = arith.extui %0 : i1 to i32
    %c0_i32_0 = arith.constant 0 : i32
    %2 = arith.cmpi ne, %1, %c0_i32_0 : i32
    scf.if %2 {
      %cst_10 = arith.constant 0.000000e+00 : f32
      %13 = vector.broadcast %cst_10 : f32 to vector<8x256xf32>
      %c0_11 = arith.constant 0 : index
      %c0_12 = arith.constant 0 : index
      %14 = vector.load %arg9[%c0_11, %c0_12] : memref<8x256xf32, #tpu.memory_space<vmem>>, vector<8x256xf32>
      tpu.vector_store %arg9[%c0_11, %c0_12], %13 {strides = array<i32>} : memref<8x256xf32, #tpu.memory_space<vmem>>, vector<8x256xf32>,
    } else {
    }
    %c0 = arith.constant 0 : index
    %c0_1 = arith.constant 0 : index
    %3 = vector.load %arg9[%c0, %c0_1] : memref<8x256xf32, #tpu.memory_space<vmem>>, vector<8x256xf32>
    %c0_2 = arith.constant 0 : index
    %c0_3 = arith.constant 0 : index
    %c0_4 = arith.constant 0 : index
    %4 = vector.load %arg4[%c0_2, %c0_3, %c0_4] : memref<1x8x512xbf16, #tpu.memory_space<vmem>>, vector<1x8x512xbf16>
    %5 = vector.shape_cast %4 : vector<1x8x512xbf16> to vector<8x512xbf16>
    %c0_5 = arith.constant 0 : index
    %c0_6 = arith.constant 0 : index
    %6 = vector.load %arg5[%c0_5, %c0_6] : memref<512x256xbf16, #tpu.memory_space<vmem>>, vector<512x256xbf16>
    %cst = arith.constant dense<0.000000e+00> : vector<8x256xf32>
    %7 = tpu.matmul %5, %6, %cst {dimension_numbers = #tpu.dot_dimension_numbers<[1], [0], [0], [1], [0, 0, 1, 1], [], []>} : vector<8x512xbf16>, vector<512x256xbf16>, vector<8x256xf32> -> vector<8x256xf32>
    %8 = arith.addf %3, %7 : vector<8x256xf32>
    %c0_7 = arith.constant 0 : index
    %c0_8 = arith.constant 0 : index
    %9 = vector.load %arg9[%c0_7, %c0_8] : memref<8x256xf32, #tpu.memory_space<vmem>>, vector<8x256xf32>
    tpu.vector_store %arg9[%c0_7, %c0_8], %8 {strides = array<i32>} : memref<8x256xf32, #tpu.memory_space<vmem>>, vector<8x256xf32>,
    %c1_i32 = arith.constant 1 : i32
    %10 = arith.cmpi eq, %arg3, %c1_i32 : i32
    %11 = arith.extui %10 : i1 to i32
    %c0_i32_9 = arith.constant 0 : i32
    %12 = arith.cmpi ne, %11, %c0_i32_9 : i32
    scf.if %12 {
      %c0_10 = arith.constant 0 : index
      %c0_11 = arith.constant 0 : index
      %13 = vector.load %arg9[%c0_10, %c0_11] : memref<8x256xf32, #tpu.memory_space<vmem>>, vector<8x256xf32>
      %c0_12 = arith.constant 0 : index
      %c0_13 = arith.constant 0 : index
      %14 = vector.load %arg6[%c0_12, %c0_13] : memref<1x256xf32, #tpu.memory_space<vmem>>, vector<1x256xf32>
      %15 = vector.broadcast %14 : vector<1x256xf32> to vector<8x256xf32>
      %16 = arith.addf %13, %15 : vector<8x256xf32>
      %c0_14 = arith.constant 0 : index
      %c0_15 = arith.constant 0 : index
      %c0_16 = arith.constant 0 : index
      %17 = vector.load %arg7[%c0_14, %c0_15, %c0_16] : memref<1x8x256xf32, #tpu.memory_space<vmem>>, vector<1x8x256xf32>
      %18 = vector.shape_cast %17 : vector<1x8x256xf32> to vector<8x256xf32>
      %19 = arith.addf %16, %18 : vector<8x256xf32>
      %c0_17 = arith.constant 0 : index
      %c0_18 = arith.constant 0 : index
      %20 = vector.load %arg8[%c0_17, %c0_18] : memref<8x256xf32, #tpu.memory_space<vmem>>, vector<8x256xf32>
      tpu.vector_store %arg8[%c0_17, %c0_18], %19 {strides = array<i32>} : memref<8x256xf32, #tpu.memory_space<vmem>>, vector<8x256xf32>,
    } else {
    }
    return
  }
  func.func @transform_0(%arg0: i32, %arg1: i32, %arg2: i32, %arg3: i32) -> (i32, i32, i32) {
    %c0_i32 = arith.constant 0 : i32
    return %arg0, %arg1, %arg3 : i32, i32, i32
  }
  func.func @transform_1(%arg0: i32, %arg1: i32, %arg2: i32, %arg3: i32) -> (i32, i32) {
    %c0_i32 = arith.constant 0 : i32
    return %arg3, %arg2 : i32, i32
  }
  func.func @transform_2(%arg0: i32, %arg1: i32, %arg2: i32, %arg3: i32) -> (i32, i32) {
    %c0_i32 = arith.constant 0 : i32
    %c0_i32_0 = arith.constant 0 : i32
    return %c0_i32, %arg2 : i32, i32
  }
  func.func @transform_3(%arg0: i32, %arg1: i32, %arg2: i32, %arg3: i32) -> (i32, i32, i32) {
    %c0_i32 = arith.constant 0 : i32
    return %arg0, %arg1, %arg2 : i32, i32, i32
  }
  func.func @transform_4(%arg0: i32, %arg1: i32, %arg2: i32, %arg3: i32) -> (i32, i32) {
    %c0_i32 = arith.constant 0 : i32
    return %arg1, %arg0 : i32, i32
  }
}

</mosaic_0001>

<bundles_post_ra>
// kernel: vision_block_forward.6
= control target key start
LH: loop header
LB: loop body
LE: loop exit
PB: predicated region body
PF: predicated region fallthrough
CT: control target
= control target key end

     0   :  { %s802_s12 = smov 0   ;;  %s804_s13 = smov 0   ;;  %s883_s0 = inlined_call_operand.vmem [shape: bf16[2,8,768], index: 0, kind: input, shape index: {}, may-alias: {0,1,2}]   ;;  %s884_s1 = inlined_call_operand.vmem [shape: bf16[2,8,768], index: 1, kind: input, shape index: {}, may-alias: {0,1,2}]   ;;  %s885_s2 = inlined_call_operand.vmem [shape: bf16[2,8,768], index: 2, kind: input, shape index: {}, may-alias: {0,1,2}]   ;;  %s886_s3 = inlined_call_operand.vmem [shape: bf16[2,8,256], index: 3, kind: output, shape index: {}]  }
   0x1   :  { %s806_s14 = smov 0   ;;  %s808_s15 = smov 0  }
   0x2   :  { %s810_s16 = smov 0  }
   0x3 LB: > { %s35_s17 = sadd.s32 1, %s768_s14  ;;  %s39_s18 = sadd.s32 1, %s772_s15  ;;  %s776_s16 = sphi %s810_s16, %s13_s16   ;;  %s772_s15 = sphi %s808_s15, %s890_s15   ;;  %s768_s14 = sphi %s806_s14, %s889_s14   ;;  %s764_s13 = sphi %s804_s13, %s888_s13   ;;  %s760_s12 = sphi %s802_s12, %s887_s12  }
   0x4   : > { %p37_p0 = scmp.ge.s32.totalorder %s35_s17, 2  ;;  %p660_p1 = scmp.ge.s32.totalorder %s776_s16, 1 }
   0x5   : > { %p228_p2 = scmp.lt.s32.totalorder %s776_s16, 5 }
   0x6   : > { %s892_s17 = smov (%p37_p0, %s35_s17), 0  ;;  %s894_s18 = smov (!%p37_p0, %s39_s18), %s772_s15 }
   0x7   : > { %p229_p3 = pnand %p660_p1, %p228_p2  ;;  %p41_p4 = scmp.ge.s32.totalorder %s894_s18, 2 }
   0x8   : > { %p292_p5 = scmp.lt.s32.totalorder (!%p229_p3), %s764_s13, 1  ;;  %s304_s19 = sadd.s32 (!%p229_p3), 2, %s760_s12  ;;  %v778_v0 = vmov (!%p229_p3), 0.0   ;;  %vm779_vm0 = vmmov (!%p229_p3), 0   ;;  %vm349_vm1 = vcmask (!%p229_p3), 7168   ;;  %v780_v3 = vmov (!%p229_p3), -inf  }
   0x9   : > { %s896_s18 = smov (%p41_p4, %s894_s18), 0  ;;  %232 = sbr.rel (%p229_p3) target bundleno = 829 (0x33d), region = 32 }
   0xa   : > { %673 = vmatprep.subr.bf16.mxu0 (!%p229_p3), %v778_v0  ;;  %p309_p6 = scmp.lt.s32.totalorder (!%p229_p3), %s304_s19, 5  ;;  %675 = vmatprep.mubr.msk.bf16.mxu0 (!%p229_p3), %vm779_vm0, %v778_v0  ;;  %p296_p7 = scmp.lt.s32.totalorder (!%p229_p3), %s760_s12, 5  ;;  %350 = vst.msk [vmem:[#allocation2] sm:$0xff] (!%p229_p3), %vm349_vm1, %v780_v3  ;;  %351 = vst.msk [vmem:[#allocation3] sm:$0xff] (!%p229_p3), %vm349_vm1, %v778_v0  ;;  %vm398_vm2 = vcmask (!%p229_p3), 64512   ;;  %v781_v10 = vmov (!%p229_p3), 0  }
   0xb   : > { %679 = vmatprep.subr.bf16.mxu1 (!%p229_p3), %v778_v0  ;;  %681 = vmatprep.mubr.msk.bf16.mxu1 (!%p229_p3), %vm779_vm0, %v778_v0  ;;  %s318_s5 = sadd.s32 (!%p229_p3), 4, %s760_s12  ;;  %vm433_vm3 = vcmask (!%p229_p3), 1043456   ;;  %p336_p9 = scmp.lt.s32.totalorder (!%p229_p3), %s760_s12, 1 }
   0xc   : > { %730 = vset.pattern.permute.xlu0 (!%p229_p3), %v781_v10  ;;  %731 = vset.pattern.permute.xlu1 (!%p229_p3), %v781_v10  ;;  %p323_p8 = scmp.lt.s32.totalorder (!%p229_p3), %s318_s5, 5 }
  0x10   : > { %s898_s13 = smov (!%p292_p5, %s764_s13), 1  ;;  %s900_s19 = smov (!%p309_p6, %s304_s19), 5 }
  0x11   : > { %s839_s20 = smul.u32 6, %s898_s13  ;;  %v397_v11 = vld [vmem:[#allocation2] sm:$0xff]  ;;  %s902_s5 = smov (!%p323_p8, %s318_s5), 5  ;;  %v414_v25 = vld [vmem:[#allocation3] sm:$0xff] }
  0x12   : > { %s297_s21 = scalar_select %p296_p7, %s760_s12, 5 }
  0x13   : > { %s314_s22 = sadd.s32 %s839_s20, %s900_s19  ;;  %s328_s6 = sadd.s32 %s839_s20, %s902_s5 }
  0x14   : > { %s662_s23 = sshll.u32 %s314_s22, 2  ;;  %s301_s24 = sadd.s32 %s839_s20, %s297_s21 }
  0x15   : > { %s316_s27 = scalar_lea.vmem %s884_s1, %s662_s23  ;;  %s661_s28 = sshll.u32 %s301_s24, 2 }
  0x16   : > { %v354_v1 = vld [vmem:[%s316_s27] sm:$0xf]  ;;  %s303_s4 = scalar_lea.vmem %s883_s0, %s661_s28  ;;  %s663_s7 = sshll.u32 %s328_s6, 2 }
  0x17   : > { %674 = vmatpush3.bf16.xpose.msra.mxu0 %v354_v1  ;;  %v353_v2 = vld [vmem:[%s303_s4] sm:$0xf]  ;;  %s330_s10 = scalar_lea.vmem %s885_s2, %s663_s7  ;;  %s904_s12 = smov (!%p336_p9, %s760_s12), 1 }
  0x18   : > { %v355_v15 = vld [vmem:[%s330_s10] sm:$0xf]  ;;  %s664_s11 = sshll.u32 %s898_s13, 1 }
  0x19   : > { %v435_v16 = vsel %vm433_vm3, %v355_v15, 0  ;;  %s341_s19 = sadd.s32 %s664_s11, %s904_s12 }
  0x1a   : > { %680 = vmatpush3.bf16.msra.mxu1 %v435_v16  ;;  %s665_s20 = sshll.u32 %s341_s19, 2 }
  0x1b   : > { %s343_s23 = scalar_lea.vmem %s886_s3, %s665_s20 }
  0x1e   : > { %676 = vmatmul.mubr.bf16.vlgmr.msra.gmra.mrb[0].mxu0 %v353_v2 }
  0xf1   : > { %v390_v4 = vpop.f32.mrb[0].mxu0 }
  0xf2   : > { %v396_v5 = vmul.f32 0.088388346, %v390_v4  ;;  %v677_v6 = vpop.f32.mrb[1].mxu0 }
  0xf3   : > { %v393_v7 = vpop.f32.mrb[2].mxu0 }
  0xf4   : > { %v678_v8 = vpop.f32.mrb[3].mxu0  ;;  %v399_v9 = vsel %vm398_vm2, %v396_v5, -inf }
  0xf5   : > { %400 = vmax.xlane.f32.xlu0 %v399_v9 }
 0x182   : > { %v401_v12 = vpop.xlane.xlu0 %400 }
 0x183   : > { %v402_v13 = vmax.f32 %v397_v11, %v401_v12 }
 0x185   : > { %v403_v14 = vsub.f32 %v397_v11, %v402_v13  ;;  %479 = vst.msk [vmem:[#allocation2] sm:$0xff] %vm349_vm1, %v402_v13  ;;  %408 = vperm.xlu0 %730, %v402_v13  }
 0x187   : > { %v404_v23 = vmul.f32 1.442695, %v403_v14 }
 0x204   : > { %v409_v17 = vpop.permute.xlu0 %408 }
 0x205   : > { %v411_v18 = vsub.f32 %v396_v5, %v409_v17 }
 0x207   : > { %v412_v19 = vmul.f32 1.442695, %v411_v18 }
 0x209   : > { %732 = vpow2.f32 %v412_v19 }
 0x20a   : > { %734 = vpow2.f32 %v404_v23 }
 0x213   : > { %v733_v20 = vpop.eup %732 }
 0x214   : > { %v416_v21 = vsel %vm398_vm2, %v733_v20, 0.0  ;;  %v429_v22 = vpack.c.bf16 %v733_v20, %v733_v20  ;;  %v735_v24 = vpop.eup %734 }
 0x215   : > { %417 = vadd.xlane.f32.xlu1 %v416_v21  ;;  %v415_v26 = vmul.f32 %v735_v24, %v414_v25 }
 0x216   : > { %682 = vmatmul.mubr.msk.bf16.vlgmr.msra.gmra.mrb[0].mxu1 %vm398_vm2, %v429_v22 }
 0x226   : > { %425 = vperm.xlu1 %731, %v735_v24  }
 0x2a2   : > { %v418_v27 = vpop.xlane.xlu1 %417 }
 0x2a3   : > { %v419_v28 = vadd.f32 %v418_v27, %v415_v26 }
 0x2a5   : > { %421 = vst.msk [vmem:[#allocation3] sm:$0xff] %vm349_vm1, %v419_v28 }
 0x2a6   : > { %v426_v35 = vpop.permute.xlu1 %425 }
 0x2a7   : > { %v428_v36 = vmul.f32 0.0, %v426_v35 }
 0x2ac   : > { %v483_v29 = vld [vmem:[#allocation3] sm:$0xff] }
 0x2ad   : > { %736 = vrcp.f32 %v483_v29 }
 0x2b7   : > { %v737_v30 = vpop.eup %736 }
 0x2b8   : > { %488 = vperm.xlu1 %731, %v737_v30  }
 0x2e9   : > { %v471_v31 = vpop.f32.mrb[0].mxu1 }
 0x2ea   : > { %v683_v32 = vpop.f32.mrb[1].mxu1  ;;  %v477_v37 = vadd.f32 %v471_v31, %v428_v36 }
 0x2eb   : > { %v474_v33 = vpop.f32.mrb[2].mxu1 }
 0x2ec   : > { %v684_v34 = vpop.f32.mrb[3].mxu1 }
 0x337   : > { %v489_v38 = vpop.permute.xlu1 %488 }
 0x338   : > { %v491_v39 = vmul.f32 %v489_v38, %v477_v37 }
 0x33a   : > { %v492_v40 = vpack.c.bf16 %v491_v39, %v491_v39 }
 0x33c   : > { %493 = vst [vmem:[%s343_s23] sm:$0xf] %v492_v40 }
 0x33d PF: > { %s13_s16 = sadd.s32 1, %s776_s16   ;;  %s887_s12 = smov %s768_s14 }
 0x33e   : > { %p10_p10 = scmp.ge.s32.totalorder %s13_s16, 6   ;;  %s888_s13 = smov %s772_s15 }
 0x33f   : > { %s889_s14 = smov %s892_s17  ;;  %s890_s15 = smov %s896_s18 }
 0x340   :  { %12 = sbr.rel (!%p10_p10) target bundleno = 3 (0x3), region = 76 }

// kernel: vision_block_forward.5
= control target key start
LH: loop header
LB: loop body
LE: loop exit
PB: predicated region body
PF: predicated region fallthrough
CT: control target
= control target key end

     0   :  { %10 = vsyncpa [#allocation3], 0  ;;  %s1886_s0 = inlined_call_operand.vmem [shape: f32[8,512], index: 0, kind: input, shape index: {}]   ;;  %s1887_s1 = inlined_call_operand.hbm [shape: f32[1,256], index: 1, kind: input, shape index: {}]   ;;  %s1888_s2 = inlined_call_operand.hbm [shape: f32[1,256], index: 2, kind: input, shape index: {}]   ;;  %s1889_s3 = inlined_call_operand.hbm [shape: bf16[256,768], index: 3, kind: input, shape index: {}]   ;;  %s1890_s4 = inlined_call_operand.vmem [shape: f32[1,768], index: 4, kind: input, shape index: {}]   ;;  %s1891_s5 = inlined_call_operand.vmem [shape: bf16[2,8,768], index: 5, kind: output, shape index: {}]  }
   0x1   :  { %11 = vsyncpa [#allocation5], 0  ;;  %s1704_s18 = smov 0   ;;  %s1706_s19 = smov 0  }
   0x2   :  { %s1708_s20 = smov 0  }
   0x3 LB: > { %s1669_s21 = smov [#allocation4]   ;;  %s1231_s23 = sadd.s32 4294967295, %s1667_s20   ;;  %s1667_s20 = sphi %s1708_s20, %s17_s20   ;;  %s1663_s19 = sphi %s1706_s19, %s1904_s19   ;;  %s1659_s18 = sphi %s1704_s18, %s1903_s18  }
   0x4   : > { %s198_s22 = sshll.u32 %s1669_s21, 4  ;;  %p1233_p0 = scmp.ge.s32.totalorder %s1667_s20, 1  ;;  %s199_s22 = int_to_ptr.vmem [resolvable:$true] %s198_s22 }
   0x5   : > { %p174_p1 = scmp.lt.s32.totalorder %s1667_s20, 3  ;;  %p1722_p2 = scmp.eq.s32.totalorder %s1231_s23, 0 }
   0x6   : > { %s29_s26 = sadd.s32 1, %s1663_s19  ;;  %s1670_s29 = smov [#allocation2]  }
   0x7   : > { %s1895_s24 = scalar_select %p1722_p2, 1, 0 }
   0x8   : > { %p1726_p3 = pnand %p1233_p0, %p174_p1  ;;  %p1739_p6 = scmp.ge.s32.totalorder %s29_s26, 2 }
   0x9   : > { %s187_s30 = sshll.u32 %s1670_s29, 4  ;;  %s1553_s8 = scalar_lea.hbm %s1888_s2, 32  ;;  %s1743_s30 = int_to_ptr.vmem [resolvable:$true] %s187_s30 }
   0xa   : > { %s1896_s25 = scalar_select %p1726_p3, 1, 0 }
   0xb   : > { %p1362_p4 = pneg %p1726_p3  ;;  %p1554_p7 = scmp.ne.s32.totalorder %s1888_s2, %s1553_s8 }
   0xc   : > { %s1898_s28 = scalar_select %p1739_p6, 1, 0 }
   0xd   : > { %p1735_p5 = pnand %p1722_p2, %p1362_p4  ;;  %p1560_p11 = scmp.lt.u32.totalorder %s1553_s8, %s1888_s2 }
   0xf   : > { %p1753_p8 = pneg %p1735_p5 }
  0x11   : > { %p1556_p9 = pnand %p1753_p8, %p1554_p7 }
  0x13   : > { %p1557_p10 = pneg %p1556_p9 }
  0x15   : > { %p1562_p12 = pnand %p1560_p11, %p1557_p10 }
  0x17   : > { %1565 = shalt.err (!%p1562_p12)
}
  0x18   : > { %s1566_s14 = scalar_lea.vmem %s199_s22, 32  ;;  %p1574_p4 = scmp.lt.s32.totalorder %s199_s22, %s199_s22 }
  0x19   : > { %p1567_p13 = scmp.ne.s32.totalorder %s199_s22, %s1566_s14  ;;  %p1575_p2 = scmp.lt.s32.totalorder %s1566_s14, %s1566_s14 }
  0x1b   : > { %p1569_p0 = pnand %p1567_p13, %p1753_p8  ;;  %p1576_p3 = por %p1575_p2, %p1574_p4 }
  0x1d   : > { %p1570_p1 = pneg %p1569_p0 }
  0x1f   : > { %p1577_p6 = pnand %p1576_p3, %p1570_p1 }
  0x21   : > { %1580 = shalt.err (!%p1577_p6)
}
  0x22   : > { %1368 = dma.hbm_to_vmem [thread:$0]  (!%p1735_p5), %s1888_s2, 32, %s199_s22, [#allocation5]  }
  0x23   : > { %p1900_p7 = scmp.ne.s32.totalorder %s1898_s28, 0  ;;  %s1581_s23 = scalar_lea.hbm %s1887_s1, 32 }
  0x24   : > { %p1582_p2 = scmp.ne.s32.totalorder %s1887_s1, %s1581_s23  ;;  %p1588_p9 = scmp.lt.u32.totalorder %s1581_s23, %s1887_s1 }
  0x25   : > { %s1906_s26 = smov (%p1900_p7, %s29_s26), 0 }
  0x26   : > { %p1584_p3 = pnand %p1582_p2, %p1753_p8 }
  0x28   : > { %p1585_p6 = pneg %p1584_p3 }
  0x2a   : > { %p1590_p10 = pnand %p1588_p9, %p1585_p6 }
  0x2c   : > { %1593 = shalt.err (!%p1590_p10)
}
  0x2d   : > { %s1594_s22 = scalar_lea.vmem %s1743_s30, 32  ;;  %p1602_p0 = scmp.lt.s32.totalorder %s1743_s30, %s1743_s30 }
  0x2e   : > { %p1595_p11 = scmp.ne.s32.totalorder %s1743_s30, %s1594_s22  ;;  %p1603_p1 = scmp.lt.s32.totalorder %s1594_s22, %s1594_s22 }
  0x30   : > { %p1597_p12 = pnand %p1595_p11, %p1753_p8  ;;  %p1604_p4 = por %p1603_p1, %p1602_p0 }
  0x32   : > { %p1598_p13 = pneg %p1597_p12 }
  0x34   : > { %p1605_p7 = pnand %p1604_p4, %p1598_p13 }
  0x36   : > { %1608 = shalt.err (!%p1605_p7)
}
  0x37   : > { %1365 = dma.hbm_to_vmem [thread:$0]  (!%p1735_p5), %s1887_s1, 32, %s1743_s30, [#allocation3]  }
  0x38   : > { %s1671_s10 = smov [#allocation6]   ;;  %s1609_s15 = scalar_lea.hbm %s1889_s3, 12288 }
  0x39   : > { %s208_s12 = sshll.u32 %s1671_s10, 4  ;;  %p1610_p2 = scmp.ne.s32.totalorder %s1889_s3, %s1609_s15  ;;  %s209_s12 = int_to_ptr.vmem [resolvable:$true] %s208_s12 }
  0x3a   : > { %p1616_p9 = scmp.lt.u32.totalorder %s1609_s15, %s1889_s3 }
  0x3b   : > { %p1612_p3 = pnand %p1610_p2, %p1753_p8 }
  0x3d   : > { %p1613_p6 = pneg %p1612_p3 }
  0x3f   : > { %p1618_p10 = pnand %p1616_p9, %p1613_p6 }
  0x41   : > { %1621 = shalt.err (!%p1618_p10)
}
  0x42   : > { %s1622_s30 = scalar_lea.vmem %s209_s12, 12288  ;;  %p1630_p0 = scmp.lt.s32.totalorder %s209_s12, %s209_s12 }
  0x43   : > { %p1623_p11 = scmp.ne.s32.totalorder %s209_s12, %s1622_s30  ;;  %p1631_p1 = scmp.lt.s32.totalorder %s1622_s30, %s1622_s30 }
  0x45   : > { %p1625_p12 = pnand %p1623_p11, %p1753_p8  ;;  %p1632_p4 = por %p1631_p1, %p1630_p0 }
  0x47   : > { %p1626_p13 = pneg %p1625_p12 }
  0x49   : > { %p1633_p7 = pnand %p1632_p4, %p1626_p13 }
  0x4b   : > { %1636 = shalt.err (!%p1633_p7)
}
  0x4c   : > { %s1672_s29 = smov 384   ;;  %s1673_s6 = smov 24  }
  0x4d   : > { %1371 = dma.hbm_to_vmem [thread:$0]  (!%p1735_p5), %s1889_s3, 12288, %s209_s12, [#allocation5], %s1672_s29, %s1672_s29, %s1673_s6  }
  0x4e   : > { %p1901_p2 = scmp.ne.s32.totalorder %s1896_s25, 0 }
  0x4f   : > { %p1902_p3 = scmp.ne.s32.totalorder (!%p1901_p2), %s1895_s24, 0 }
  0x50   : > { %240 = sbr.rel (%p1901_p2) target bundleno = 697 (0x2b9), region = 40 }
  0x57   : > { %1650 = dma.done.wait (%p1902_p3), [#allocation3], 32  }
  0x58   : > { %1652 = vsyncadd (%p1902_p3), [#allocation3], 4294967264 }
  0x59   : > { %1654 = dma.done.wait (%p1902_p3), [#allocation5], 12320  }
  0x5a   : > { %1656 = vsyncadd (%p1902_p3), [#allocation5], 4294954976  ;;  %s1242_s27 = sshll.u32 %s1659_s18, 1  ;;  %v1407_v3 = vld [vmem:[#allocation6 + $0x4] ss:$24 sps:$4 sm:$0xff]   ;;  %p294_p5 = scmp.lt.s32.totalorder %s1659_s18, 1 }
  0x5b   : > { %p287_p8 = scmp.lt.s32.totalorder %s1242_s27, 3  ;;  %v1409_v4 = vld [vmem:[#allocation6] ss:$24 sps:$4 sm:$0xff]   ;;  %v1410_v5 = vld [vmem:[#allocation6 + $0xc] ss:$24 sps:$4 sm:$0xff]   ;;  %960 = vmatprep.subr.bf16.mxu0 %v1407_v3 }
  0x5c   : > { %v1412_v6 = vld [vmem:[#allocation6 + $0x8] ss:$24 sps:$4 sm:$0xff]   ;;  %v1413_v7 = vld [vmem:[#allocation6 + $0x34] ss:$24 sps:$4 sm:$0xff]   ;;  %1001 = vmatprep.subr.bf16.mxu1 %v1410_v5  ;;  %961 = vmatpush1.bf16.msra.mxu0 %v1409_v4  ;;  %v1418_v10 = vld [vmem:[#allocation6 + $0x38] ss:$24 sps:$4 sm:$0xff]  }
  0x5d   : > { %s1908_s27 = smov (!%p287_p8, %s1242_s27), 3  ;;  %v1416_v8 = vld [vmem:[#allocation6 + $0x3c] ss:$24 sps:$4 sm:$0xff]   ;;  %1002 = vmatpush1.bf16.msra.mxu1 %v1412_v6  ;;  %v1415_v9 = vld [vmem:[#allocation6 + $0x30] ss:$24 sps:$4 sm:$0xff]   ;;  %962 = vmatprep.subr.bf16.mxu0 %v1413_v7  ;;  %s1910_s18 = smov (!%p294_p5, %s1659_s18), 1 }
  0x5e   : > { %s1243_s11 = sshll.u32 %s1908_s27, 3  ;;  %1003 = vmatprep.subr.bf16.mxu1 %v1416_v8  ;;  %v1419_v11 = vld [vmem:[#allocation6 + $0x64] ss:$24 sps:$4 sm:$0xff]   ;;  %v1421_v13 = vld [vmem:[#allocation6 + $0x60] ss:$24 sps:$4 sm:$0xff]   ;;  %s1349_s10 = smul.u32 24, %s1910_s18 }
  0x5f   : > { %s292_s28 = scalar_lea.vmem %s1886_s0, %s1243_s11  ;;  %v1422_v12 = vld [vmem:[#allocation6 + $0x6c] ss:$24 sps:$4 sm:$0xff]   ;;  %v1424_v14 = vld [vmem:[#allocation6 + $0x68] ss:$24 sps:$4 sm:$0xff]   ;;  %v1428_v16 = vld [vmem:[#allocation6 + $0x9c] ss:$24 sps:$4 sm:$0xff]  }
  0x60   : > { %v1828_v0 = vld [vmem:[%s292_s28] sm:$0xff]  ;;  %v1830_v1 = vld [vmem:[%s292_s28 + $0x8] sm:$0xff]  ;;  %963 = vmatpush1.bf16.msra.mxu0 %v1415_v9  ;;  %v1425_v15 = vld [vmem:[#allocation6 + $0x94] ss:$24 sps:$4 sm:$0xff]   ;;  %s302_s14 = scalar_lea.vmem %s1891_s5, %s1349_s10 }
  0x61   : > { %v305_v2 = vadd.f32 %v1830_v1, %v1828_v0  ;;  %1004 = vmatpush1.bf16.msra.mxu1 %v1418_v10  ;;  %964 = vmatprep.subr.bf16.mxu0 %v1419_v11  ;;  %v1427_v17 = vld [vmem:[#allocation6 + $0x90] ss:$24 sps:$4 sm:$0xff]   ;;  %v1431_v19 = vld [vmem:[#allocation6 + $0xc4] ss:$24 sps:$4 sm:$0xff]   ;;  %v1433_v21 = vld [vmem:[#allocation6 + $0xc0] ss:$24 sps:$4 sm:$0xff]  }
  0x62   : > { %1005 = vmatprep.subr.bf16.mxu1 %v1422_v12  ;;  %v1430_v18 = vld [vmem:[#allocation6 + $0x98] ss:$24 sps:$4 sm:$0xff]   ;;  %v1434_v20 = vld [vmem:[#allocation6 + $0xcc] ss:$24 sps:$4 sm:$0xff]   ;;  %v1436_v22 = vld [vmem:[#allocation6 + $0xc8] ss:$24 sps:$4 sm:$0xff]  }
  0x63   : > { %306 = vadd.xlane.f32.xlu0 %v305_v2  ;;  %v1437_v23 = vld [vmem:[#allocation6 + $0xf4] ss:$24 sps:$4 sm:$0xff]   ;;  %v1439_v25 = vld [vmem:[#allocation6 + $0xf0] ss:$24 sps:$4 sm:$0xff]   ;;  %v1443_v27 = vld [vmem:[#allocation6 + $0x124] ss:$24 sps:$4 sm:$0xff]  }
  0x64   : > { %965 = vmatpush1.bf16.msra.mxu0 %v1421_v13  ;;  %v1440_v24 = vld [vmem:[#allocation6 + $0xfc] ss:$24 sps:$4 sm:$0xff]   ;;  %v1442_v26 = vld [vmem:[#allocation6 + $0xf8] ss:$24 sps:$4 sm:$0xff]   ;;  %v1446_v28 = vld [vmem:[#allocation6 + $0x12c] ss:$24 sps:$4 sm:$0xff]   ;;  %v324_v13 = vlaneseq }
  0x65   : > { %1006 = vmatpush1.bf16.msra.mxu1 %v1424_v14  ;;  %966 = vmatprep.subr.bf16.mxu0 %v1425_v15  ;;  %v1445_v29 = vld [vmem:[#allocation6 + $0x120] ss:$24 sps:$4 sm:$0xff]   ;;  %v1449_v31 = vld [vmem:[#allocation6 + $0x154] ss:$24 sps:$4 sm:$0xff]   ;;  %v1451_v33 = vld [vmem:[#allocation6 + $0x150] ss:$24 sps:$4 sm:$0xff]  }
  0x66   : > { %1007 = vmatprep.subr.bf16.mxu1 %v1428_v16  ;;  %v1448_v30 = vld [vmem:[#allocation6 + $0x128] ss:$24 sps:$4 sm:$0xff]   ;;  %v1452_v32 = vld [vmem:[#allocation6 + $0x15c] ss:$24 sps:$4 sm:$0xff]   ;;  %v1454_v34 = vld [vmem:[#allocation6 + $0x158] ss:$24 sps:$4 sm:$0xff]  }
  0x67   : > { %v1455_v35 = vld [vmem:[#allocation6 + $0x184] ss:$24 sps:$4 sm:$0xff]   ;;  %v1457_v37 = vld [vmem:[#allocation6 + $0x180] ss:$24 sps:$4 sm:$0xff]   ;;  %v1461_v39 = vld [vmem:[#allocation6 + $0x1b4] ss:$24 sps:$4 sm:$0xff]  }
  0x68   : > { %967 = vmatpush1.bf16.msra.mxu0 %v1427_v17  ;;  %v1458_v36 = vld [vmem:[#allocation6 + $0x18c] ss:$24 sps:$4 sm:$0xff]   ;;  %v1460_v38 = vld [vmem:[#allocation6 + $0x188] ss:$24 sps:$4 sm:$0xff]   ;;  %v1464_v40 = vld [vmem:[#allocation6 + $0x1bc] ss:$24 sps:$4 sm:$0xff]  }
  0x69   : > { %1008 = vmatpush1.bf16.msra.mxu1 %v1430_v18  ;;  %968 = vmatprep.subr.bf16.mxu0 %v1431_v19  ;;  %v1463_v41 = vld [vmem:[#allocation6 + $0x1b0] ss:$24 sps:$4 sm:$0xff]   ;;  %v1467_v43 = vld [vmem:[#allocation6 + $0x1e4] ss:$24 sps:$4 sm:$0xff]   ;;  %v1469_v51 = vld [vmem:[#allocation6 + $0x1e0] ss:$24 sps:$4 sm:$0xff]  }
  0x6a   : > { %1009 = vmatprep.subr.bf16.mxu1 %v1434_v20  ;;  %v1466_v42 = vld [vmem:[#allocation6 + $0x1b8] ss:$24 sps:$4 sm:$0xff]   ;;  %v1470_v52 = vld [vmem:[#allocation6 + $0x1ec] ss:$24 sps:$4 sm:$0xff]   ;;  %v1472_v53 = vld [vmem:[#allocation6 + $0x1e8] ss:$24 sps:$4 sm:$0xff]  }
  0x6b   : > { %v1473_v54 = vld [vmem:[#allocation6 + $0x214] ss:$24 sps:$4 sm:$0xff]   ;;  %v1475_v55 = vld [vmem:[#allocation6 + $0x210] ss:$24 sps:$4 sm:$0xff]   ;;  %v1479_v58 = vld [vmem:[#allocation6 + $0x244] ss:$24 sps:$4 sm:$0xff]  }
  0x6c   : > { %969 = vmatpush1.bf16.msra.mxu0 %v1433_v21  ;;  %v1476_v56 = vld [vmem:[#allocation6 + $0x21c] ss:$24 sps:$4 sm:$0xff]   ;;  %v1478_v57 = vld [vmem:[#allocation6 + $0x218] ss:$24 sps:$4 sm:$0xff]   ;;  %v1482_v60 = vld [vmem:[#allocation6 + $0x24c] ss:$24 sps:$4 sm:$0xff]  }
  0x6d   : > { %1010 = vmatpush1.bf16.msra.mxu1 %v1436_v22  ;;  %970 = vmatprep.subr.bf16.mxu0 %v1437_v23  ;;  %v1481_v59 = vld [vmem:[#allocation6 + $0x240] ss:$24 sps:$4 sm:$0xff]   ;;  %v1485_v62 = vld [vmem:[#allocation6 + $0x274] ss:$24 sps:$4 sm:$0xff]   ;;  %v1491_v2 = vld [vmem:[#allocation6 + $0x2a4] ss:$24 sps:$4 sm:$0xff]  }
  0x6e   : > { %1011 = vmatprep.subr.bf16.mxu1 %v1440_v24  ;;  %v1484_v61 = vld [vmem:[#allocation6 + $0x248] ss:$24 sps:$4 sm:$0xff]   ;;  %v1488_v63 = vld [vmem:[#allocation6 + $0x27c] ss:$24 sps:$4 sm:$0xff]   ;;  %v1494_v3 = vld [vmem:[#allocation6 + $0x2ac] ss:$24 sps:$4 sm:$0xff]  }
  0x6f   : > { %v1493_v4 = vld [vmem:[#allocation6 + $0x2a0] ss:$24 sps:$4 sm:$0xff]   ;;  %v1497_v6 = vld [vmem:[#allocation6 + $0x2d4] ss:$24 sps:$4 sm:$0xff]   ;;  %v1499_v8 = vld [vmem:[#allocation6 + $0x2d0] ss:$24 sps:$4 sm:$0xff]  }
  0x70   : > { %971 = vmatpush1.bf16.msra.mxu0 %v1439_v25  ;;  %v1496_v5 = vld [vmem:[#allocation6 + $0x2a8] ss:$24 sps:$4 sm:$0xff]   ;;  %v1500_v7 = vld [vmem:[#allocation6 + $0x2dc] ss:$24 sps:$4 sm:$0xff]   ;;  %v1502_v9 = vld [vmem:[#allocation6 + $0x2d8] ss:$24 sps:$4 sm:$0xff]  }
  0x71   : > { %1012 = vmatpush1.bf16.msra.mxu1 %v1442_v26  ;;  %972 = vmatprep.subr.bf16.mxu0 %v1443_v27  ;;  %v1505_v10 = vld [vmem:[#allocation6 + $0x14] ss:$24 sps:$4 sm:$0xff]   ;;  %v1844_v15 = vshrl.u32 %v324_v13, 7  ;;  %v322_v18 = vld [vmem:[#allocation2] sm:$0x3] }
  0x72   : > { %1013 = vmatprep.subr.bf16.mxu1 %v1446_v28  ;;  %v336_v19 = vld [vmem:[#allocation4] sm:$0x3] }
  0x73   : > { %v1847_v16 = vsub.s32 1, %v1844_v15  ;;  %v1850_v17 = vsub.s32 0, %v1844_v15 }
  0x74   : > { %973 = vmatpush1.bf16.msra.mxu0 %v1445_v29 }
  0x75   : > { %1014 = vmatpush1.bf16.msra.mxu1 %v1448_v30  ;;  %974 = vmatprep.subr.bf16.mxu0 %v1449_v31  ;;  %v331_v20 = vrot.slane %v322_v18, %v1847_v16  ;;  %v327_v21 = vrot.slane %v322_v18, %v1850_v17  ;;  %v345_v24 = vrot.slane %v336_v19, %v1847_v16 }
  0x76   : > { %1015 = vmatprep.subr.bf16.mxu1 %v1452_v32  ;;  %v341_v26 = vrot.slane %v336_v19, %v1850_v17  ;;  %v1503_v32 = vld [vmem:[#allocation6 + $0x10] ss:$24 sps:$4 sm:$0xff]  }
  0x78   : > { %975 = vmatpush1.bf16.msra.mxu0 %v1451_v33 }
  0x79   : > { %1016 = vmatpush1.bf16.msra.mxu1 %v1454_v34  ;;  %976 = vmatprep.subr.bf16.mxu0 %v1455_v35  ;;  %v1508_v34 = vld [vmem:[#allocation6 + $0x44] ss:$24 sps:$4 sm:$0xff]   ;;  %v1506_v35 = vld [vmem:[#allocation6 + $0x40] ss:$24 sps:$4 sm:$0xff]  }
  0x7a   : > { %1017 = vmatprep.subr.bf16.mxu1 %v1458_v36  ;;  %v1511_v36 = vld [vmem:[#allocation6 + $0x74] ss:$24 sps:$4 sm:$0xff]  }
  0x7c   : > { %977 = vmatpush1.bf16.msra.mxu0 %v1457_v37  ;;  %v1509_v37 = vld [vmem:[#allocation6 + $0x70] ss:$24 sps:$4 sm:$0xff]  }
  0x7d   : > { %1018 = vmatpush1.bf16.msra.mxu1 %v1460_v38  ;;  %978 = vmatprep.subr.bf16.mxu0 %v1461_v39  ;;  %v1514_v38 = vld [vmem:[#allocation6 + $0xa4] ss:$24 sps:$4 sm:$0xff]   ;;  %v1512_v39 = vld [vmem:[#allocation6 + $0xa0] ss:$24 sps:$4 sm:$0xff]  }
  0x7e   : > { %1019 = vmatprep.subr.bf16.mxu1 %v1464_v40  ;;  %v1517_v40 = vld [vmem:[#allocation6 + $0xd4] ss:$24 sps:$4 sm:$0xff]  }
  0x80   : > { %979 = vmatpush1.bf16.msra.mxu0 %v1463_v41  ;;  %v1515_v41 = vld [vmem:[#allocation6 + $0xd0] ss:$24 sps:$4 sm:$0xff]  }
  0x81   : > { %1020 = vmatpush1.bf16.msra.mxu1 %v1466_v42  ;;  %980 = vmatprep.subr.bf16.mxu0 %v1467_v43  ;;  %v1520_v42 = vld [vmem:[#allocation6 + $0x104] ss:$24 sps:$4 sm:$0xff]   ;;  %v1518_v43 = vld [vmem:[#allocation6 + $0x100] ss:$24 sps:$4 sm:$0xff]  }
  0x82   : > { %1021 = vmatprep.subr.bf16.mxu1 %v1470_v52  ;;  %v1535_v52 = vld [vmem:[#allocation6 + $0x1f4] ss:$24 sps:$4 sm:$0xff]  }
  0x84   : > { %981 = vmatpush1.bf16.msra.mxu0 %v1469_v51  ;;  %v1530_v51 = vld [vmem:[#allocation6 + $0x1c0] ss:$24 sps:$4 sm:$0xff]  }
  0x85   : > { %1022 = vmatpush1.bf16.msra.mxu1 %v1472_v53  ;;  %982 = vmatprep.subr.bf16.mxu0 %v1473_v54  ;;  %v1533_v53 = vld [vmem:[#allocation6 + $0x1f0] ss:$24 sps:$4 sm:$0xff]   ;;  %v1538_v54 = vld [vmem:[#allocation6 + $0x224] ss:$24 sps:$4 sm:$0xff]  }
  0x86   : > { %1023 = vmatprep.subr.bf16.mxu1 %v1476_v56  ;;  %v1541_v56 = vld [vmem:[#allocation6 + $0x254] ss:$24 sps:$4 sm:$0xff]  }
  0x88   : > { %983 = vmatpush1.bf16.msra.mxu0 %v1475_v55  ;;  %v1536_v55 = vld [vmem:[#allocation6 + $0x220] ss:$24 sps:$4 sm:$0xff]  }
  0x89   : > { %1024 = vmatpush1.bf16.msra.mxu1 %v1478_v57  ;;  %984 = vmatprep.subr.bf16.mxu0 %v1479_v58  ;;  %v1539_v57 = vld [vmem:[#allocation6 + $0x250] ss:$24 sps:$4 sm:$0xff]   ;;  %v1544_v58 = vld [vmem:[#allocation6 + $0x284] ss:$24 sps:$4 sm:$0xff]  }
  0x8a   : > { %1025 = vmatprep.subr.bf16.mxu1 %v1482_v60  ;;  %v1547_v60 = vld [vmem:[#allocation6 + $0x2b4] ss:$24 sps:$4 sm:$0xff]  }
  0x8c   : > { %985 = vmatpush1.bf16.msra.mxu0 %v1481_v59  ;;  %v1542_v59 = vld [vmem:[#allocation6 + $0x280] ss:$24 sps:$4 sm:$0xff]  }
  0x8d   : > { %1026 = vmatpush1.bf16.msra.mxu1 %v1484_v61  ;;  %986 = vmatprep.subr.bf16.mxu0 %v1485_v62  ;;  %v1545_v61 = vld [vmem:[#allocation6 + $0x2b0] ss:$24 sps:$4 sm:$0xff]   ;;  %v1550_v62 = vld [vmem:[#allocation6 + $0x2e4] ss:$24 sps:$4 sm:$0xff]  }
  0x8e   : > { %1027 = vmatprep.subr.bf16.mxu1 %v1488_v63  ;;  %v1548_v63 = vld [vmem:[#allocation6 + $0x2e0] ss:$24 sps:$4 sm:$0xff]  }
  0xf0   : > { %v307_v44 = vpop.xlane.xlu0 %306 }
  0xf1   : > { %v309_v45 = vmul.f32 0.00390625, %v307_v44  ;;  %v1523_v44 = vld [vmem:[#allocation6 + $0x134] ss:$24 sps:$4 sm:$0xff]  }
  0xf3   : > { %v1835_v46 = vsub.f32 %v1828_v0, %v309_v45  ;;  %v1838_v47 = vsub.f32 %v1830_v1, %v309_v45  ;;  %v1487_v0 = vld [vmem:[#allocation6 + $0x270] ss:$24 sps:$4 sm:$0xff]  }
  0xf4   : > { %v1490_v1 = vld [vmem:[#allocation6 + $0x278] ss:$24 sps:$4 sm:$0xff]   ;;  %987 = vmatpush1.bf16.msra.mxu0 %v1487_v0  ;;  %v460_v0 = vsub.s32 2, %v1844_v15 }
  0xf5   : > { %v312_v48 = vmul.f32 %v1835_v46, %v1835_v46  ;;  %v313_v49 = vmul.f32 %v1838_v47, %v1838_v47  ;;  %1028 = vmatpush1.bf16.msra.mxu1 %v1490_v1  ;;  %988 = vmatprep.subr.bf16.mxu0 %v1491_v2  ;;  %v1521_v45 = vld [vmem:[#allocation6 + $0x130] ss:$24 sps:$4 sm:$0xff]   ;;  %v448_v1 = vld [vmem:[%s1890_s4] sm:$0x3f]  ;;  %v464_v2 = vsub.s32 3, %v1844_v15 }
  0xf6   : > { %1029 = vmatprep.subr.bf16.mxu1 %v1494_v3  ;;  %v453_v3 = vrot.slane %v448_v1, %v1850_v17 }
  0xf7   : > { %v314_v50 = vadd.f32 %v313_v49, %v312_v48  ;;  %v1529_v48 = vld [vmem:[#allocation6 + $0x194] ss:$24 sps:$4 sm:$0xff]   ;;  %v1527_v49 = vld [vmem:[#allocation6 + $0x190] ss:$24 sps:$4 sm:$0xff]  }
  0xf8   : > { %989 = vmatpush1.bf16.msra.mxu0 %v1493_v4  ;;  %v461_v4 = vrot.slane %v448_v1, %v460_v0 }
  0xf9   : > { %315 = vadd.xlane.f32.xlu0 %v314_v50  ;;  %1030 = vmatpush1.bf16.msra.mxu1 %v1496_v5  ;;  %v1532_v50 = vld [vmem:[#allocation6 + $0x1c4] ss:$24 sps:$4 sm:$0xff]   ;;  %v457_v5 = vrot.slane %v448_v1, %v1847_v16 }
  0xfa   : > { %990 = vmatprep.subr.bf16.mxu0 %v1497_v6  ;;  %1031 = vmatprep.subr.bf16.mxu1 %v1500_v7  ;;  %v465_v6 = vrot.slane %v448_v1, %v464_v2 }
  0xfc   : > { %991 = vmatpush1.bf16.msra.mxu0 %v1499_v8 }
  0xfd   : > { %1032 = vmatpush1.bf16.msra.mxu1 %v1502_v9  ;;  %1042 = vmatprep.subr.bf16.mxu0 %v1505_v10 }
 0x186   : > { %v316_v11 = vpop.xlane.xlu0 %315 }
 0x187   : > { %v317_v12 = vmul.f32 0.00390625, %v316_v11 }
 0x189   : > { %v318_v14 = vadd.f32 1e-05, %v317_v12 }
 0x18b   : > { %1551 = vrsqrt.f32 %v318_v14 }
 0x195   : > { %v1552_v22 = vpop.eup %1551 }
 0x196   : > { %v321_v23 = vmul.f32 %v1552_v22, %v1838_v47  ;;  %v320_v25 = vmul.f32 %v1552_v22, %v1835_v46  ;;  %v1526_v46 = vld [vmem:[#allocation6 + $0x164] ss:$24 sps:$4 sm:$0xff]   ;;  %v1524_v47 = vld [vmem:[#allocation6 + $0x160] ss:$24 sps:$4 sm:$0xff]   ;;  %v468_v22 = vsub.s32 4, %v1844_v15 }
 0x198   : > { %v335_v27 = vmul.f32 %v331_v20, %v321_v23  ;;  %v334_v28 = vmul.f32 %v327_v21, %v320_v25  ;;  %v472_v23 = vsub.s32 5, %v1844_v15 }
 0x19a   : > { %v349_v29 = vadd.f32 %v345_v24, %v335_v27  ;;  %v348_v30 = vadd.f32 %v341_v26, %v334_v28  ;;  %v469_v24 = vrot.slane %v448_v1, %v468_v22  ;;  %v473_v25 = vrot.slane %v448_v1, %v472_v23 }
 0x19c   : > { %v351_v31 = vpack.c.bf16 %v349_v29, %v349_v29  ;;  %v1858_v33 = vpack.c.bf16 %v348_v30, %v348_v30 }
 0x19e   : > { %992 = vmatprep.mubr.bf16.mxu0 %v351_v31  ;;  %1033 = vmatprep.mubr.bf16.mxu1 %v351_v31 }
 0x19f   : > { %993 = vmatmul.mubr.bf16.vlgmr.msra.gmra.mrb[0].mxu0 %v1858_v33  ;;  %1034 = vmatmul.mubr.bf16.vlgmr.msra.gmra.mrb[0].mxu1 %v1858_v33 }
 0x1a0   : > { %1043 = vmatpush1.bf16.msra.mxu0 %v1503_v32  ;;  %1074 = vmatprep.mubr.bf16.mxu0 %v351_v31 }
 0x1a1   : > { %1044 = vmatprep.subr.bf16.mxu0 %v1508_v34 }
 0x1a4   : > { %1045 = vmatpush1.bf16.msra.mxu0 %v1506_v35 }
 0x1a5   : > { %1046 = vmatprep.subr.bf16.mxu0 %v1511_v36 }
 0x1a8   : > { %1047 = vmatpush1.bf16.msra.mxu0 %v1509_v37 }
 0x1a9   : > { %1048 = vmatprep.subr.bf16.mxu0 %v1514_v38 }
 0x1ac   : > { %1049 = vmatpush1.bf16.msra.mxu0 %v1512_v39 }
 0x1ad   : > { %1050 = vmatprep.subr.bf16.mxu0 %v1517_v40 }
 0x1b0   : > { %1051 = vmatpush1.bf16.msra.mxu0 %v1515_v41 }
 0x1b1   : > { %1052 = vmatprep.subr.bf16.mxu0 %v1520_v42 }
 0x1b4   : > { %1053 = vmatpush1.bf16.msra.mxu0 %v1518_v43 }
 0x1b5   : > { %1054 = vmatprep.subr.bf16.mxu0 %v1523_v44 }
 0x1b8   : > { %1055 = vmatpush1.bf16.msra.mxu0 %v1521_v45 }
 0x1b9   : > { %1056 = vmatprep.subr.bf16.mxu0 %v1526_v46 }
 0x1bc   : > { %1057 = vmatpush1.bf16.msra.mxu0 %v1524_v47 }
 0x1bd   : > { %1058 = vmatprep.subr.bf16.mxu0 %v1529_v48 }
 0x1c0   : > { %1059 = vmatpush1.bf16.msra.mxu0 %v1527_v49 }
 0x1c1   : > { %1060 = vmatprep.subr.bf16.mxu0 %v1532_v50 }
 0x1c4   : > { %1061 = vmatpush1.bf16.msra.mxu0 %v1530_v51 }
 0x1c5   : > { %1062 = vmatprep.subr.bf16.mxu0 %v1535_v52 }
 0x1c8   : > { %1063 = vmatpush1.bf16.msra.mxu0 %v1533_v53 }
 0x1c9   : > { %1064 = vmatprep.subr.bf16.mxu0 %v1538_v54 }
 0x1cc   : > { %1065 = vmatpush1.bf16.msra.mxu0 %v1536_v55 }
 0x1cd   : > { %1066 = vmatprep.subr.bf16.mxu0 %v1541_v56 }
 0x1d0   : > { %1067 = vmatpush1.bf16.msra.mxu0 %v1539_v57 }
 0x1d1   : > { %1068 = vmatprep.subr.bf16.mxu0 %v1544_v58 }
 0x1d4   : > { %1069 = vmatpush1.bf16.msra.mxu0 %v1542_v59 }
 0x1d5   : > { %1070 = vmatprep.subr.bf16.mxu0 %v1547_v60 }
 0x1d8   : > { %1071 = vmatpush1.bf16.msra.mxu0 %v1545_v61 }
 0x1d9   : > { %1072 = vmatprep.subr.bf16.mxu0 %v1550_v62 }
 0x1dc   : > { %1073 = vmatpush1.bf16.msra.mxu0 %v1548_v63 }
 0x1df   : > { %1075 = vmatmul.mubr.bf16.vlgmr.msra.gmra.mrb[4].mxu0 %v1858_v33 }
 0x272   : > { %v994_v7 = vpop.f32.mrb[0].mxu0  ;;  %v1035_v8 = vpop.f32.mrb[0].mxu1 }
 0x273   : > { %v995_v9 = vadd.f32 %v994_v7, %v453_v3  ;;  %v1036_v10 = vadd.f32 %v1035_v8, %v461_v4  ;;  %v996_v11 = vpop.f32.mrb[1].mxu0  ;;  %v1037_v12 = vpop.f32.mrb[1].mxu1 }
 0x274   : > { %v997_v13 = vadd.f32 %v996_v11, %v457_v5  ;;  %v1038_v14 = vadd.f32 %v1037_v12, %v465_v6  ;;  %v998_v18 = vpop.f32.mrb[2].mxu0  ;;  %v1039_v19 = vpop.f32.mrb[2].mxu1 }
 0x275   : > { %v999_v17 = vpop.f32.mrb[3].mxu0  ;;  %v1040_v20 = vpop.f32.mrb[3].mxu1 }
 0x276   : > { %v1346_v21 = vpack.c.bf16 %v997_v13, %v995_v9  ;;  %v1347_v16 = vpack.c.bf16 %v1038_v14, %v1036_v10 }
 0x278   : > { %1107 = vst [vmem:[%s302_s14] sm:$0xff] %v1346_v21  ;;  %1108 = vst [vmem:[%s302_s14 + $0x8] sm:$0xff] %v1347_v16 }
 0x2b2   : > { %v1076_v26 = vpop.f32.mrb[4].mxu0 }
 0x2b3   : > { %v1077_v27 = vadd.f32 %v1076_v26, %v469_v24  ;;  %v1078_v28 = vpop.f32.mrb[5].mxu0 }
 0x2b4   : > { %v1079_v29 = vadd.f32 %v1078_v28, %v473_v25  ;;  %v1080_v30 = vpop.f32.mrb[6].mxu0 }
 0x2b5   : > { %v1081_v31 = vpop.f32.mrb[7].mxu0 }
 0x2b6   : > { %v1348_v32 = vpack.c.bf16 %v1079_v29, %v1077_v27 }
 0x2b8   : > { %1109 = vst [vmem:[%s302_s14 + $0x10] sm:$0xff] %v1348_v32 }
 0x2b9 PF: > { %s17_s20 = sadd.s32 1, %s1667_s20   ;;  %s1903_s18 = smov %s1663_s19 }
 0x2ba   : > { %p14_p6 = scmp.ge.s32.totalorder %s17_s20, 4   ;;  %s1904_s19 = smov %s1906_s26 }
 0x2bc   :  { %16 = sbr.rel (!%p14_p6) target bundleno = 3 (0x3), region = 83 }
 0x2c3   :  { %1139 = vsyncpa [#allocation3], 1 }
 0x2c4   :  { %1141 = vsyncpa [#allocation3 + $0x1], 1 }
 0x2c5   :  { %1142 = vsyncpa [#allocation5], 1 }

// kernel: vision_block_forward.7
= control target key start
LH: loop header
LB: loop body
LE: loop exit
PB: predicated region body
PF: predicated region fallthrough
CT: control target
= control target key end

     0   :  { %13 = vsyncpa [#allocation4], 0  ;;  %s1583_s0 = inlined_call_operand.vmem [shape: bf16[2,8,256], index: 0, kind: input, shape index: {}]   ;;  %s1584_s1 = inlined_call_operand.vmem [shape: bf16[256,256], index: 1, kind: input, shape index: {}]   ;;  %s1585_s2 = inlined_call_operand.hbm [shape: f32[1,256], index: 2, kind: input, shape index: {}]   ;;  %s1586_s3 = inlined_call_operand.vmem [shape: f32[8,512], index: 3, kind: input, shape index: {}]   ;;  %s1587_s4 = inlined_call_operand.hbm [shape: f32[1,256], index: 4, kind: input, shape index: {}]   ;;  %s1588_s5 = inlined_call_operand.hbm [shape: f32[1,256], index: 5, kind: input, shape index: {}]   ;;  %s1589_s6 = inlined_call_operand.vmem [shape: f32[2,8,256], index: 6, kind: output, shape index: {0}]   ;;  %s1590_s7 = inlined_call_operand.vmem [shape: bf16[2,8,256], index: 7, kind: output, shape index: {1}]  }
   0x1   :  { %14 = vsyncpa [#allocation6], 0  ;;  %s1335_s24 = smov 0   ;;  %s1337_s25 = smov 0  }
   0x2   :  { %s1339_s26 = smov 0  }
   0x3 LB: > { %s1292_s27 = smov [#allocation5]   ;;  %s1008_s29 = sadd.s32 4294967295, %s1290_s26   ;;  %s1290_s26 = sphi %s1339_s26, %s20_s26   ;;  %s1286_s25 = sphi %s1337_s25, %s1603_s25   ;;  %s1282_s24 = sphi %s1335_s24, %s1602_s24  }
   0x4   : > { %s281_s28 = sshll.u32 %s1292_s27, 4  ;;  %p1010_p0 = scmp.ge.s32.totalorder %s1290_s26, 1  ;;  %s282_s28 = int_to_ptr.vmem [resolvable:$true] %s281_s28 }
   0x5   : > { %p247_p1 = scmp.lt.s32.totalorder %s1290_s26, 3  ;;  %p1353_p2 = scmp.eq.s32.totalorder %s1008_s29, 0 }
   0x6   : > { %s39_s9 = sadd.s32 1, %s1286_s25  ;;  %s1293_s12 = smov [#allocation3]  }
   0x7   : > { %s1594_s30 = scalar_select %p1353_p2, 1, 0 }
   0x8   : > { %p1357_p3 = pnand %p1010_p0, %p247_p1  ;;  %p1370_p6 = scmp.ge.s32.totalorder %s39_s9, 2 }
   0x9   : > { %s270_s13 = sshll.u32 %s1293_s12, 4  ;;  %s1176_s16 = scalar_lea.hbm %s1587_s4, 32  ;;  %s1374_s13 = int_to_ptr.vmem [resolvable:$true] %s270_s13 }
   0xa   : > { %s1595_s8 = scalar_select %p1357_p3, 1, 0 }
   0xb   : > { %p1081_p4 = pneg %p1357_p3  ;;  %p1177_p7 = scmp.ne.s32.totalorder %s1587_s4, %s1176_s16 }
   0xc   : > { %s1597_s11 = scalar_select %p1370_p6, 1, 0 }
   0xd   : > { %p1366_p5 = pnand %p1353_p2, %p1081_p4  ;;  %p1183_p11 = scmp.lt.u32.totalorder %s1176_s16, %s1587_s4 }
   0xf   : > { %p1384_p8 = pneg %p1366_p5 }
  0x11   : > { %p1179_p9 = pnand %p1384_p8, %p1177_p7 }
  0x13   : > { %p1180_p10 = pneg %p1179_p9 }
  0x15   : > { %p1185_p12 = pnand %p1183_p11, %p1180_p10 }
  0x17   : > { %1188 = shalt.err (!%p1185_p12)
}
  0x18   : > { %s1189_s22 = scalar_lea.vmem %s282_s28, 32  ;;  %p1197_p4 = scmp.lt.s32.totalorder %s282_s28, %s282_s28 }
  0x19   : > { %p1190_p13 = scmp.ne.s32.totalorder %s282_s28, %s1189_s22  ;;  %p1198_p2 = scmp.lt.s32.totalorder %s1189_s22, %s1189_s22 }
  0x1b   : > { %p1192_p0 = pnand %p1190_p13, %p1384_p8  ;;  %p1199_p3 = por %p1198_p2, %p1197_p4 }
  0x1d   : > { %p1193_p1 = pneg %p1192_p0 }
  0x1f   : > { %p1200_p6 = pnand %p1199_p3, %p1193_p1 }
  0x21   : > { %1203 = shalt.err (!%p1200_p6)
}
  0x22   : > { %1087 = dma.hbm_to_vmem [thread:$0]  (!%p1366_p5), %s1587_s4, 32, %s282_s28, [#allocation6]  }
  0x23   : > { %p1599_p7 = scmp.ne.s32.totalorder %s1597_s11, 0  ;;  %s1204_s14 = scalar_lea.hbm %s1585_s2, 32 }
  0x24   : > { %p1205_p2 = scmp.ne.s32.totalorder %s1585_s2, %s1204_s14  ;;  %p1211_p9 = scmp.lt.u32.totalorder %s1204_s14, %s1585_s2 }
  0x25   : > { %s1605_s9 = smov (%p1599_p7, %s39_s9), 0 }
  0x26   : > { %p1207_p3 = pnand %p1205_p2, %p1384_p8 }
  0x28   : > { %p1208_p6 = pneg %p1207_p3 }
  0x2a   : > { %p1213_p10 = pnand %p1211_p9, %p1208_p6 }
  0x2c   : > { %1216 = shalt.err (!%p1213_p10)
}
  0x2d   : > { %s1217_s28 = scalar_lea.vmem %s1374_s13, 32  ;;  %p1225_p0 = scmp.lt.s32.totalorder %s1374_s13, %s1374_s13 }
  0x2e   : > { %p1218_p11 = scmp.ne.s32.totalorder %s1374_s13, %s1217_s28  ;;  %p1226_p1 = scmp.lt.s32.totalorder %s1217_s28, %s1217_s28 }
  0x30   : > { %p1220_p12 = pnand %p1218_p11, %p1384_p8  ;;  %p1227_p4 = por %p1226_p1, %p1225_p0 }
  0x32   : > { %p1221_p13 = pneg %p1220_p12 }
  0x34   : > { %p1228_p7 = pnand %p1227_p4, %p1221_p13 }
  0x36   : > { %1231 = shalt.err (!%p1228_p7)
}
  0x37   : > { %1084 = dma.hbm_to_vmem [thread:$0]  (!%p1366_p5), %s1585_s2, 32, %s1374_s13, [#allocation4]  }
  0x38   : > { %s1294_s21 = smov [#allocation7]   ;;  %s1232_s29 = scalar_lea.hbm %s1588_s5, 32 }
  0x39   : > { %s292_s22 = sshll.u32 %s1294_s21, 4  ;;  %p1233_p2 = scmp.ne.s32.totalorder %s1588_s5, %s1232_s29  ;;  %s293_s22 = int_to_ptr.vmem [resolvable:$true] %s292_s22 }
  0x3a   : > { %p1239_p9 = scmp.lt.u32.totalorder %s1232_s29, %s1588_s5 }
  0x3b   : > { %p1235_p3 = pnand %p1233_p2, %p1384_p8 }
  0x3d   : > { %p1236_p6 = pneg %p1235_p3 }
  0x3f   : > { %p1241_p10 = pnand %p1239_p9, %p1236_p6 }
  0x41   : > { %1244 = shalt.err (!%p1241_p10)
}
  0x42   : > { %s1245_s13 = scalar_lea.vmem %s293_s22, 32  ;;  %p1253_p0 = scmp.lt.s32.totalorder %s293_s22, %s293_s22 }
  0x43   : > { %p1246_p11 = scmp.ne.s32.totalorder %s293_s22, %s1245_s13  ;;  %p1254_p1 = scmp.lt.s32.totalorder %s1245_s13, %s1245_s13 }
  0x45   : > { %p1248_p12 = pnand %p1246_p11, %p1384_p8  ;;  %p1255_p4 = por %p1254_p1, %p1253_p0 }
  0x47   : > { %p1249_p13 = pneg %p1248_p12 }
  0x49   : > { %p1256_p7 = pnand %p1255_p4, %p1249_p13 }
  0x4b   : > { %1259 = shalt.err (!%p1256_p7)
}
  0x4c   : > { %1090 = dma.hbm_to_vmem [thread:$0]  (!%p1366_p5), %s1588_s5, 32, %s293_s22, [#allocation6]  }
  0x4d   : > { %p1600_p2 = scmp.ne.s32.totalorder %s1595_s8, 0 }
  0x4e   : > { %p1601_p3 = scmp.ne.s32.totalorder (!%p1600_p2), %s1594_s30, 0 }
  0x4f   : > { %335 = sbr.rel (%p1600_p2) target bundleno = 689 (0x2b1), region = 44 }
  0x56   : > { %1273 = dma.done.wait (%p1601_p3), [#allocation4], 32  }
  0x57   : > { %1275 = vsyncadd (%p1601_p3), [#allocation4], 4294967264 }
  0x58   : > { %1277 = dma.done.wait (%p1601_p3), [#allocation6], 64  }
  0x59   : > { %1279 = vsyncadd (%p1601_p3), [#allocation6], 4294967232  ;;  %v1124_v0 = vld [vmem:[%s1584_s1 + $0x4] ss:$8 sps:$4 sm:$0xff]   ;;  %v1126_v1 = vld [vmem:[%s1584_s1] ss:$8 sps:$4 sm:$0xff]   ;;  %v720_v35 = vlaneseq }
  0x5a   : > { %668 = vmatprep.subr.bf16.mxu0 %v1124_v0  ;;  %v1127_v2 = vld [vmem:[%s1584_s1 + $0x14] ss:$8 sps:$4 sm:$0xff]   ;;  %v1129_v3 = vld [vmem:[%s1584_s1 + $0x10] ss:$8 sps:$4 sm:$0xff]   ;;  %v1130_v4 = vld [vmem:[%s1584_s1 + $0x24] ss:$8 sps:$4 sm:$0xff]  }
  0x5b   : > { %669 = vmatpush1.bf16.msra.mxu0 %v1126_v1  ;;  %v1132_v5 = vld [vmem:[%s1584_s1 + $0x20] ss:$8 sps:$4 sm:$0xff]   ;;  %p412_p5 = scmp.lt.s32.totalorder %s1282_s24, 1  ;;  %v1133_v6 = vld [vmem:[%s1584_s1 + $0x34] ss:$8 sps:$4 sm:$0xff]   ;;  %s1022_s17 = sshll.u32 %s1282_s24, 1 }
  0x5c   : > { %670 = vmatprep.subr.bf16.mxu0 %v1127_v2  ;;  %v1135_v7 = vld [vmem:[%s1584_s1 + $0x30] ss:$8 sps:$4 sm:$0xff]   ;;  %v1136_v8 = vld [vmem:[%s1584_s1 + $0x44] ss:$8 sps:$4 sm:$0xff]   ;;  %v1138_v9 = vld [vmem:[%s1584_s1 + $0x40] ss:$8 sps:$4 sm:$0xff]  }
  0x5d   : > { %s1481_s13 = scalar_select %p412_p5, %s1282_s24, 1  ;;  %v1139_v10 = vld [vmem:[%s1584_s1 + $0x54] ss:$8 sps:$4 sm:$0xff]   ;;  %v1141_v11 = vld [vmem:[%s1584_s1 + $0x50] ss:$8 sps:$4 sm:$0xff]   ;;  %v721_v36 = vshrl.u32 %v720_v35, 7 }
  0x5e   : > { %v1142_v12 = vld [vmem:[%s1584_s1 + $0x64] ss:$8 sps:$4 sm:$0xff]   ;;  %v1144_v15 = vld [vmem:[%s1584_s1 + $0x60] ss:$8 sps:$4 sm:$0xff]   ;;  %v1145_v16 = vld [vmem:[%s1584_s1 + $0x74] ss:$8 sps:$4 sm:$0xff]  }
  0x5f   : > { %671 = vmatpush1.bf16.msra.mxu0 %v1129_v3  ;;  %s1065_s8 = sshll.u32 %s1481_s13, 3  ;;  %v1147_v17 = vld [vmem:[%s1584_s1 + $0x70] ss:$8 sps:$4 sm:$0xff]   ;;  %v1148_v18 = vld [vmem:[%s1584_s1 + $0x84] ss:$8 sps:$4 sm:$0xff]   ;;  %p435_p8 = scmp.lt.s32.totalorder %s1022_s17, 3 }
  0x60   : > { %672 = vmatprep.subr.bf16.mxu0 %v1130_v4  ;;  %s423_s22 = scalar_lea.vmem %s1583_s0, %s1065_s8  ;;  %v1150_v19 = vld [vmem:[%s1584_s1 + $0x80] ss:$8 sps:$4 sm:$0xff]   ;;  %v1151_v20 = vld [vmem:[%s1584_s1 + $0x94] ss:$8 sps:$4 sm:$0xff]   ;;  %v1153_v21 = vld [vmem:[%s1584_s1 + $0x90] ss:$8 sps:$4 sm:$0xff]   ;;  %s459_s23 = scalar_lea.vmem %s1590_s7, %s1065_s8 }
  0x61   : > { %v468_v13 = vld [vmem:[%s423_s22] sm:$0xff]  ;;  %v1157_v24 = vld [vmem:[%s1584_s1 + $0xb4] ss:$8 sps:$4 sm:$0xff]   ;;  %v1159_v25 = vld [vmem:[%s1584_s1 + $0xb0] ss:$8 sps:$4 sm:$0xff]   ;;  %s1607_s17 = smov (!%p435_p8, %s1022_s17), 3 }
  0x62   : > { %v1029_v14 = vcombine.high %v468_v13, %v468_v13  ;;  %v1154_v22 = vld [vmem:[%s1584_s1 + $0xa4] ss:$8 sps:$4 sm:$0xff]   ;;  %v1156_v23 = vld [vmem:[%s1584_s1 + $0xa0] ss:$8 sps:$4 sm:$0xff]   ;;  %v1163_v28 = vld [vmem:[%s1584_s1 + $0xd4] ss:$8 sps:$4 sm:$0xff]   ;;  %v1028_v34 = vcombine.low %v468_v13, %v468_v13 }
  0x63   : > { %673 = vmatpush1.bf16.msra.mxu0 %v1132_v5  ;;  %v1160_v26 = vld [vmem:[%s1584_s1 + $0xc4] ss:$8 sps:$4 sm:$0xff]   ;;  %v1162_v27 = vld [vmem:[%s1584_s1 + $0xc0] ss:$8 sps:$4 sm:$0xff]   ;;  %v1165_v29 = vld [vmem:[%s1584_s1 + $0xd0] ss:$8 sps:$4 sm:$0xff]  }
  0x64   : > { %674 = vmatprep.subr.bf16.mxu0 %v1133_v6  ;;  %700 = vmatprep.mubr.bf16.mxu0 %v1029_v14  ;;  %v1166_v30 = vld [vmem:[%s1584_s1 + $0xe4] ss:$8 sps:$4 sm:$0xff]   ;;  %v1168_v31 = vld [vmem:[%s1584_s1 + $0xe0] ss:$8 sps:$4 sm:$0xff]   ;;  %v1169_v32 = vld [vmem:[%s1584_s1 + $0xf4] ss:$8 sps:$4 sm:$0xff]  }
  0x65   : > { %v1171_v33 = vld [vmem:[%s1584_s1 + $0xf0] ss:$8 sps:$4 sm:$0xff]   ;;  %v722_v37 = vsub.s32 0, %v721_v36  ;;  %s1023_s18 = sshll.u32 %s1607_s17, 3  ;;  %v718_v38 = vld [vmem:[#allocation3] sm:$0x3] }
  0x66   : > { %v726_v39 = vsub.s32 1, %v721_v36  ;;  %s440_s28 = scalar_lea.vmem %s1586_s3, %s1023_s18  ;;  %s1066_s11 = sshll.u32 %s1481_s13, 4  ;;  %v755_v63 = vld [vmem:[#allocation5] sm:$0x3]  ;;  %v769_v0 = vld [vmem:[#allocation7] sm:$0x3] }
  0x67   : > { %675 = vmatpush1.bf16.msra.mxu0 %v1135_v7  ;;  %v723_v40 = vrot.slane %v718_v38, %v722_v37  ;;  %v732_v43 = vld [vmem:[%s440_s28] sm:$0xff]  ;;  %v733_v46 = vld [vmem:[%s440_s28 + $0x8] sm:$0xff]  ;;  %s450_s21 = scalar_lea.vmem %s1589_s6, %s1066_s11  ;;  %v760_v1 = vrot.slane %v755_v63, %v722_v37  ;;  %v774_v4 = vrot.slane %v769_v0, %v722_v37 }
  0x68   : > { %676 = vmatprep.subr.bf16.mxu0 %v1136_v8  ;;  %v727_v41 = vrot.slane %v718_v38, %v726_v39  ;;  %v764_v2 = vrot.slane %v755_v63, %v726_v39  ;;  %v778_v5 = vrot.slane %v769_v0, %v726_v39 }
  0x6b   : > { %677 = vmatpush1.bf16.msra.mxu0 %v1138_v9 }
  0x6c   : > { %678 = vmatprep.subr.bf16.mxu0 %v1139_v10 }
  0x6f   : > { %679 = vmatpush1.bf16.msra.mxu0 %v1141_v11 }
  0x70   : > { %680 = vmatprep.subr.bf16.mxu0 %v1142_v12 }
  0x73   : > { %681 = vmatpush1.bf16.msra.mxu0 %v1144_v15 }
  0x74   : > { %682 = vmatprep.subr.bf16.mxu0 %v1145_v16 }
  0x77   : > { %683 = vmatpush1.bf16.msra.mxu0 %v1147_v17 }
  0x78   : > { %684 = vmatprep.subr.bf16.mxu0 %v1148_v18 }
  0x7b   : > { %685 = vmatpush1.bf16.msra.mxu0 %v1150_v19 }
  0x7c   : > { %686 = vmatprep.subr.bf16.mxu0 %v1151_v20 }
  0x7f   : > { %687 = vmatpush1.bf16.msra.mxu0 %v1153_v21 }
  0x80   : > { %688 = vmatprep.subr.bf16.mxu0 %v1154_v22 }
  0x83   : > { %689 = vmatpush1.bf16.msra.mxu0 %v1156_v23 }
  0x84   : > { %690 = vmatprep.subr.bf16.mxu0 %v1157_v24 }
  0x87   : > { %691 = vmatpush1.bf16.msra.mxu0 %v1159_v25 }
  0x88   : > { %692 = vmatprep.subr.bf16.mxu0 %v1160_v26 }
  0x8b   : > { %693 = vmatpush1.bf16.msra.mxu0 %v1162_v27 }
  0x8c   : > { %694 = vmatprep.subr.bf16.mxu0 %v1163_v28 }
  0x8f   : > { %695 = vmatpush1.bf16.msra.mxu0 %v1165_v29 }
  0x90   : > { %696 = vmatprep.subr.bf16.mxu0 %v1166_v30 }
  0x93   : > { %697 = vmatpush1.bf16.msra.mxu0 %v1168_v31 }
  0x94   : > { %698 = vmatprep.subr.bf16.mxu0 %v1169_v32 }
  0x97   : > { %699 = vmatpush1.bf16.msra.mxu0 %v1171_v33 }
  0x9a   : > { %701 = vmatmul.mubr.bf16.vlgmr.msra.gmra.mrb[0].mxu0 %v1028_v34 }
 0x16d   : > { %v702_v42 = vpop.f32.mrb[0].mxu0 }
 0x16e   : > { %v730_v44 = vadd.f32 %v723_v40, %v702_v42  ;;  %v704_v45 = vpop.f32.mrb[1].mxu0 }
 0x16f   : > { %v731_v47 = vadd.f32 %v727_v41, %v704_v45  ;;  %v706_v48 = vpop.f32.mrb[2].mxu0 }
 0x170   : > { %v734_v49 = vadd.f32 %v732_v43, %v730_v44  ;;  %v707_v50 = vpop.f32.mrb[3].mxu0 }
 0x171   : > { %v735_v51 = vadd.f32 %v733_v46, %v731_v47 }
 0x172   : > { %736 = vst [vmem:[%s450_s21] sm:$0xff] %v734_v49 }
 0x173   : > { %737 = vst [vmem:[%s450_s21 + $0x8] sm:$0xff] %v735_v51  ;;  %v738_v52 = vadd.f32 %v735_v51, %v734_v49 }
 0x175   : > { %739 = vadd.xlane.f32.xlu0 %v738_v52 }
 0x202   : > { %v740_v53 = vpop.xlane.xlu0 %739 }
 0x203   : > { %v742_v54 = vmul.f32 0.00390625, %v740_v53 }
 0x205   : > { %v743_v55 = vsub.f32 %v734_v49, %v742_v54  ;;  %v744_v56 = vsub.f32 %v735_v51, %v742_v54 }
 0x207   : > { %v745_v57 = vmul.f32 %v743_v55, %v743_v55  ;;  %v746_v58 = vmul.f32 %v744_v56, %v744_v56 }
 0x209   : > { %v747_v59 = vadd.f32 %v746_v58, %v745_v57 }
 0x20b   : > { %748 = vadd.xlane.f32.xlu0 %v747_v59 }
 0x298   : > { %v749_v60 = vpop.xlane.xlu0 %748 }
 0x299   : > { %v750_v61 = vmul.f32 0.00390625, %v749_v60 }
 0x29b   : > { %v751_v62 = vadd.f32 1e-05, %v750_v61 }
 0x29d   : > { %1174 = vrsqrt.f32 %v751_v62 }
 0x2a7   : > { %v1175_v3 = vpop.eup %1174 }
 0x2a8   : > { %v753_v6 = vmul.f32 %v1175_v3, %v743_v55  ;;  %v754_v7 = vmul.f32 %v1175_v3, %v744_v56 }
 0x2aa   : > { %v767_v8 = vmul.f32 %v760_v1, %v753_v6  ;;  %v768_v9 = vmul.f32 %v764_v2, %v754_v7 }
 0x2ac   : > { %v781_v10 = vadd.f32 %v774_v4, %v767_v8  ;;  %v782_v11 = vadd.f32 %v778_v5, %v768_v9 }
 0x2ae   : > { %v1068_v12 = vpack.c.bf16 %v782_v11, %v781_v10 }
 0x2b0   : > { %791 = vst [vmem:[%s459_s23] sm:$0xff] %v1068_v12 }
 0x2b1 PF: > { %s20_s26 = sadd.s32 1, %s1290_s26   ;;  %s1602_s24 = smov %s1286_s25 }
 0x2b2   : > { %p17_p6 = scmp.ge.s32.totalorder %s20_s26, 4   ;;  %s1603_s25 = smov %s1605_s9 }
 0x2b4   :  { %19 = sbr.rel (!%p17_p6) target bundleno = 3 (0x3), region = 113 }
 0x2bb   :  { %845 = vsyncpa [#allocation4], 1 }
 0x2bc   :  { %847 = vsyncpa [#allocation4 + $0x1], 1 }
 0x2bd   :  { %848 = vsyncpa [#allocation6], 1 }

// kernel: vision_block_forward.8
= control target key start
LH: loop header
LB: loop body
LE: loop exit
PB: predicated region body
PF: predicated region fallthrough
CT: control target
= control target key end

     0   :  { %s1504_s12 = smov 0   ;;  %s1506_s13 = smov 0   ;;  %s1806_s0 = inlined_call_operand.vmem [shape: bf16[2,8,256], index: 0, kind: input, shape index: {}]   ;;  %s1807_s1 = inlined_call_operand.vmem [shape: bf16[256,1024], index: 1, kind: input, shape index: {}]   ;;  %s1808_s2 = inlined_call_operand.vmem [shape: f32[1,1024], index: 2, kind: input, shape index: {}]   ;;  %s1809_s3 = inlined_call_operand.vmem [shape: bf16[2,8,1024], index: 3, kind: output, shape index: {}]  }
   0x1   :  { %s1508_s14 = smov 0   ;;  %s1510_s15 = smov 0  }
   0x2   :  { %s1512_s16 = smov 0   ;;  %s1514_s17 = smov 0  }
   0x3   :  { %s1516_s18 = smov 0  }
   0x4 LB: > { %s31_s19 = sadd.s32 1, %s1474_s16  ;;  %s39_s20 = sadd.s32 1, %s1478_s17  ;;  %s1482_s18 = sphi %s1516_s18, %s13_s18   ;;  %s1478_s17 = sphi %s1514_s17, %s1815_s17   ;;  %s1474_s16 = sphi %s1512_s16, %s1814_s16   ;;  %s1470_s15 = sphi %s1510_s15, %s1813_s15   ;;  %s1466_s14 = sphi %s1508_s14, %s1812_s14   ;;  %s1462_s13 = sphi %s1506_s13, %s1811_s13   ;;  %s1458_s12 = sphi %s1504_s12, %s1810_s12  }
   0x5   : > { %p33_p0 = scmp.ge.s32.totalorder %s31_s19, 2  ;;  %s78_s21 = sadd.s32 1, %s1462_s13 }
   0x6   : > { %p85_p1 = scmp.ne.s32.totalorder %s1462_s13, %s1458_s12  ;;  %p86_p2 = scmp.eq.s32.totalorder %s1482_s18, 0 }
   0x7   : > { %s1817_s19 = smov (%p33_p0, %s31_s19), 0  ;;  %s1819_s20 = smov (!%p33_p0, %s39_s20), %s1478_s17 }
   0x8   : > { %s74_s22 = ssub.s32 %s1474_s16, %s1817_s19  ;;  %p87_p3 = por %p86_p2, %p85_p1 }
   0x9   : > { %p41_p4 = scmp.ge.s32.totalorder %s1819_s20, 2  ;;  %p76_p5 = scmp.eq.s32.totalorder %s74_s22, 0 }
   0xa   : > { %p1168_p6 = scmp.ge.s32.totalorder %s1482_s18, 4 }
   0xb   : > { %s1821_s20 = smov (%p41_p4, %s1819_s20), 0 }
   0xc   : > { %s1553_s23 = scalar_select %p76_p5, %s1462_s13, %s78_s21  }
   0xd   : > { %167 = sbr.rel (%p1168_p6) target bundleno = 56 (0x38), region = 16 }
  0x14   : > { %187 = sbr.rel (!%p87_p3) target bundleno = 56 (0x38), region = 24  ;;  %s189_s24 = sand.u32 (%p87_p3), 1, %s1462_s13  }
  0x15   : > { %s1254_s25 = sshll.u32 (%p87_p3), %s1474_s16, 4  ;;  %s1169_s26 = sshll.u32 (%p87_p3), %s189_s24, 9 }
  0x16   : > { %s1561_s29 = scalar_lea.vmem (%p87_p3), %s1807_s1, %s1254_s25  ;;  %s1566_s30 = scalar_lea.vmem (%p87_p3), [#allocation3], %s1169_s26 }
  0x17   : > { %v210_v0 = vld [vmem:[%s1561_s29] sm:$0xff] (%p87_p3)  ;;  %v212_v1 = vld [vmem:[%s1561_s29 + $0x8] sm:$0xff] (%p87_p3) }
  0x18   : > { %v214_v2 = vld [vmem:[%s1561_s29 + $0x20] sm:$0xff] (%p87_p3)  ;;  %211 = vst [vmem:[%s1566_s30] sm:$0xff] (%p87_p3), %v210_v0  ;;  %213 = vst [vmem:[%s1566_s30 + $0x8] sm:$0xff] (%p87_p3), %v212_v1  ;;  %v216_v3 = vld [vmem:[%s1561_s29 + $0x28] sm:$0xff] (%p87_p3) }
  0x19   : > { %215 = vst [vmem:[%s1566_s30 + $0x10] sm:$0xff] (%p87_p3), %v214_v2  ;;  %v218_v4 = vld [vmem:[%s1561_s29 + $0x40] sm:$0xff] (%p87_p3)  ;;  %v220_v5 = vld [vmem:[%s1561_s29 + $0x48] sm:$0xff] (%p87_p3)  ;;  %217 = vst [vmem:[%s1566_s30 + $0x18] sm:$0xff] (%p87_p3), %v216_v3 }
  0x1a   : > { %219 = vst [vmem:[%s1566_s30 + $0x20] sm:$0xff] (%p87_p3), %v218_v4  ;;  %221 = vst [vmem:[%s1566_s30 + $0x28] sm:$0xff] (%p87_p3), %v220_v5  ;;  %v222_v6 = vld [vmem:[%s1561_s29 + $0x60] sm:$0xff] (%p87_p3)  ;;  %v224_v7 = vld [vmem:[%s1561_s29 + $0x68] sm:$0xff] (%p87_p3) }
  0x1b   : > { %v226_v8 = vld [vmem:[%s1561_s29 + $0x80] sm:$0xff]  ;;  %223 = vst [vmem:[%s1566_s30 + $0x30] sm:$0xff] %v222_v6  ;;  %225 = vst [vmem:[%s1566_s30 + $0x38] sm:$0xff] %v224_v7  ;;  %v228_v9 = vld [vmem:[%s1561_s29 + $0x88] sm:$0xff] }
  0x1c   : > { %227 = vst [vmem:[%s1566_s30 + $0x40] sm:$0xff] %v226_v8  ;;  %v230_v10 = vld [vmem:[%s1561_s29 + $0xa0] sm:$0xff]  ;;  %v232_v11 = vld [vmem:[%s1561_s29 + $0xa8] sm:$0xff]  ;;  %229 = vst [vmem:[%s1566_s30 + $0x48] sm:$0xff] %v228_v9 }
  0x1d   : > { %231 = vst [vmem:[%s1566_s30 + $0x50] sm:$0xff] %v230_v10  ;;  %233 = vst [vmem:[%s1566_s30 + $0x58] sm:$0xff] %v232_v11  ;;  %v234_v12 = vld [vmem:[%s1561_s29 + $0xc0] sm:$0xff]  ;;  %v236_v13 = vld [vmem:[%s1561_s29 + $0xc8] sm:$0xff] }
  0x1e   : > { %v238_v14 = vld [vmem:[%s1561_s29 + $0xe0] sm:$0xff]  ;;  %235 = vst [vmem:[%s1566_s30 + $0x60] sm:$0xff] %v234_v12  ;;  %237 = vst [vmem:[%s1566_s30 + $0x68] sm:$0xff] %v236_v13  ;;  %v240_v15 = vld [vmem:[%s1561_s29 + $0xe8] sm:$0xff] }
  0x1f   : > { %239 = vst [vmem:[%s1566_s30 + $0x70] sm:$0xff] %v238_v14  ;;  %v242_v16 = vld [vmem:[%s1561_s29 + $0x100] sm:$0xff]  ;;  %v244_v17 = vld [vmem:[%s1561_s29 + $0x108] sm:$0xff]  ;;  %241 = vst [vmem:[%s1566_s30 + $0x78] sm:$0xff] %v240_v15 }
  0x20   : > { %243 = vst [vmem:[%s1566_s30 + $0x80] sm:$0xff] %v242_v16  ;;  %245 = vst [vmem:[%s1566_s30 + $0x88] sm:$0xff] %v244_v17  ;;  %v246_v18 = vld [vmem:[%s1561_s29 + $0x120] sm:$0xff]  ;;  %v248_v19 = vld [vmem:[%s1561_s29 + $0x128] sm:$0xff] }
  0x21   : > { %v250_v20 = vld [vmem:[%s1561_s29 + $0x140] sm:$0xff]  ;;  %247 = vst [vmem:[%s1566_s30 + $0x90] sm:$0xff] %v246_v18  ;;  %249 = vst [vmem:[%s1566_s30 + $0x98] sm:$0xff] %v248_v19  ;;  %v252_v21 = vld [vmem:[%s1561_s29 + $0x148] sm:$0xff] }
  0x22   : > { %251 = vst [vmem:[%s1566_s30 + $0xa0] sm:$0xff] %v250_v20  ;;  %v254_v22 = vld [vmem:[%s1561_s29 + $0x160] sm:$0xff]  ;;  %v256_v23 = vld [vmem:[%s1561_s29 + $0x168] sm:$0xff]  ;;  %253 = vst [vmem:[%s1566_s30 + $0xa8] sm:$0xff] %v252_v21 }
  0x23   : > { %255 = vst [vmem:[%s1566_s30 + $0xb0] sm:$0xff] %v254_v22  ;;  %257 = vst [vmem:[%s1566_s30 + $0xb8] sm:$0xff] %v256_v23  ;;  %v258_v24 = vld [vmem:[%s1561_s29 + $0x180] sm:$0xff]  ;;  %v260_v25 = vld [vmem:[%s1561_s29 + $0x188] sm:$0xff] }
  0x24   : > { %v262_v26 = vld [vmem:[%s1561_s29 + $0x1a0] sm:$0xff]  ;;  %259 = vst [vmem:[%s1566_s30 + $0xc0] sm:$0xff] %v258_v24  ;;  %261 = vst [vmem:[%s1566_s30 + $0xc8] sm:$0xff] %v260_v25  ;;  %v264_v27 = vld [vmem:[%s1561_s29 + $0x1a8] sm:$0xff] }
  0x25   : > { %263 = vst [vmem:[%s1566_s30 + $0xd0] sm:$0xff] %v262_v26  ;;  %v266_v28 = vld [vmem:[%s1561_s29 + $0x1c0] sm:$0xff]  ;;  %v268_v29 = vld [vmem:[%s1561_s29 + $0x1c8] sm:$0xff]  ;;  %265 = vst [vmem:[%s1566_s30 + $0xd8] sm:$0xff] %v264_v27 }
  0x26   : > { %267 = vst [vmem:[%s1566_s30 + $0xe0] sm:$0xff] %v266_v28  ;;  %269 = vst [vmem:[%s1566_s30 + $0xe8] sm:$0xff] %v268_v29  ;;  %v270_v30 = vld [vmem:[%s1561_s29 + $0x1e0] sm:$0xff]  ;;  %v272_v31 = vld [vmem:[%s1561_s29 + $0x1e8] sm:$0xff] }
  0x27   : > { %v274_v32 = vld [vmem:[%s1561_s29 + $0x200] sm:$0xff]  ;;  %271 = vst [vmem:[%s1566_s30 + $0xf0] sm:$0xff] %v270_v30  ;;  %273 = vst [vmem:[%s1566_s30 + $0xf8] sm:$0xff] %v272_v31  ;;  %v276_v33 = vld [vmem:[%s1561_s29 + $0x208] sm:$0xff] }
  0x28   : > { %275 = vst [vmem:[%s1566_s30 + $0x100] sm:$0xff] %v274_v32  ;;  %v278_v34 = vld [vmem:[%s1561_s29 + $0x220] sm:$0xff]  ;;  %v280_v35 = vld [vmem:[%s1561_s29 + $0x228] sm:$0xff]  ;;  %277 = vst [vmem:[%s1566_s30 + $0x108] sm:$0xff] %v276_v33 }
  0x29   : > { %279 = vst [vmem:[%s1566_s30 + $0x110] sm:$0xff] %v278_v34  ;;  %281 = vst [vmem:[%s1566_s30 + $0x118] sm:$0xff] %v280_v35  ;;  %v282_v36 = vld [vmem:[%s1561_s29 + $0x240] sm:$0xff]  ;;  %v284_v37 = vld [vmem:[%s1561_s29 + $0x248] sm:$0xff] }
  0x2a   : > { %v286_v38 = vld [vmem:[%s1561_s29 + $0x260] sm:$0xff]  ;;  %283 = vst [vmem:[%s1566_s30 + $0x120] sm:$0xff] %v282_v36  ;;  %285 = vst [vmem:[%s1566_s30 + $0x128] sm:$0xff] %v284_v37  ;;  %v288_v39 = vld [vmem:[%s1561_s29 + $0x268] sm:$0xff] }
  0x2b   : > { %287 = vst [vmem:[%s1566_s30 + $0x130] sm:$0xff] %v286_v38  ;;  %v290_v40 = vld [vmem:[%s1561_s29 + $0x280] sm:$0xff]  ;;  %v292_v41 = vld [vmem:[%s1561_s29 + $0x288] sm:$0xff]  ;;  %289 = vst [vmem:[%s1566_s30 + $0x138] sm:$0xff] %v288_v39 }
  0x2c   : > { %291 = vst [vmem:[%s1566_s30 + $0x140] sm:$0xff] %v290_v40  ;;  %293 = vst [vmem:[%s1566_s30 + $0x148] sm:$0xff] %v292_v41  ;;  %v294_v42 = vld [vmem:[%s1561_s29 + $0x2a0] sm:$0xff]  ;;  %v296_v43 = vld [vmem:[%s1561_s29 + $0x2a8] sm:$0xff] }
  0x2d   : > { %v298_v44 = vld [vmem:[%s1561_s29 + $0x2c0] sm:$0xff]  ;;  %295 = vst [vmem:[%s1566_s30 + $0x150] sm:$0xff] %v294_v42  ;;  %297 = vst [vmem:[%s1566_s30 + $0x158] sm:$0xff] %v296_v43  ;;  %v300_v45 = vld [vmem:[%s1561_s29 + $0x2c8] sm:$0xff] }
  0x2e   : > { %299 = vst [vmem:[%s1566_s30 + $0x160] sm:$0xff] %v298_v44  ;;  %v302_v46 = vld [vmem:[%s1561_s29 + $0x2e0] sm:$0xff]  ;;  %v304_v47 = vld [vmem:[%s1561_s29 + $0x2e8] sm:$0xff]  ;;  %301 = vst [vmem:[%s1566_s30 + $0x168] sm:$0xff] %v300_v45 }
  0x2f   : > { %303 = vst [vmem:[%s1566_s30 + $0x170] sm:$0xff] %v302_v46  ;;  %305 = vst [vmem:[%s1566_s30 + $0x178] sm:$0xff] %v304_v47  ;;  %v306_v48 = vld [vmem:[%s1561_s29 + $0x300] sm:$0xff]  ;;  %v308_v49 = vld [vmem:[%s1561_s29 + $0x308] sm:$0xff] }
  0x30   : > { %v310_v50 = vld [vmem:[%s1561_s29 + $0x320] sm:$0xff]  ;;  %307 = vst [vmem:[%s1566_s30 + $0x180] sm:$0xff] %v306_v48  ;;  %309 = vst [vmem:[%s1566_s30 + $0x188] sm:$0xff] %v308_v49  ;;  %v312_v51 = vld [vmem:[%s1561_s29 + $0x328] sm:$0xff] }
  0x31   : > { %311 = vst [vmem:[%s1566_s30 + $0x190] sm:$0xff] %v310_v50  ;;  %v314_v52 = vld [vmem:[%s1561_s29 + $0x340] sm:$0xff]  ;;  %v316_v53 = vld [vmem:[%s1561_s29 + $0x348] sm:$0xff]  ;;  %313 = vst [vmem:[%s1566_s30 + $0x198] sm:$0xff] %v312_v51 }
  0x32   : > { %315 = vst [vmem:[%s1566_s30 + $0x1a0] sm:$0xff] %v314_v52  ;;  %317 = vst [vmem:[%s1566_s30 + $0x1a8] sm:$0xff] %v316_v53  ;;  %v318_v54 = vld [vmem:[%s1561_s29 + $0x360] sm:$0xff]  ;;  %v320_v55 = vld [vmem:[%s1561_s29 + $0x368] sm:$0xff] }
  0x33   : > { %v322_v56 = vld [vmem:[%s1561_s29 + $0x380] sm:$0xff]  ;;  %319 = vst [vmem:[%s1566_s30 + $0x1b0] sm:$0xff] %v318_v54  ;;  %321 = vst [vmem:[%s1566_s30 + $0x1b8] sm:$0xff] %v320_v55  ;;  %v324_v57 = vld [vmem:[%s1561_s29 + $0x388] sm:$0xff] }
  0x34   : > { %323 = vst [vmem:[%s1566_s30 + $0x1c0] sm:$0xff] %v322_v56  ;;  %v326_v58 = vld [vmem:[%s1561_s29 + $0x3a0] sm:$0xff]  ;;  %v328_v59 = vld [vmem:[%s1561_s29 + $0x3a8] sm:$0xff]  ;;  %325 = vst [vmem:[%s1566_s30 + $0x1c8] sm:$0xff] %v324_v57 }
  0x35   : > { %327 = vst [vmem:[%s1566_s30 + $0x1d0] sm:$0xff] %v326_v58  ;;  %329 = vst [vmem:[%s1566_s30 + $0x1d8] sm:$0xff] %v328_v59  ;;  %v330_v60 = vld [vmem:[%s1561_s29 + $0x3c0] sm:$0xff]  ;;  %v332_v61 = vld [vmem:[%s1561_s29 + $0x3c8] sm:$0xff] }
  0x36   : > { %v334_v62 = vld [vmem:[%s1561_s29 + $0x3e0] sm:$0xff]  ;;  %331 = vst [vmem:[%s1566_s30 + $0x1e0] sm:$0xff] %v330_v60  ;;  %333 = vst [vmem:[%s1566_s30 + $0x1e8] sm:$0xff] %v332_v61  ;;  %v336_v63 = vld [vmem:[%s1561_s29 + $0x3e8] sm:$0xff] }
  0x37   : > { %335 = vst [vmem:[%s1566_s30 + $0x1f0] sm:$0xff] %v334_v62  ;;  %337 = vst [vmem:[%s1566_s30 + $0x1f8] sm:$0xff] %v336_v63 }
  0x38 PF: > { %p1172_p7 = scmp.ge.s32.totalorder %s1482_s18, 1  ;;  %p350_p8 = scmp.lt.s32.totalorder %s1482_s18, 5 }
  0x3a   : > { %p351_p9 = pnand %p1172_p7, %p350_p8 }
  0x3b   : > { %s357_s4 = sand.u32 (!%p351_p9), 1, %s1458_s12   ;;  %p406_p10 = scmp.lt.s32.totalorder (!%p351_p9), %s1470_s15, 1 }
  0x3c   : > { %354 = sbr.rel (%p351_p9) target bundleno = 377 (0x179), region = 51  ;;  %s1173_s5 = sshll.u32 (!%p351_p9), %s357_s4, 9 }
  0x3d   : > { %s1696_s6 = scalar_lea.vmem (!%p351_p9), [#allocation3], %s1173_s5  ;;  %s1176_s11 = sshll.u32 (!%p351_p9), %s1466_s14, 2 }
  0x3e   : > { %v1314_v0 = vld [vmem:[%s1696_s6 + $0x4] ss:$16 sps:$4 sm:$0xff] (!%p351_p9)   ;;  %v1316_v1 = vld [vmem:[%s1696_s6 + $0xc] ss:$16 sps:$4 sm:$0xff] (!%p351_p9)   ;;  %v1318_v2 = vld [vmem:[%s1696_s6] ss:$16 sps:$4 sm:$0xff] (!%p351_p9)  }
  0x3f   : > { %844 = vmatprep.subr.bf16.mxu0 (!%p351_p9), %v1314_v0  ;;  %v1319_v3 = vld [vmem:[%s1696_s6 + $0x8] ss:$16 sps:$4 sm:$0xff] (!%p351_p9)   ;;  %885 = vmatprep.subr.bf16.mxu1 (!%p351_p9), %v1316_v1  ;;  %v1320_v4 = vld [vmem:[%s1696_s6 + $0x24] ss:$16 sps:$4 sm:$0xff] (!%p351_p9)   ;;  %v1322_v5 = vld [vmem:[%s1696_s6 + $0x2c] ss:$16 sps:$4 sm:$0xff] (!%p351_p9)  }
  0x40   : > { %845 = vmatpush1.bf16.msra.mxu0 (!%p351_p9), %v1318_v2  ;;  %886 = vmatpush1.bf16.msra.mxu1 (!%p351_p9), %v1319_v3  ;;  %v1324_v6 = vld [vmem:[%s1696_s6 + $0x20] ss:$16 sps:$4 sm:$0xff] (!%p351_p9)   ;;  %v1325_v7 = vld [vmem:[%s1696_s6 + $0x28] ss:$16 sps:$4 sm:$0xff] (!%p351_p9)   ;;  %v1326_v8 = vld [vmem:[%s1696_s6 + $0x44] ss:$16 sps:$4 sm:$0xff] (!%p351_p9)   ;;  %v943_v3 = vlaneseq (!%p351_p9) }
  0x41   : > { %846 = vmatprep.subr.bf16.mxu0 (!%p351_p9), %v1320_v4  ;;  %887 = vmatprep.subr.bf16.mxu1 (!%p351_p9), %v1322_v5  ;;  %v1328_v9 = vld [vmem:[%s1696_s6 + $0x4c] ss:$16 sps:$4 sm:$0xff] (!%p351_p9)   ;;  %v1330_v10 = vld [vmem:[%s1696_s6 + $0x40] ss:$16 sps:$4 sm:$0xff] (!%p351_p9)   ;;  %v1331_v11 = vld [vmem:[%s1696_s6 + $0x48] ss:$16 sps:$4 sm:$0xff] (!%p351_p9)  }
  0x42   : > { %v1332_v12 = vld [vmem:[%s1696_s6 + $0x64] ss:$16 sps:$4 sm:$0xff] (!%p351_p9)   ;;  %v1334_v13 = vld [vmem:[%s1696_s6 + $0x6c] ss:$16 sps:$4 sm:$0xff] (!%p351_p9)   ;;  %v1336_v14 = vld [vmem:[%s1696_s6 + $0x60] ss:$16 sps:$4 sm:$0xff] (!%p351_p9)  }
  0x43   : > { %v1337_v15 = vld [vmem:[%s1696_s6 + $0x68] ss:$16 sps:$4 sm:$0xff]   ;;  %v1338_v16 = vld [vmem:[%s1696_s6 + $0x84] ss:$16 sps:$4 sm:$0xff]   ;;  %v1340_v17 = vld [vmem:[%s1696_s6 + $0x8c] ss:$16 sps:$4 sm:$0xff]  }
  0x44   : > { %847 = vmatpush1.bf16.msra.mxu0 %v1324_v6  ;;  %888 = vmatpush1.bf16.msra.mxu1 %v1325_v7  ;;  %v1342_v18 = vld [vmem:[%s1696_s6 + $0x80] ss:$16 sps:$4 sm:$0xff]   ;;  %v1343_v19 = vld [vmem:[%s1696_s6 + $0x88] ss:$16 sps:$4 sm:$0xff]   ;;  %v1344_v20 = vld [vmem:[%s1696_s6 + $0xa4] ss:$16 sps:$4 sm:$0xff]  }
  0x45   : > { %848 = vmatprep.subr.bf16.mxu0 %v1326_v8  ;;  %889 = vmatprep.subr.bf16.mxu1 %v1328_v9  ;;  %v1346_v21 = vld [vmem:[%s1696_s6 + $0xac] ss:$16 sps:$4 sm:$0xff]   ;;  %v1348_v22 = vld [vmem:[%s1696_s6 + $0xa0] ss:$16 sps:$4 sm:$0xff]   ;;  %v1349_v23 = vld [vmem:[%s1696_s6 + $0xa8] ss:$16 sps:$4 sm:$0xff]  }
  0x46   : > { %v1350_v24 = vld [vmem:[%s1696_s6 + $0xc4] ss:$16 sps:$4 sm:$0xff]   ;;  %v1352_v25 = vld [vmem:[%s1696_s6 + $0xcc] ss:$16 sps:$4 sm:$0xff]   ;;  %v1354_v26 = vld [vmem:[%s1696_s6 + $0xc0] ss:$16 sps:$4 sm:$0xff]  }
  0x47   : > { %v1355_v27 = vld [vmem:[%s1696_s6 + $0xc8] ss:$16 sps:$4 sm:$0xff]   ;;  %v1356_v28 = vld [vmem:[%s1696_s6 + $0xe4] ss:$16 sps:$4 sm:$0xff]   ;;  %v1358_v29 = vld [vmem:[%s1696_s6 + $0xec] ss:$16 sps:$4 sm:$0xff]  }
  0x48   : > { %849 = vmatpush1.bf16.msra.mxu0 %v1330_v10  ;;  %890 = vmatpush1.bf16.msra.mxu1 %v1331_v11  ;;  %v1360_v30 = vld [vmem:[%s1696_s6 + $0xe0] ss:$16 sps:$4 sm:$0xff]   ;;  %v1361_v31 = vld [vmem:[%s1696_s6 + $0xe8] ss:$16 sps:$4 sm:$0xff]   ;;  %v1362_v32 = vld [vmem:[%s1696_s6 + $0x104] ss:$16 sps:$4 sm:$0xff]  }
  0x49   : > { %850 = vmatprep.subr.bf16.mxu0 %v1332_v12  ;;  %891 = vmatprep.subr.bf16.mxu1 %v1334_v13  ;;  %v1364_v33 = vld [vmem:[%s1696_s6 + $0x10c] ss:$16 sps:$4 sm:$0xff]   ;;  %v1366_v34 = vld [vmem:[%s1696_s6 + $0x100] ss:$16 sps:$4 sm:$0xff]   ;;  %v1367_v35 = vld [vmem:[%s1696_s6 + $0x108] ss:$16 sps:$4 sm:$0xff]  }
  0x4a   : > { %v1368_v36 = vld [vmem:[%s1696_s6 + $0x124] ss:$16 sps:$4 sm:$0xff]   ;;  %s1823_s15 = smov (!%p406_p10, %s1470_s15), 1  ;;  %v1370_v37 = vld [vmem:[%s1696_s6 + $0x12c] ss:$16 sps:$4 sm:$0xff]   ;;  %p422_p11 = scmp.lt.s32.totalorder %s1176_s11, 7 }
  0x4b   : > { %v1372_v38 = vld [vmem:[%s1696_s6 + $0x120] ss:$16 sps:$4 sm:$0xff]   ;;  %v1373_v39 = vld [vmem:[%s1696_s6 + $0x128] ss:$16 sps:$4 sm:$0xff]   ;;  %v1374_v40 = vld [vmem:[%s1696_s6 + $0x144] ss:$16 sps:$4 sm:$0xff]  }
  0x4c   : > { %851 = vmatpush1.bf16.msra.mxu0 %v1336_v14  ;;  %892 = vmatpush1.bf16.msra.mxu1 %v1337_v15  ;;  %s1255_s7 = sshll.u32 %s1823_s15, 3  ;;  %v1376_v41 = vld [vmem:[%s1696_s6 + $0x14c] ss:$16 sps:$4 sm:$0xff]   ;;  %v1378_v42 = vld [vmem:[%s1696_s6 + $0x140] ss:$16 sps:$4 sm:$0xff]   ;;  %s1825_s11 = smov (!%p422_p11, %s1176_s11), 7 }
  0x4d   : > { %852 = vmatprep.subr.bf16.mxu0 %v1338_v16  ;;  %893 = vmatprep.subr.bf16.mxu1 %v1340_v17  ;;  %v1379_v43 = vld [vmem:[%s1696_s6 + $0x148] ss:$16 sps:$4 sm:$0xff]   ;;  %s417_s10 = scalar_lea.vmem %s1806_s0, %s1255_s7  ;;  %v1380_v44 = vld [vmem:[%s1696_s6 + $0x164] ss:$16 sps:$4 sm:$0xff]   ;;  %v1382_v45 = vld [vmem:[%s1696_s6 + $0x16c] ss:$16 sps:$4 sm:$0xff]   ;;  %s424_s22 = scalar_lea.vmem %s1808_s2, %s1825_s11 }
  0x4e   : > { %v452_v46 = vld [vmem:[%s417_s10] sm:$0xff]  ;;  %v1385_v49 = vld [vmem:[%s1696_s6 + $0x168] ss:$16 sps:$4 sm:$0xff]   ;;  %v1388_v51 = vld [vmem:[%s1696_s6 + $0x18c] ss:$16 sps:$4 sm:$0xff]   ;;  %v944_v4 = vshrl.u32 %v943_v3, 7  ;;  %s436_s14 = sadd.s32 %s1255_s7, %s1825_s11 }
  0x4f   : > { %v1181_v47 = vcombine.high %v452_v46, %v452_v46  ;;  %v1384_v48 = vld [vmem:[%s1696_s6 + $0x160] ss:$16 sps:$4 sm:$0xff]   ;;  %v1386_v50 = vld [vmem:[%s1696_s6 + $0x184] ss:$16 sps:$4 sm:$0xff]   ;;  %v1391_v53 = vld [vmem:[%s1696_s6 + $0x188] ss:$16 sps:$4 sm:$0xff]   ;;  %v1180_v2 = vcombine.low %v452_v46, %v452_v46 }
  0x50   : > { %853 = vmatpush1.bf16.msra.mxu0 %v1342_v18  ;;  %894 = vmatpush1.bf16.msra.mxu1 %v1343_v19  ;;  %v1390_v52 = vld [vmem:[%s1696_s6 + $0x180] ss:$16 sps:$4 sm:$0xff]   ;;  %v1392_v54 = vld [vmem:[%s1696_s6 + $0x1a4] ss:$16 sps:$4 sm:$0xff]   ;;  %v1394_v55 = vld [vmem:[%s1696_s6 + $0x1ac] ss:$16 sps:$4 sm:$0xff]  }
  0x51   : > { %854 = vmatprep.subr.bf16.mxu0 %v1344_v20  ;;  %895 = vmatprep.subr.bf16.mxu1 %v1346_v21  ;;  %v1396_v56 = vld [vmem:[%s1696_s6 + $0x1a0] ss:$16 sps:$4 sm:$0xff]   ;;  %v1397_v57 = vld [vmem:[%s1696_s6 + $0x1a8] ss:$16 sps:$4 sm:$0xff]   ;;  %v1398_v58 = vld [vmem:[%s1696_s6 + $0x1c4] ss:$16 sps:$4 sm:$0xff]  }
  0x52   : > { %876 = vmatprep.mubr.bf16.mxu0 %v1181_v47  ;;  %917 = vmatprep.mubr.bf16.mxu1 %v1181_v47  ;;  %v1400_v59 = vld [vmem:[%s1696_s6 + $0x1cc] ss:$16 sps:$4 sm:$0xff]   ;;  %v1402_v60 = vld [vmem:[%s1696_s6 + $0x1c0] ss:$16 sps:$4 sm:$0xff]   ;;  %v1403_v61 = vld [vmem:[%s1696_s6 + $0x1c8] ss:$16 sps:$4 sm:$0xff]  }
  0x53   : > { %v1404_v62 = vld [vmem:[%s1696_s6 + $0x1e4] ss:$16 sps:$4 sm:$0xff]   ;;  %v1406_v63 = vld [vmem:[%s1696_s6 + $0x1ec] ss:$16 sps:$4 sm:$0xff]   ;;  %v1408_v0 = vld [vmem:[%s1696_s6 + $0x1e0] ss:$16 sps:$4 sm:$0xff]  }
  0x54   : > { %855 = vmatpush1.bf16.msra.mxu0 %v1348_v22  ;;  %896 = vmatpush1.bf16.msra.mxu1 %v1349_v23  ;;  %v1409_v1 = vld [vmem:[%s1696_s6 + $0x1e8] ss:$16 sps:$4 sm:$0xff]   ;;  %v945_v5 = vsub.s32 0, %v944_v4  ;;  %v953_v6 = vsub.s32 2, %v944_v4  ;;  %v941_v7 = vld [vmem:[%s424_s22] sm:$0xf] }
  0x55   : > { %856 = vmatprep.subr.bf16.mxu0 %v1350_v24  ;;  %897 = vmatprep.subr.bf16.mxu1 %v1352_v25  ;;  %v949_v8 = vsub.s32 1, %v944_v4  ;;  %v957_v9 = vsub.s32 3, %v944_v4  ;;  %s1179_s24 = sshll.u32 %s436_s14, 2 }
  0x56   : > { %v946_v10 = vrot.slane %v941_v7, %v945_v5  ;;  %v954_v11 = vrot.slane %v941_v7, %v953_v6  ;;  %s438_s27 = scalar_lea.vmem %s1809_s3, %s1179_s24 }
  0x57   : > { %v950_v12 = vrot.slane %v941_v7, %v949_v8  ;;  %v958_v13 = vrot.slane %v941_v7, %v957_v9 }
  0x58   : > { %857 = vmatpush1.bf16.msra.mxu0 %v1354_v26  ;;  %898 = vmatpush1.bf16.msra.mxu1 %v1355_v27 }
  0x59   : > { %858 = vmatprep.subr.bf16.mxu0 %v1356_v28  ;;  %899 = vmatprep.subr.bf16.mxu1 %v1358_v29 }
  0x5c   : > { %859 = vmatpush1.bf16.msra.mxu0 %v1360_v30  ;;  %900 = vmatpush1.bf16.msra.mxu1 %v1361_v31 }
  0x5d   : > { %860 = vmatprep.subr.bf16.mxu0 %v1362_v32  ;;  %901 = vmatprep.subr.bf16.mxu1 %v1364_v33 }
  0x60   : > { %861 = vmatpush1.bf16.msra.mxu0 %v1366_v34  ;;  %902 = vmatpush1.bf16.msra.mxu1 %v1367_v35 }
  0x61   : > { %862 = vmatprep.subr.bf16.mxu0 %v1368_v36  ;;  %903 = vmatprep.subr.bf16.mxu1 %v1370_v37 }
  0x64   : > { %863 = vmatpush1.bf16.msra.mxu0 %v1372_v38  ;;  %904 = vmatpush1.bf16.msra.mxu1 %v1373_v39 }
  0x65   : > { %864 = vmatprep.subr.bf16.mxu0 %v1374_v40  ;;  %905 = vmatprep.subr.bf16.mxu1 %v1376_v41 }
  0x68   : > { %865 = vmatpush1.bf16.msra.mxu0 %v1378_v42  ;;  %906 = vmatpush1.bf16.msra.mxu1 %v1379_v43 }
  0x69   : > { %866 = vmatprep.subr.bf16.mxu0 %v1380_v44  ;;  %907 = vmatprep.subr.bf16.mxu1 %v1382_v45 }
  0x6c   : > { %867 = vmatpush1.bf16.msra.mxu0 %v1384_v48  ;;  %908 = vmatpush1.bf16.msra.mxu1 %v1385_v49 }
  0x6d   : > { %868 = vmatprep.subr.bf16.mxu0 %v1386_v50  ;;  %909 = vmatprep.subr.bf16.mxu1 %v1388_v51 }
  0x70   : > { %869 = vmatpush1.bf16.msra.mxu0 %v1390_v52  ;;  %910 = vmatpush1.bf16.msra.mxu1 %v1391_v53 }
  0x71   : > { %870 = vmatprep.subr.bf16.mxu0 %v1392_v54  ;;  %911 = vmatprep.subr.bf16.mxu1 %v1394_v55 }
  0x74   : > { %871 = vmatpush1.bf16.msra.mxu0 %v1396_v56  ;;  %912 = vmatpush1.bf16.msra.mxu1 %v1397_v57 }
  0x75   : > { %872 = vmatprep.subr.bf16.mxu0 %v1398_v58  ;;  %913 = vmatprep.subr.bf16.mxu1 %v1400_v59 }
  0x78   : > { %873 = vmatpush1.bf16.msra.mxu0 %v1402_v60  ;;  %914 = vmatpush1.bf16.msra.mxu1 %v1403_v61 }
  0x79   : > { %874 = vmatprep.subr.bf16.mxu0 %v1404_v62  ;;  %915 = vmatprep.subr.bf16.mxu1 %v1406_v63 }
  0x7c   : > { %875 = vmatpush1.bf16.msra.mxu0 %v1408_v0  ;;  %916 = vmatpush1.bf16.msra.mxu1 %v1409_v1 }
  0x7f   : > { %877 = vmatmul.mubr.bf16.vlgmr.msra.gmra.mrb[0].mxu0 %v1180_v2  ;;  %918 = vmatmul.mubr.bf16.vlgmr.msra.gmra.mrb[0].mxu1 %v1180_v2 }
 0x152   : > { %v878_v14 = vpop.f32.mrb[0].mxu0  ;;  %v919_v15 = vpop.f32.mrb[0].mxu1 }
 0x153   : > { %v963_v16 = vadd.f32 %v946_v10, %v878_v14  ;;  %v965_v17 = vadd.f32 %v954_v11, %v919_v15  ;;  %v880_v18 = vpop.f32.mrb[1].mxu0  ;;  %v921_v19 = vpop.f32.mrb[1].mxu1 }
 0x154   : > { %v964_v20 = vadd.f32 %v950_v12, %v880_v18  ;;  %v966_v21 = vadd.f32 %v958_v13, %v921_v19  ;;  %v882_v22 = vpop.f32.mrb[2].mxu0  ;;  %v923_v23 = vpop.f32.mrb[2].mxu1 }
 0x155   : > { %v1246_v24 = vmul.f32 -1.702, %v963_v16  ;;  %v1248_v25 = vmul.f32 -1.702, %v965_v17  ;;  %v883_v26 = vpop.f32.mrb[3].mxu0  ;;  %v924_v27 = vpop.f32.mrb[3].mxu1 }
 0x156   : > { %v1247_v28 = vmul.f32 -1.702, %v964_v20  ;;  %v1249_v29 = vmul.f32 -1.702, %v966_v21 }
 0x157   : > { %v975_v30 = vmul.f32 1.442695, %v1246_v24  ;;  %v979_v31 = vmul.f32 1.442695, %v1248_v25 }
 0x158   : > { %v977_v32 = vmul.f32 1.442695, %v1247_v28  ;;  %v981_v33 = vmul.f32 1.442695, %v1249_v29 }
 0x159   : > { %1412 = vpow2.f32 %v975_v30 }
 0x15a   : > { %1414 = vpow2.f32 %v979_v31 }
 0x15b   : > { %1416 = vpow2.f32 %v977_v32 }
 0x15c   : > { %1418 = vpow2.f32 %v981_v33 }
 0x163   : > { %v1413_v34 = vpop.eup %1412 }
 0x164   : > { %v1415_v35 = vpop.eup %1414  ;;  %v983_v36 = vadd.f32 1.0, %v1413_v34 }
 0x165   : > { %v1417_v37 = vpop.eup %1416  ;;  %v985_v38 = vadd.f32 1.0, %v1415_v35 }
 0x166   : > { %v1419_v39 = vpop.eup %1418  ;;  %1420 = vrcp.f32 %v983_v36  ;;  %v984_v40 = vadd.f32 1.0, %v1417_v37 }
 0x167   : > { %1422 = vrcp.f32 %v985_v38  ;;  %v986_v41 = vadd.f32 1.0, %v1419_v39 }
 0x168   : > { %1424 = vrcp.f32 %v984_v40 }
 0x169   : > { %1426 = vrcp.f32 %v986_v41 }
 0x170   : > { %v1421_v42 = vpop.eup %1420 }
 0x171   : > { %v1423_v43 = vpop.eup %1422  ;;  %v995_v44 = vmul.f32 %v1421_v42, %v963_v16 }
 0x172   : > { %v1425_v45 = vpop.eup %1424  ;;  %v997_v46 = vmul.f32 %v1423_v43, %v965_v17 }
 0x173   : > { %v1427_v47 = vpop.eup %1426  ;;  %v996_v48 = vmul.f32 %v1425_v45, %v964_v20 }
 0x174   : > { %v998_v49 = vmul.f32 %v1427_v47, %v966_v21 }
 0x175   : > { %v1256_v50 = vpack.c.bf16 %v996_v48, %v995_v44 }
 0x176   : > { %v1257_v51 = vpack.c.bf16 %v998_v49, %v997_v46 }
 0x177   : > { %1015 = vst [vmem:[%s438_s27] sm:$0xff] %v1256_v50 }
 0x178   : > { %1016 = vst [vmem:[%s438_s27 + $0x8] sm:$0xff] %v1257_v51 }
 0x179 PF: > { %s13_s18 = sadd.s32 1, %s1482_s18   ;;  %s1810_s12 = smov %s1462_s13 }
 0x17a   : > { %p10_p12 = scmp.ge.s32.totalorder %s13_s18, 6   ;;  %s1811_s13 = smov %s1553_s23 }
 0x17b   : > { %s1812_s14 = smov %s1474_s16  ;;  %s1813_s15 = smov %s1478_s17 }
 0x17c   : > { %s1814_s16 = smov %s1817_s19  ;;  %s1815_s17 = smov %s1821_s20 }
 0x17d   :  { %12 = sbr.rel (!%p10_p12) target bundleno = 4 (0x4), region = 104 }

// kernel: vision_block_forward.9
= control target key start
LH: loop header
LB: loop body
LE: loop exit
PB: predicated region body
PF: predicated region fallthrough
CT: control target
= control target key end

     0   :  { %s1348_s15 = smov 0   ;;  %s1350_s16 = smov 0   ;;  %s1497_s0 = inlined_call_operand.vmem [shape: bf16[2,8,1024], index: 0, kind: input, shape index: {}]   ;;  %s1498_s1 = inlined_call_operand.vmem [shape: bf16[1024,256], index: 1, kind: input, shape index: {}]   ;;  %s1499_s2 = inlined_call_operand.vmem [shape: f32[1,256], index: 2, kind: input, shape index: {}]   ;;  %s1500_s3 = inlined_call_operand.vmem [shape: f32[2,8,256], index: 3, kind: input, shape index: {}]   ;;  %s1501_s4 = inlined_call_operand.vmem [shape: f32[8,512], index: 4, kind: output, shape index: {}]  }
   0x1   :  { %s1352_s17 = smov 0   ;;  %s1354_s18 = smov 0  }
   0x2   :  { %s1356_s19 = smov 0  }
   0x3 LB: > { %s29_s20 = sadd.s32 1, %s1312_s17  ;;  %s40_s21 = sadd.s32 1, %s1316_s18  ;;  %s1320_s19 = sphi %s1356_s19, %s14_s19   ;;  %s1316_s18 = sphi %s1354_s18, %s1505_s18   ;;  %s1312_s17 = sphi %s1352_s17, %s1504_s17   ;;  %s1308_s16 = sphi %s1350_s16, %s1503_s16   ;;  %s1304_s15 = sphi %s1348_s15, %s1502_s15  }
   0x4   : > { %p30_p0 = scmp.ge.s32.totalorder %s29_s20, 2  ;;  %p1056_p1 = scmp.ge.s32.totalorder %s1320_s19, 1 }
   0x5   : > { %p255_p2 = scmp.lt.s32.totalorder %s1320_s19, 5 }
   0x6   : > { %s1507_s20 = smov (%p30_p0, %s29_s20), 0  ;;  %s1509_s21 = smov (!%p30_p0, %s40_s21), %s1316_s18 }
   0x7   : > { %p256_p3 = pnand %p1056_p1, %p255_p2  ;;  %p42_p4 = scmp.ge.s32.totalorder %s1509_s21, 2 }
   0x8   : > { %s1057_s22 = sshll.u32 (!%p256_p3), %s1304_s15, 2  ;;  %p321_p5 = scmp.lt.s32.totalorder (!%p256_p3), %s1308_s16, 1 }
   0x9   : > { %s1511_s21 = smov (%p42_p4, %s1509_s21), 0  ;;  %259 = sbr.rel (%p256_p3) target bundleno = 325 (0x145), region = 36 }
   0xa   : > { %p325_p6 = scmp.lt.s32.totalorder (!%p256_p3), %s1057_s22, 7  ;;  %s1060_s23 = sshll.u32 (!%p256_p3), %s1304_s15, 6 }
   0xb   : > { %p336_p7 = scmp.lt.s32.totalorder (!%p256_p3), %s1060_s23, 127  ;;  %s1065_s9 = sshll.u32 (!%p256_p3), %s1308_s16, 1 }
   0xc   : > { %p368_p8 = scmp.lt.s32.totalorder (!%p256_p3), %s1065_s9, 3  ;;  %p1067_p9 = scmp.ne.s32.totalorder (!%p256_p3), %s1304_s15, 0 }
  0x10   : > { %s322_s24 = scalar_select %p321_p5, %s1308_s16, 1 }
  0x11   : > { %s1513_s22 = smov (!%p325_p6, %s1057_s22), 7  ;;  %s1515_s23 = smov (!%p336_p7, %s1060_s23), 127 }
  0x12   : > { %s1058_s25 = sshll.u32 %s322_s24, 3  ;;  %s1140_s27 = sshll.u32 %s322_s24, 4  ;;  %v1322_v0 = vmov (!%p1067_p9), 0.0  }
  0x13   : > { %s330_s26 = sadd.s32 %s1058_s25, %s1513_s22  ;;  %s1389_s5 = scalar_lea.vmem %s1500_s3, %s1140_s27  ;;  %379 = vst [vmem:[#allocation2] sm:$0xff] (!%p1067_p9), %v1322_v0  ;;  %380 = vst [vmem:[#allocation2 + $0x8] sm:$0xff] (!%p1067_p9), %v1322_v0 }
  0x14   : > { %s1059_s28 = sshll.u32 %s330_s26, 2  ;;  %s1139_s10 = sshll.u32 %s1515_s23, 3 }
  0x15   : > { %s1394_s8 = scalar_lea.vmem %s1497_s0, %s1059_s28  ;;  %s1400_s13 = scalar_lea.vmem %s1498_s1, %s1139_s10 }
  0x16   : > { %s1517_s9 = smov (!%p368_p8, %s1065_s9), 3  ;;  %378 = sbr.rel (%p1067_p9) target bundleno = 29 (0x1d), region = 40 }
  0x17   : > { %s1066_s14 = sshll.u32 %s1517_s9, 3 }
  0x18   : > { %s1405_s25 = scalar_lea.vmem %s1501_s4, %s1066_s14 }
  0x1d PF: > { %v1182_v1 = vld [vmem:[%s1400_s13 + $0x4] ss:$8 sps:$4 sm:$0xff]   ;;  %v1186_v3 = vld [vmem:[%s1400_s13] ss:$8 sps:$4 sm:$0xff]   ;;  %v1188_v5 = vld [vmem:[%s1400_s13 + $0x14] ss:$8 sps:$4 sm:$0xff]  }
  0x1e   : > { %v1184_v2 = vld [vmem:[%s1400_s13 + $0x104] ss:$8 sps:$4 sm:$0xff]   ;;  %783 = vmatprep.subr.bf16.mxu0 %v1182_v1  ;;  %v1187_v4 = vld [vmem:[%s1400_s13 + $0x100] ss:$8 sps:$4 sm:$0xff]   ;;  %v1190_v6 = vld [vmem:[%s1400_s13 + $0x114] ss:$8 sps:$4 sm:$0xff]  }
  0x1f   : > { %824 = vmatprep.subr.bf16.mxu1 %v1184_v2  ;;  %784 = vmatpush1.bf16.msra.mxu0 %v1186_v3  ;;  %v1192_v7 = vld [vmem:[%s1400_s13 + $0x10] ss:$8 sps:$4 sm:$0xff]   ;;  %v1194_v9 = vld [vmem:[%s1400_s13 + $0x24] ss:$8 sps:$4 sm:$0xff]   ;;  %v1198_v11 = vld [vmem:[%s1400_s13 + $0x20] ss:$8 sps:$4 sm:$0xff]  }
  0x20   : > { %825 = vmatpush1.bf16.msra.mxu1 %v1187_v4  ;;  %785 = vmatprep.subr.bf16.mxu0 %v1188_v5  ;;  %v1193_v8 = vld [vmem:[%s1400_s13 + $0x110] ss:$8 sps:$4 sm:$0xff]   ;;  %v1196_v10 = vld [vmem:[%s1400_s13 + $0x124] ss:$8 sps:$4 sm:$0xff]   ;;  %v1199_v12 = vld [vmem:[%s1400_s13 + $0x120] ss:$8 sps:$4 sm:$0xff]  }
  0x21   : > { %826 = vmatprep.subr.bf16.mxu1 %v1190_v6  ;;  %v1200_v13 = vld [vmem:[%s1400_s13 + $0x34] ss:$8 sps:$4 sm:$0xff]   ;;  %v1204_v15 = vld [vmem:[%s1400_s13 + $0x30] ss:$8 sps:$4 sm:$0xff]   ;;  %v1206_v17 = vld [vmem:[%s1400_s13 + $0x44] ss:$8 sps:$4 sm:$0xff]  }
  0x22   : > { %v1202_v14 = vld [vmem:[%s1400_s13 + $0x134] ss:$8 sps:$4 sm:$0xff]   ;;  %v1205_v16 = vld [vmem:[%s1400_s13 + $0x130] ss:$8 sps:$4 sm:$0xff]   ;;  %v1208_v18 = vld [vmem:[%s1400_s13 + $0x144] ss:$8 sps:$4 sm:$0xff]  }
  0x23   : > { %786 = vmatpush1.bf16.msra.mxu0 %v1192_v7  ;;  %v1210_v19 = vld [vmem:[%s1400_s13 + $0x40] ss:$8 sps:$4 sm:$0xff]   ;;  %v1212_v21 = vld [vmem:[%s1400_s13 + $0x54] ss:$8 sps:$4 sm:$0xff]   ;;  %v1216_v23 = vld [vmem:[%s1400_s13 + $0x50] ss:$8 sps:$4 sm:$0xff]  }
  0x24   : > { %827 = vmatpush1.bf16.msra.mxu1 %v1193_v8  ;;  %787 = vmatprep.subr.bf16.mxu0 %v1194_v9  ;;  %v1211_v20 = vld [vmem:[%s1400_s13 + $0x140] ss:$8 sps:$4 sm:$0xff]   ;;  %v1214_v22 = vld [vmem:[%s1400_s13 + $0x154] ss:$8 sps:$4 sm:$0xff]   ;;  %v1217_v24 = vld [vmem:[%s1400_s13 + $0x150] ss:$8 sps:$4 sm:$0xff]  }
  0x25   : > { %828 = vmatprep.subr.bf16.mxu1 %v1196_v10  ;;  %v1218_v25 = vld [vmem:[%s1400_s13 + $0x64] ss:$8 sps:$4 sm:$0xff]   ;;  %v1222_v27 = vld [vmem:[%s1400_s13 + $0x60] ss:$8 sps:$4 sm:$0xff]   ;;  %v1224_v29 = vld [vmem:[%s1400_s13 + $0x74] ss:$8 sps:$4 sm:$0xff]  }
  0x26   : > { %v1220_v26 = vld [vmem:[%s1400_s13 + $0x164] ss:$8 sps:$4 sm:$0xff]   ;;  %v1223_v28 = vld [vmem:[%s1400_s13 + $0x160] ss:$8 sps:$4 sm:$0xff]   ;;  %v1226_v30 = vld [vmem:[%s1400_s13 + $0x174] ss:$8 sps:$4 sm:$0xff]  }
  0x27   : > { %788 = vmatpush1.bf16.msra.mxu0 %v1198_v11  ;;  %v1228_v31 = vld [vmem:[%s1400_s13 + $0x70] ss:$8 sps:$4 sm:$0xff]   ;;  %v1230_v33 = vld [vmem:[%s1400_s13 + $0x84] ss:$8 sps:$4 sm:$0xff]   ;;  %v1234_v35 = vld [vmem:[%s1400_s13 + $0x80] ss:$8 sps:$4 sm:$0xff]  }
  0x28   : > { %829 = vmatpush1.bf16.msra.mxu1 %v1199_v12  ;;  %789 = vmatprep.subr.bf16.mxu0 %v1200_v13  ;;  %v1229_v32 = vld [vmem:[%s1400_s13 + $0x170] ss:$8 sps:$4 sm:$0xff]   ;;  %v1232_v34 = vld [vmem:[%s1400_s13 + $0x184] ss:$8 sps:$4 sm:$0xff]   ;;  %v1235_v36 = vld [vmem:[%s1400_s13 + $0x180] ss:$8 sps:$4 sm:$0xff]  }
  0x29   : > { %830 = vmatprep.subr.bf16.mxu1 %v1202_v14  ;;  %v1236_v37 = vld [vmem:[%s1400_s13 + $0x94] ss:$8 sps:$4 sm:$0xff]   ;;  %v1240_v39 = vld [vmem:[%s1400_s13 + $0x90] ss:$8 sps:$4 sm:$0xff]   ;;  %v1242_v41 = vld [vmem:[%s1400_s13 + $0xa4] ss:$8 sps:$4 sm:$0xff]  }
  0x2a   : > { %v1238_v38 = vld [vmem:[%s1400_s13 + $0x194] ss:$8 sps:$4 sm:$0xff]   ;;  %v1241_v40 = vld [vmem:[%s1400_s13 + $0x190] ss:$8 sps:$4 sm:$0xff]   ;;  %v1244_v42 = vld [vmem:[%s1400_s13 + $0x1a4] ss:$8 sps:$4 sm:$0xff]  }
  0x2b   : > { %790 = vmatpush1.bf16.msra.mxu0 %v1204_v15  ;;  %v1246_v43 = vld [vmem:[%s1400_s13 + $0xa0] ss:$8 sps:$4 sm:$0xff]   ;;  %v1248_v45 = vld [vmem:[%s1400_s13 + $0xb4] ss:$8 sps:$4 sm:$0xff]   ;;  %v1252_v50 = vld [vmem:[%s1400_s13 + $0xb0] ss:$8 sps:$4 sm:$0xff]  }
  0x2c   : > { %831 = vmatpush1.bf16.msra.mxu1 %v1205_v16  ;;  %791 = vmatprep.subr.bf16.mxu0 %v1206_v17  ;;  %v1247_v44 = vld [vmem:[%s1400_s13 + $0x1a0] ss:$8 sps:$4 sm:$0xff]   ;;  %v1250_v46 = vld [vmem:[%s1400_s13 + $0x1b4] ss:$8 sps:$4 sm:$0xff]   ;;  %v1253_v51 = vld [vmem:[%s1400_s13 + $0x1b0] ss:$8 sps:$4 sm:$0xff]  }
  0x2d   : > { %832 = vmatprep.subr.bf16.mxu1 %v1208_v18  ;;  %v383_v47 = vld [vmem:[%s1394_s8] sm:$0xff]  ;;  %v384_v49 = vld [vmem:[%s1394_s8 + $0x8] sm:$0xff]  ;;  %v1260_v57 = vld [vmem:[%s1400_s13 + $0xd4] ss:$8 sps:$4 sm:$0xff]   ;;  %p1136_p10 = scmp.ne.s32.totalorder %s1304_s15, 1 }
  0x2e   : > { %v1069_v48 = vcombine.high %v383_v47, %v383_v47  ;;  %v1071_v52 = vcombine.high %v384_v49, %v384_v49  ;;  %v1254_v53 = vld [vmem:[%s1400_s13 + $0xc4] ss:$8 sps:$4 sm:$0xff]   ;;  %v1258_v55 = vld [vmem:[%s1400_s13 + $0xc0] ss:$8 sps:$4 sm:$0xff]   ;;  %v1262_v58 = vld [vmem:[%s1400_s13 + $0x1d4] ss:$8 sps:$4 sm:$0xff]   ;;  %v1068_v5 = vcombine.low %v383_v47, %v383_v47  ;;  %v1070_v6 = vcombine.low %v384_v49, %v384_v49 }
  0x2f   : > { %792 = vmatpush1.bf16.msra.mxu0 %v1210_v19  ;;  %v1256_v54 = vld [vmem:[%s1400_s13 + $0x1c4] ss:$8 sps:$4 sm:$0xff]   ;;  %v1259_v56 = vld [vmem:[%s1400_s13 + $0x1c0] ss:$8 sps:$4 sm:$0xff]   ;;  %v1264_v59 = vld [vmem:[%s1400_s13 + $0xd0] ss:$8 sps:$4 sm:$0xff]  }
  0x30   : > { %833 = vmatpush1.bf16.msra.mxu1 %v1211_v20  ;;  %793 = vmatprep.subr.bf16.mxu0 %v1212_v21  ;;  %v1265_v60 = vld [vmem:[%s1400_s13 + $0x1d0] ss:$8 sps:$4 sm:$0xff]   ;;  %v1266_v61 = vld [vmem:[%s1400_s13 + $0xe4] ss:$8 sps:$4 sm:$0xff]   ;;  %v1270_v63 = vld [vmem:[%s1400_s13 + $0xe0] ss:$8 sps:$4 sm:$0xff]   ;;  %v877_v21 = vlaneseq (!%p1136_p10) }
  0x31   : > { %834 = vmatprep.subr.bf16.mxu1 %v1214_v22  ;;  %815 = vmatprep.mubr.bf16.mxu0 %v1069_v48  ;;  %v1268_v62 = vld [vmem:[%s1400_s13 + $0x1e4] ss:$8 sps:$4 sm:$0xff]   ;;  %v1271_v0 = vld [vmem:[%s1400_s13 + $0x1e0] ss:$8 sps:$4 sm:$0xff]   ;;  %v1272_v1 = vld [vmem:[%s1400_s13 + $0xf4] ss:$8 sps:$4 sm:$0xff]  }
  0x32   : > { %856 = vmatprep.mubr.bf16.mxu1 %v1071_v52  ;;  %v1274_v2 = vld [vmem:[%s1400_s13 + $0x1f4] ss:$8 sps:$4 sm:$0xff]   ;;  %v1276_v3 = vld [vmem:[%s1400_s13 + $0xf0] ss:$8 sps:$4 sm:$0xff]   ;;  %v381_v8 = vld [vmem:[#allocation2] sm:$0xff]  ;;  %v878_v22 = vshrl.u32 (!%p1136_p10), %v877_v21, 7 }
  0x33   : > { %794 = vmatpush1.bf16.msra.mxu0 %v1216_v23  ;;  %v1277_v4 = vld [vmem:[%s1400_s13 + $0x1f0] ss:$8 sps:$4 sm:$0xff]   ;;  %v382_v12 = vld [vmem:[#allocation2 + $0x8] sm:$0xff]  ;;  %v875_v23 = vld [vmem:[%s1499_s2] sm:$0x3] (!%p1136_p10) }
  0x34   : > { %835 = vmatpush1.bf16.msra.mxu1 %v1217_v24  ;;  %795 = vmatprep.subr.bf16.mxu0 %v1218_v25  ;;  %v879_v24 = vsub.s32 (!%p1136_p10), 0, %v878_v22  ;;  %v883_v25 = vsub.s32 (!%p1136_p10), 1, %v878_v22 }
  0x35   : > { %836 = vmatprep.subr.bf16.mxu1 %v1220_v26 }
  0x37   : > { %796 = vmatpush1.bf16.msra.mxu0 %v1222_v27 }
  0x38   : > { %837 = vmatpush1.bf16.msra.mxu1 %v1223_v28  ;;  %797 = vmatprep.subr.bf16.mxu0 %v1224_v29  ;;  %v880_v28 = vrot.slane (!%p1136_p10), %v875_v23, %v879_v24  ;;  %v884_v29 = vrot.slane (!%p1136_p10), %v875_v23, %v883_v25 }
  0x39   : > { %838 = vmatprep.subr.bf16.mxu1 %v1226_v30  ;;  %v889_v30 = vld [vmem:[%s1389_s5] sm:$0xff] (!%p1136_p10) }
  0x3b   : > { %798 = vmatpush1.bf16.msra.mxu0 %v1228_v31  ;;  %v890_v31 = vld [vmem:[%s1389_s5 + $0x8] sm:$0xff] (!%p1136_p10) }
  0x3c   : > { %839 = vmatpush1.bf16.msra.mxu1 %v1229_v32  ;;  %799 = vmatprep.subr.bf16.mxu0 %v1230_v33 }
  0x3d   : > { %840 = vmatprep.subr.bf16.mxu1 %v1232_v34 }
  0x3f   : > { %800 = vmatpush1.bf16.msra.mxu0 %v1234_v35 }
  0x40   : > { %841 = vmatpush1.bf16.msra.mxu1 %v1235_v36  ;;  %801 = vmatprep.subr.bf16.mxu0 %v1236_v37 }
  0x41   : > { %842 = vmatprep.subr.bf16.mxu1 %v1238_v38 }
  0x43   : > { %802 = vmatpush1.bf16.msra.mxu0 %v1240_v39 }
  0x44   : > { %843 = vmatpush1.bf16.msra.mxu1 %v1241_v40  ;;  %803 = vmatprep.subr.bf16.mxu0 %v1242_v41 }
  0x45   : > { %844 = vmatprep.subr.bf16.mxu1 %v1244_v42 }
  0x47   : > { %804 = vmatpush1.bf16.msra.mxu0 %v1246_v43 }
  0x48   : > { %845 = vmatpush1.bf16.msra.mxu1 %v1247_v44  ;;  %805 = vmatprep.subr.bf16.mxu0 %v1248_v45 }
  0x49   : > { %846 = vmatprep.subr.bf16.mxu1 %v1250_v46 }
  0x4b   : > { %806 = vmatpush1.bf16.msra.mxu0 %v1252_v50 }
  0x4c   : > { %847 = vmatpush1.bf16.msra.mxu1 %v1253_v51  ;;  %807 = vmatprep.subr.bf16.mxu0 %v1254_v53 }
  0x4d   : > { %848 = vmatprep.subr.bf16.mxu1 %v1256_v54 }
  0x4f   : > { %808 = vmatpush1.bf16.msra.mxu0 %v1258_v55 }
  0x50   : > { %849 = vmatpush1.bf16.msra.mxu1 %v1259_v56  ;;  %809 = vmatprep.subr.bf16.mxu0 %v1260_v57 }
  0x51   : > { %850 = vmatprep.subr.bf16.mxu1 %v1262_v58 }
  0x53   : > { %810 = vmatpush1.bf16.msra.mxu0 %v1264_v59 }
  0x54   : > { %851 = vmatpush1.bf16.msra.mxu1 %v1265_v60  ;;  %811 = vmatprep.subr.bf16.mxu0 %v1266_v61 }
  0x55   : > { %852 = vmatprep.subr.bf16.mxu1 %v1268_v62 }
  0x57   : > { %812 = vmatpush1.bf16.msra.mxu0 %v1270_v63 }
  0x58   : > { %853 = vmatpush1.bf16.msra.mxu1 %v1271_v0  ;;  %813 = vmatprep.subr.bf16.mxu0 %v1272_v1 }
  0x59   : > { %854 = vmatprep.subr.bf16.mxu1 %v1274_v2 }
  0x5b   : > { %814 = vmatpush1.bf16.msra.mxu0 %v1276_v3 }
  0x5c   : > { %855 = vmatpush1.bf16.msra.mxu1 %v1277_v4 }
  0x5e   : > { %816 = vmatmul.mubr.bf16.vlgmr.msra.gmra.mrb[0].mxu0 %v1068_v5 }
  0x5f   : > { %857 = vmatmul.mubr.bf16.vlgmr.msra.gmra.mrb[0].mxu1 %v1070_v6 }
 0x131   : > { %v817_v7 = vpop.f32.mrb[0].mxu0 }
 0x132   : > { %v858_v9 = vpop.f32.mrb[0].mxu1  ;;  %v819_v11 = vpop.f32.mrb[1].mxu0  ;;  %872 = sbr.rel (%p1136_p10) target bundleno = 325 (0x145), region = 44 }
 0x133   : > { %v859_v10 = vadd.f32 %v858_v9, %v817_v7  ;;  %v860_v13 = vpop.f32.mrb[1].mxu1  ;;  %v821_v15 = vpop.f32.mrb[2].mxu0 }
 0x134   : > { %v861_v14 = vadd.f32 %v860_v13, %v819_v11  ;;  %v862_v16 = vpop.f32.mrb[2].mxu1  ;;  %v822_v18 = vpop.f32.mrb[3].mxu0 }
 0x135   : > { %v865_v17 = vadd.f32 %v859_v10, %v381_v8  ;;  %v863_v19 = vpop.f32.mrb[3].mxu1 }
 0x136   : > { %v866_v20 = vadd.f32 %v861_v14, %v382_v12 }
 0x137   : > { %867 = vst [vmem:[#allocation2] sm:$0xff] %v865_v17 }
 0x138   : > { %868 = vst [vmem:[#allocation2 + $0x8] sm:$0xff] %v866_v20 }
 0x13e   : > { %v873_v26 = vld [vmem:[#allocation2] sm:$0xff] }
 0x13f   : > { %v874_v27 = vld [vmem:[#allocation2 + $0x8] sm:$0xff]  ;;  %v887_v32 = vadd.f32 %v880_v28, %v873_v26 }
 0x140   : > { %v888_v33 = vadd.f32 %v884_v29, %v874_v27 }
 0x141   : > { %v891_v34 = vadd.f32 %v889_v30, %v887_v32 }
 0x142   : > { %v892_v35 = vadd.f32 %v890_v31, %v888_v33 }
 0x143   : > { %893 = vst [vmem:[%s1405_s25] sm:$0xff] %v891_v34 }
 0x144   : > { %894 = vst [vmem:[%s1405_s25 + $0x8] sm:$0xff] %v892_v35 }
 0x145 PF: > { %s14_s19 = sadd.s32 1, %s1320_s19   ;;  %s1502_s15 = smov %s1312_s17 }
 0x146   : > { %p11_p11 = scmp.ge.s32.totalorder %s14_s19, 6   ;;  %s1503_s16 = smov %s1316_s18 }
 0x147   : > { %s1504_s17 = smov %s1507_s20  ;;  %s1505_s18 = smov %s1511_s21 }
 0x148   :  { %13 = sbr.rel (!%p11_p11) target bundleno = 3 (0x3), region = 83 }

</bundles_post_ra>
